<compile_context>
chip_gen: v6e
topology: v6e:2x2x1
jax: 0.10.0
libtpu: 0.0.40
codegen_flags: <defaults>
</compile_context>

<pallas_src>
import functools

import jax
import jax.numpy as jnp
from jax.experimental import pallas as pl
from jax.experimental.pallas import tpu as pltpu


def _round_up(v, m):
    return (v + m - 1) // m * m


def _tada_kernel_im2col(alpha_ref, x_ref, w_ref, o_ref, col_ref, *,
                        t_blk, c_in_pad, kh, kw, wp, n_lane, n_tile,
                        compute_dtype):
    """One grid step = T_blk (b,t) slices; im2col RHS is per-slice (reused).

    alpha_ref: (T_blk, 1, K)            f32 calibration, tiled over the kh*kw taps
    x_ref:     (T_blk, C_in_pad, Lx_pad) compute-dtype, lane-dense padded image
    w_ref:     (C_out, K)               f32 resident, grid-invariant base weight
    o_ref:     (T_blk, C_out, N)        lane-dense output (junk cols stripped later)
    col_ref:   (K, N)                   compute-dtype im2col scratch (per slice)
    """
    w_base = w_ref[...]                                   # hoisted, grid-invariant
    for s in range(t_blk):
        # Fold the per-(b,t) calibration into the small weight; rounded once.
        w_s = (w_base * alpha_ref[s]).astype(compute_dtype)          # (C_out, K)

        # Build the im2col RHS for this slice: one static lane-shifted copy
        # per tap (pure copies, no VALU work on the image).
        # TODO(synk): for large W, lay spatial out as (Hp rows, Wp->128 lanes)
        # so dy becomes an aligned row offset and only kw lane shifts remain.
        for dy in range(kh):
            for dx in range(kw):
                tap = dy * kw + dx
                off = dy * wp + dx
                col_ref[tap * c_in_pad:(tap + 1) * c_in_pad, :] = (
                    x_ref[s, :, off:off + n_lane])

        # One big-K MXU contraction per slice (taps accumulate inside the MXU),
        # N-tiled so the f32 result stays register-resident while draining.
        for j0 in range(0, n_lane, n_tile):
            j1 = min(j0 + n_tile, n_lane)
            o_ref[s, :, j0:j1] = jnp.dot(
                w_s, col_ref[:, j0:j1],
                preferred_element_type=jnp.float32).astype(o_ref.dtype)


def _tada_kernel_direct(alpha_ref, x_ref, w_ref, o_ref, *,
                        t_blk, c_in_pad, c_out, kh, kw, wp, n_lane, n_tile,
                        compute_dtype):
    """No-im2col path: kh*kw accumulating dots straight from the x view.

    Preferred on v7x (MRB accumulates in place); avoids the 9x image-copy pass
    and the (K, N) scratch entirely.
    """
    w_base = w_ref[...]
    for s in range(t_blk):
        w_s = (w_base * alpha_ref[s]).astype(compute_dtype)          # (C_out, K)
        for j0 in range(0, n_lane, n_tile):
            width = min(j0 + n_tile, n_lane) - j0
            acc = jnp.zeros((c_out, width), jnp.float32)
            for dy in range(kh):
                for dx in range(kw):
                    tap = dy * kw + dx
                    off = dy * wp + dx + j0
                    acc = acc + jnp.dot(
                        w_s[:, tap * c_in_pad:(tap + 1) * c_in_pad],
                        x_ref[s, :, off:off + width],
                        preferred_element_type=jnp.float32)
            o_ref[s, :, j0:j0 + width] = acc.astype(o_ref.dtype)


def _vmem_block_bytes(t_blk, *, c_in_pad, c_out, k_mm, lx_pad, n_lane,
                      x_itemsize, out_itemsize, col_itemsize, use_im2col):
    """Rough padded-VMEM footprint of one grid step (double-buffered I/O)."""
    c_out_pad = _round_up(c_out, 8)
    k_pad = _round_up(k_mm, 128)
    x_b = t_blk * c_in_pad * lx_pad * x_itemsize
    a_b = t_blk * 8 * k_pad * 4                    # (1, K) f32 tile pads to (8, K_pad)
    o_b = t_blk * c_out_pad * n_lane * out_itemsize
    w_b = 2 * c_out_pad * k_pad * 4                # invariant weight, count 2 buffers
    col_b = (_round_up(k_mm, 8) * n_lane * col_itemsize) if use_im2col else 0
    return 2 * (x_b + a_b + o_b) + w_b + col_b


def tada_conv2d(x, alpha, weight, *, stride=(1, 1), padding=(1, 1),
                compute_dtype=jnp.bfloat16, use_im2col=True,
                t_block=None, max_t_block=8, n_tile=None,
                vmem_budget_bytes=16 * 2**20):
    """Pallas TAdaConv2d forward. groups=1, bias=False, dilation=1, stride=1.

    compute_dtype: dtype of the MXU operands. Default bf16 on every TPU
    generation (the MXU is bf16-native; accumulation is always f32). Use
    jnp.float32 only for exactness checks.
    use_im2col=False: per-tap accumulating dots (no im2col scratch), preferred
    on v7x where the MXU result buffer accumulates in place.
    """
    # TODO(synk): strided output slicing and groups>1 not implemented in-kernel.
    assert stride == (1, 1)
    b, c_in, t, h, w = x.shape
    _, _, c_out, c_in_w, kh, kw = weight.shape
    assert c_in_w == c_in, "groups != 1 not supported"
    ph, pw = padding
    hp, wp = h + 2 * ph, w + 2 * pw
    ho, wo = hp - kh + 1, wp - kw + 1
    bt = b * t

    cdt = jnp.dtype(compute_dtype)
    odt = jnp.dtype(x.dtype)
    c_in_pad = _round_up(c_in, 8)                    # aligned im2col sublane stores
    n_lane = _round_up(ho * wp, 128)                 # lane-dense output width (+junk cols)
    max_off = (kh - 1) * wp + (kw - 1)               # largest tap lane shift
    lx_pad = _round_up(max_off + n_lane, 128)        # every tap slice stays in-bounds
    k_mm = kh * kw * c_in_pad

    if n_tile is None:
        # Keep each f32 MXU result <= ~128 KiB so it drains from the MRF
        # without spilling (v5e/v6e); v7x's addressable MRB tolerates 512.
        n_tile = 512 if c_out * 512 * 4 <= 128 * 1024 else 256
    assert n_tile % 128 == 0

    # ---- XLA glue: permute / zero-pad / flatten to lane-dense per-(b,t) layout.
    # TODO(synk): fold this transpose/pad into the pallas_call (grid=(B, T//t_blk)
    # BlockSpecs + in-kernel zero padding) to save an HBM pass over x.
    x_bt = jnp.transpose(x, (0, 2, 1, 3, 4)).reshape(bt, c_in, h, w)
    x_bt = jnp.pad(x_bt, ((0, 0), (0, c_in_pad - c_in), (ph, ph), (pw, pw)))
    x_flat = x_bt.reshape(bt, c_in_pad, hp * wp)
    x_flat = jnp.pad(x_flat, ((0, 0), (0, 0), (0, lx_pad - hp * wp))).astype(cdt)

    # alpha -> (BT, 1, K): per-channel calibration tiled over the kh*kw taps,
    # kept f32 so (alpha * W) is rounded to the MXU dtype exactly once in-kernel.
    a_bt = jnp.transpose(alpha[:, :, :, 0, 0], (0, 2, 1)).reshape(bt, c_in)
    a_bt = jnp.pad(a_bt, ((0, 0), (0, c_in_pad - c_in)))
    a_mm = jnp.tile(a_bt, (1, kh * kw)).reshape(bt, 1, k_mm).astype(jnp.float32)

    # Base weight -> (C_out, K) in f32; column index = (dy*kw + dx)*C_in_pad + c.
    w4 = weight.reshape(c_out, c_in, kh, kw)
    w4 = jnp.pad(w4, ((0, 0), (0, c_in_pad - c_in), (0, 0), (0, 0)))
    w_mm = jnp.transpose(w4, (0, 2, 3, 1)).reshape(c_out, k_mm).astype(jnp.float32)

    # ---- Pick T_blk = (b,t) slices per grid step (largest divisor within budget).
    bytes_fn = functools.partial(
        _vmem_block_bytes, c_in_pad=c_in_pad, c_out=c_out, k_mm=k_mm,
        lx_pad=lx_pad, n_lane=n_lane, x_itemsize=cdt.itemsize,
        out_itemsize=odt.itemsize, col_itemsize=cdt.itemsize,
        use_im2col=use_im2col)
    if t_block is None:
        t_blk = 1
        for cand in range(2, min(bt, max_t_block) + 1):
            if bt % cand == 0 and bytes_fn(cand) <= vmem_budget_bytes:
                t_blk = cand
    else:
        t_blk = t_block
        assert bt % t_blk == 0
    est = bytes_fn(t_blk)
    # Cap scoped VMEM at 32 MiB: headroom for Mosaic internal scratch on v7x
    # (64 MiB physical); raise vmem_budget_bytes on v5e/v6e (128 MiB) if needed.
    vmem_limit = int(min(32 * 2**20, max(16 * 2**20, 2 * est)))

    if use_im2col:
        kernel = functools.partial(
            _tada_kernel_im2col, t_blk=t_blk, c_in_pad=c_in_pad, kh=kh, kw=kw,
            wp=wp, n_lane=n_lane, n_tile=n_tile, compute_dtype=cdt)
        scratch_shapes = [pltpu.VMEM((k_mm, n_lane), cdt)]   # per-slice im2col RHS
    else:
        kernel = functools.partial(
            _tada_kernel_direct, t_blk=t_blk, c_in_pad=c_in_pad, c_out=c_out,
            kh=kh, kw=kw, wp=wp, n_lane=n_lane, n_tile=n_tile, compute_dtype=cdt)
        scratch_shapes = []

    out_flat = pl.pallas_call(
        kernel,
        out_shape=jax.ShapeDtypeStruct((bt, c_out, n_lane), odt),
        grid_spec=pltpu.PrefetchScalarGridSpec(
            num_scalar_prefetch=0,
            grid=(bt // t_blk,),
            in_specs=[
                pl.BlockSpec((t_blk, 1, k_mm), lambda i: (i, 0, 0)),           # alpha
                pl.BlockSpec((t_blk, c_in_pad, lx_pad), lambda i: (i, 0, 0)),  # x
                # TODO(synk): pipeline_mode=pl.Buffered(1) here would drop the
                # unused second buffer of this grid-invariant block.
                pl.BlockSpec((c_out, k_mm), lambda i: (0, 0)),                 # resident W
            ],
            out_specs=pl.BlockSpec((t_blk, c_out, n_lane), lambda i: (i, 0, 0)),
            scratch_shapes=scratch_shapes,
        ),
        compiler_params=pltpu.CompilerParams(
            # TODO(synk): switch to pltpu.CORE_PARALLEL on v7x (2 TCs/chip) to
            # shard the (b,t) grid across both TensorCores.
            dimension_semantics=("parallel",),
            vmem_limit_bytes=vmem_limit),
    )(a_mm, x_flat, w_mm)

    # Strip the lane padding and the (Wp - Wo) wrap junk columns once.
    out = out_flat[:, :, :ho * wp].reshape(bt, c_out, ho, wp)[:, :, :, :wo]
    out = out.reshape(b, t, c_out, ho, wo)
    return jnp.transpose(out, (0, 2, 1, 3, 4))        # (B, C_out, T, H_out, W_out)


def tada_conv2d_ref(x, alpha, weight, *, padding=(1, 1)):
    """Pure-JAX reference matching the PyTorch forward (groups=1, bias=False)."""
    b, c_in, t, h, w = x.shape
    _, _, c_out, _, kh, kw = weight.shape
    ph, pw = padding
    xpad = jnp.pad(x, ((0, 0), (0, 0), (0, 0), (ph, ph), (pw, pw)))
    h_out = h + 2 * ph - kh + 1
    w_out = w + 2 * pw - kw + 1
    w4 = weight.reshape(c_out, c_in, kh, kw)
    a = alpha[:, :, :, 0, 0]                                         # (B,C_in,T)
    out = jnp.zeros((b, c_out, t, h_out, w_out), jnp.float32)
    for dy in range(kh):
        for dx in range(kw):
            xs = xpad[:, :, :, dy:dy + h_out, dx:dx + w_out]         # (B,C_in,T,Ho,Wo)
            xs = xs * a[..., None, None]
            out = out + jnp.einsum('oc,bcthw->bothw', w4[:, :, dy, dx], xs)
    return out.astype(x.dtype)


if __name__ == "__main__":
    # Small shapes consistent with the module: 5-D video tensor.
    B, C_IN, C_OUT, T, H, W = 2, 4, 8, 4, 16, 16
    KH = KW = 3
    PAD = (1, 1)

    key = jax.random.PRNGKey(0)
    kx, ka, kw_ = jax.random.split(key, 3)

    x = jax.random.normal(kx, (B, C_IN, T, H, W), dtype=jnp.float32)
    # Calibration weights (what the routing function would produce), around 1.
    alpha = 1.0 + 0.1 * jax.random.normal(ka, (B, C_IN, T, 1, 1), dtype=jnp.float32)
    # Deterministic kaiming-uniform-like init for the base weight (bias=False,
    # since the PyTorch forward raises NotImplementedError for bias).
    fan_in = C_IN * KH * KW
    bound = 1.0 / (fan_in ** 0.5)
    weight = jax.random.uniform(kw_, (1, 1, C_OUT, C_IN, KH, KW),
                                dtype=jnp.float32, minval=-bound, maxval=bound)

    ref = tada_conv2d_ref(x, alpha, weight, padding=PAD)

    # f32 MXU operands: exactness check of the im2col path.
    out_f32 = jax.block_until_ready(
        tada_conv2d(x, alpha, weight, padding=PAD, compute_dtype=jnp.float32))
    assert out_f32.shape == (B, C_OUT, T, H, W), out_f32.shape
    assert jnp.allclose(out_f32, ref, atol=1e-4, rtol=1e-4), \
        float(jnp.max(jnp.abs(out_f32 - ref)))

    # Default path: bf16 MXU operands, f32 accumulation (perf path, all gens).
    out_bf16 = jax.block_until_ready(
        tada_conv2d(x, alpha, weight, padding=PAD))
    assert out_bf16.shape == (B, C_OUT, T, H, W), out_bf16.shape
    assert jnp.allclose(out_bf16, ref, atol=8e-2, rtol=8e-2), \
        float(jnp.max(jnp.abs(out_bf16 - ref)))

    # Per-tap accumulation path (no im2col scratch; v7x-preferred), f32 check.
    out_pt = jax.block_until_ready(
        tada_conv2d(x, alpha, weight, padding=PAD, use_im2col=False,
                    compute_dtype=jnp.float32))
    assert out_pt.shape == (B, C_OUT, T, H, W), out_pt.shape
    assert jnp.allclose(out_pt, ref, atol=1e-4, rtol=1e-4), \
        float(jnp.max(jnp.abs(out_pt - ref)))

    print("KERNEL_OK")
</pallas_src>

<mosaic_0001>
module attributes {stable_mosaic.version = 11 : i64} {
  func.func @_tada_kernel_im2col(%arg0: i32, %arg1: memref<8x1x72xf32, #tpu.memory_space<vmem>>, %arg2: memref<8x8x512xf32, #tpu.memory_space<vmem>>, %arg3: memref<8x72xf32, #tpu.memory_space<vmem>>, %arg4: memref<8x8x384xf32, #tpu.memory_space<vmem>>, %arg5: memref<72x384xf32, #tpu.memory_space<vmem>>) attributes {dimension_semantics = [#tpu.dimension_semantics<parallel>], iteration_bounds = array<i64: 1>, scalar_prefetch = 0 : i64, scratch_operands = 1 : i64, tpu.core_type = #tpu.core_type<tc>, window_params = [{transform_indices = @transform_0, window_bounds = array<i64: 8, 1, 72>}, {transform_indices = @transform_1, window_bounds = array<i64: 8, 8, 512>}, {pipeline_mode = #tpu.pipeline_mode<synchronous>, transform_indices = @transform_2, window_bounds = array<i64: 8, 72>}, {transform_indices = @transform_3, window_bounds = array<i64: 8, 8, 384>}]} {
    %c0 = arith.constant 0 : index
    %c0_0 = arith.constant 0 : index
    %0 = vector.load %arg3[%c0, %c0_0] : memref<8x72xf32, #tpu.memory_space<vmem>>, vector<8x72xf32>
    %c0_1 = arith.constant 0 : index
    %c0_2 = arith.constant 0 : index
    %c0_3 = arith.constant 0 : index
    %1 = vector.load %arg1[%c0_1, %c0_2, %c0_3] : memref<8x1x72xf32, #tpu.memory_space<vmem>>, vector<1x1x72xf32>
    %2 = vector.shape_cast %1 : vector<1x1x72xf32> to vector<1x72xf32>
    %3 = vector.broadcast %2 : vector<1x72xf32> to vector<8x72xf32>
    %4 = arith.mulf %0, %3 : vector<8x72xf32>
    %c0_4 = arith.constant 0 : index
    %c0_5 = arith.constant 0 : index
    %c0_6 = arith.constant 0 : index
    %5 = vector.load %arg2[%c0_4, %c0_5, %c0_6] : memref<8x8x512xf32, #tpu.memory_space<vmem>>, vector<1x8x384xf32>
    %6 = vector.shape_cast %5 : vector<1x8x384xf32> to vector<8x384xf32>
    %c0_7 = arith.constant 0 : index
    %c0_8 = arith.constant 0 : index
    %7 = vector.load %arg5[%c0_7, %c0_8] : memref<72x384xf32, #tpu.memory_space<vmem>>, vector<8x384xf32>
    tpu.vector_store %arg5[%c0_7, %c0_8], %6 {strides = array<i32>} : memref<72x384xf32, #tpu.memory_space<vmem>>, vector<8x384xf32>,
    %c0_9 = arith.constant 0 : index
    %c0_10 = arith.constant 0 : index
    %c1 = arith.constant 1 : index
    %8 = vector.load %arg2[%c0_9, %c0_10, %c1] : memref<8x8x512xf32, #tpu.memory_space<vmem>>, vector<1x8x384xf32>
    %9 = vector.shape_cast %8 : vector<1x8x384xf32> to vector<8x384xf32>
    %c8 = arith.constant 8 : index
    %c0_11 = arith.constant 0 : index
    %10 = vector.load %arg5[%c8, %c0_11] : memref<72x384xf32, #tpu.memory_space<vmem>>, vector<8x384xf32>
    tpu.vector_store %arg5[%c8, %c0_11], %9 {strides = array<i32>} : memref<72x384xf32, #tpu.memory_space<vmem>>, vector<8x384xf32>,
    %c0_12 = arith.constant 0 : index
    %c0_13 = arith.constant 0 : index
    %c2 = arith.constant 2 : index
    %11 = vector.load %arg2[%c0_12, %c0_13, %c2] : memref<8x8x512xf32, #tpu.memory_space<vmem>>, vector<1x8x384xf32>
    %12 = vector.shape_cast %11 : vector<1x8x384xf32> to vector<8x384xf32>
    %c16 = arith.constant 16 : index
    %c0_14 = arith.constant 0 : index
    %13 = vector.load %arg5[%c16, %c0_14] : memref<72x384xf32, #tpu.memory_space<vmem>>, vector<8x384xf32>
    tpu.vector_store %arg5[%c16, %c0_14], %12 {strides = array<i32>} : memref<72x384xf32, #tpu.memory_space<vmem>>, vector<8x384xf32>,
    %c0_15 = arith.constant 0 : index
    %c0_16 = arith.constant 0 : index
    %c18 = arith.constant 18 : index
    %14 = vector.load %arg2[%c0_15, %c0_16, %c18] : memref<8x8x512xf32, #tpu.memory_space<vmem>>, vector<1x8x384xf32>
    %15 = vector.shape_cast %14 : vector<1x8x384xf32> to vector<8x384xf32>
    %c24 = arith.constant 24 : index
    %c0_17 = arith.constant 0 : index
    %16 = vector.load %arg5[%c24, %c0_17] : memref<72x384xf32, #tpu.memory_space<vmem>>, vector<8x384xf32>
    tpu.vector_store %arg5[%c24, %c0_17], %15 {strides = array<i32>} : memref<72x384xf32, #tpu.memory_space<vmem>>, vector<8x384xf32>,
    %c0_18 = arith.constant 0 : index
    %c0_19 = arith.constant 0 : index
    %c19 = arith.constant 19 : index
    %17 = vector.load %arg2[%c0_18, %c0_19, %c19] : memref<8x8x512xf32, #tpu.memory_space<vmem>>, vector<1x8x384xf32>
    %18 = vector.shape_cast %17 : vector<1x8x384xf32> to vector<8x384xf32>
    %c32 = arith.constant 32 : index
    %c0_20 = arith.constant 0 : index
    %19 = vector.load %arg5[%c32, %c0_20] : memref<72x384xf32, #tpu.memory_space<vmem>>, vector<8x384xf32>
    tpu.vector_store %arg5[%c32, %c0_20], %18 {strides = array<i32>} : memref<72x384xf32, #tpu.memory_space<vmem>>, vector<8x384xf32>,
    %c0_21 = arith.constant 0 : index
    %c0_22 = arith.constant 0 : index
    %c20 = arith.constant 20 : index
    %20 = vector.load %arg2[%c0_21, %c0_22, %c20] : memref<8x8x512xf32, #tpu.memory_space<vmem>>, vector<1x8x384xf32>
    %21 = vector.shape_cast %20 : vector<1x8x384xf32> to vector<8x384xf32>
    %c40 = arith.constant 40 : index
    %c0_23 = arith.constant 0 : index
    %22 = vector.load %arg5[%c40, %c0_23] : memref<72x384xf32, #tpu.memory_space<vmem>>, vector<8x384xf32>
    tpu.vector_store %arg5[%c40, %c0_23], %21 {strides = array<i32>} : memref<72x384xf32, #tpu.memory_space<vmem>>, vector<8x384xf32>,
    %c0_24 = arith.constant 0 : index
    %c0_25 = arith.constant 0 : index
    %c36 = arith.constant 36 : index
    %23 = vector.load %arg2[%c0_24, %c0_25, %c36] : memref<8x8x512xf32, #tpu.memory_space<vmem>>, vector<1x8x384xf32>
    %24 = vector.shape_cast %23 : vector<1x8x384xf32> to vector<8x384xf32>
    %c48 = arith.constant 48 : index
    %c0_26 = arith.constant 0 : index
    %25 = vector.load %arg5[%c48, %c0_26] : memref<72x384xf32, #tpu.memory_space<vmem>>, vector<8x384xf32>
    tpu.vector_store %arg5[%c48, %c0_26], %24 {strides = array<i32>} : memref<72x384xf32, #tpu.memory_space<vmem>>, vector<8x384xf32>,
    %c0_27 = arith.constant 0 : index
    %c0_28 = arith.constant 0 : index
    %c37 = arith.constant 37 : index
    %26 = vector.load %arg2[%c0_27, %c0_28, %c37] : memref<8x8x512xf32, #tpu.memory_space<vmem>>, vector<1x8x384xf32>
    %27 = vector.shape_cast %26 : vector<1x8x384xf32> to vector<8x384xf32>
    %c56 = arith.constant 56 : index
    %c0_29 = arith.constant 0 : index
    %28 = vector.load %arg5[%c56, %c0_29] : memref<72x384xf32, #tpu.memory_space<vmem>>, vector<8x384xf32>
    tpu.vector_store %arg5[%c56, %c0_29], %27 {strides = array<i32>} : memref<72x384xf32, #tpu.memory_space<vmem>>, vector<8x384xf32>,
    %c0_30 = arith.constant 0 : index
    %c0_31 = arith.constant 0 : index
    %c38 = arith.constant 38 : index
    %29 = vector.load %arg2[%c0_30, %c0_31, %c38] : memref<8x8x512xf32, #tpu.memory_space<vmem>>, vector<1x8x384xf32>
    %30 = vector.shape_cast %29 : vector<1x8x384xf32> to vector<8x384xf32>
    %c64 = arith.constant 64 : index
    %c0_32 = arith.constant 0 : index
    %31 = vector.load %arg5[%c64, %c0_32] : memref<72x384xf32, #tpu.memory_space<vmem>>, vector<8x384xf32>
    tpu.vector_store %arg5[%c64, %c0_32], %30 {strides = array<i32>} : memref<72x384xf32, #tpu.memory_space<vmem>>, vector<8x384xf32>,
    %c0_33 = arith.constant 0 : index
    %c0_34 = arith.constant 0 : index
    %32 = vector.load %arg5[%c0_33, %c0_34] : memref<72x384xf32, #tpu.memory_space<vmem>>, vector<72x384xf32>
    %cst = arith.constant dense<0.000000e+00> : vector<8x384xf32>
    %33 = tpu.matmul %4, %32, %cst {dimension_numbers = #tpu.dot_dimension_numbers<[1], [0], [0], [1], [0, 0, 1, 1], [], []>} : vector<8x72xf32>, vector<72x384xf32>, vector<8x384xf32> -> vector<8x384xf32>
    %c0_35 = arith.constant 0 : index
    %c0_36 = arith.constant 0 : index
    %c0_37 = arith.constant 0 : index
    %34 = vector.load %arg4[%c0_35, %c0_36, %c0_37] : memref<8x8x384xf32, #tpu.memory_space<vmem>>, vector<1x8x384xf32>
    %35 = vector.shape_cast %34 : vector<1x8x384xf32> to vector<8x384xf32>
    %36 = vector.shape_cast %33 : vector<8x384xf32> to vector<1x8x384xf32>
    tpu.vector_store %arg4[%c0_35, %c0_36, %c0_37], %36 {strides = array<i32>} : memref<8x8x384xf32, #tpu.memory_space<vmem>>, vector<1x8x384xf32>,
    %c1_38 = arith.constant 1 : index
    %c0_39 = arith.constant 0 : index
    %c0_40 = arith.constant 0 : index
    %37 = vector.load %arg1[%c1_38, %c0_39, %c0_40] : memref<8x1x72xf32, #tpu.memory_space<vmem>>, vector<1x1x72xf32>
    %38 = vector.shape_cast %37 : vector<1x1x72xf32> to vector<1x72xf32>
    %39 = vector.broadcast %38 : vector<1x72xf32> to vector<8x72xf32>
    %40 = arith.mulf %0, %39 : vector<8x72xf32>
    %c1_41 = arith.constant 1 : index
    %c0_42 = arith.constant 0 : index
    %c0_43 = arith.constant 0 : index
    %41 = vector.load %arg2[%c1_41, %c0_42, %c0_43] : memref<8x8x512xf32, #tpu.memory_space<vmem>>, vector<1x8x384xf32>
    %42 = vector.shape_cast %41 : vector<1x8x384xf32> to vector<8x384xf32>
    %c0_44 = arith.constant 0 : index
    %c0_45 = arith.constant 0 : index
    %43 = vector.load %arg5[%c0_44, %c0_45] : memref<72x384xf32, #tpu.memory_space<vmem>>, vector<8x384xf32>
    tpu.vector_store %arg5[%c0_44, %c0_45], %42 {strides = array<i32>} : memref<72x384xf32, #tpu.memory_space<vmem>>, vector<8x384xf32>,
    %c1_46 = arith.constant 1 : index
    %c0_47 = arith.constant 0 : index
    %c1_48 = arith.constant 1 : index
    %44 = vector.load %arg2[%c1_46, %c0_47, %c1_48] : memref<8x8x512xf32, #tpu.memory_space<vmem>>, vector<1x8x384xf32>
    %45 = vector.shape_cast %44 : vector<1x8x384xf32> to vector<8x384xf32>
    %c8_49 = arith.constant 8 : index
    %c0_50 = arith.constant 0 : index
    %46 = vector.load %arg5[%c8_49, %c0_50] : memref<72x384xf32, #tpu.memory_space<vmem>>, vector<8x384xf32>
    tpu.vector_store %arg5[%c8_49, %c0_50], %45 {strides = array<i32>} : memref<72x384xf32, #tpu.memory_space<vmem>>, vector<8x384xf32>,
    %c1_51 = arith.constant 1 : index
    %c0_52 = arith.constant 0 : index
    %c2_53 = arith.constant 2 : index
    %47 = vector.load %arg2[%c1_51, %c0_52, %c2_53] : memref<8x8x512xf32, #tpu.memory_space<vmem>>, vector<1x8x384xf32>
    %48 = vector.shape_cast %47 : vector<1x8x384xf32> to vector<8x384xf32>
    %c16_54 = arith.constant 16 : index
    %c0_55 = arith.constant 0 : index
    %49 = vector.load %arg5[%c16_54, %c0_55] : memref<72x384xf32, #tpu.memory_space<vmem>>, vector<8x384xf32>
    tpu.vector_store %arg5[%c16_54, %c0_55], %48 {strides = array<i32>} : memref<72x384xf32, #tpu.memory_space<vmem>>, vector<8x384xf32>,
    %c1_56 = arith.constant 1 : index
    %c0_57 = arith.constant 0 : index
    %c18_58 = arith.constant 18 : index
    %50 = vector.load %arg2[%c1_56, %c0_57, %c18_58] : memref<8x8x512xf32, #tpu.memory_space<vmem>>, vector<1x8x384xf32>
    %51 = vector.shape_cast %50 : vector<1x8x384xf32> to vector<8x384xf32>
    %c24_59 = arith.constant 24 : index
    %c0_60 = arith.constant 0 : index
    %52 = vector.load %arg5[%c24_59, %c0_60] : memref<72x384xf32, #tpu.memory_space<vmem>>, vector<8x384xf32>
    tpu.vector_store %arg5[%c24_59, %c0_60], %51 {strides = array<i32>} : memref<72x384xf32, #tpu.memory_space<vmem>>, vector<8x384xf32>,
    %c1_61 = arith.constant 1 : index
    %c0_62 = arith.constant 0 : index
    %c19_63 = arith.constant 19 : index
    %53 = vector.load %arg2[%c1_61, %c0_62, %c19_63] : memref<8x8x512xf32, #tpu.memory_space<vmem>>, vector<1x8x384xf32>
    %54 = vector.shape_cast %53 : vector<1x8x384xf32> to vector<8x384xf32>
    %c32_64 = arith.constant 32 : index
    %c0_65 = arith.constant 0 : index
    %55 = vector.load %arg5[%c32_64, %c0_65] : memref<72x384xf32, #tpu.memory_space<vmem>>, vector<8x384xf32>
    tpu.vector_store %arg5[%c32_64, %c0_65], %54 {strides = array<i32>} : memref<72x384xf32, #tpu.memory_space<vmem>>, vector<8x384xf32>,
    %c1_66 = arith.constant 1 : index
    %c0_67 = arith.constant 0 : index
    %c20_68 = arith.constant 20 : index
    %56 = vector.load %arg2[%c1_66, %c0_67, %c20_68] : memref<8x8x512xf32, #tpu.memory_space<vmem>>, vector<1x8x384xf32>
    %57 = vector.shape_cast %56 : vector<1x8x384xf32> to vector<8x384xf32>
    %c40_69 = arith.constant 40 : index
    %c0_70 = arith.constant 0 : index
    %58 = vector.load %arg5[%c40_69, %c0_70] : memref<72x384xf32, #tpu.memory_space<vmem>>, vector<8x384xf32>
    tpu.vector_store %arg5[%c40_69, %c0_70], %57 {strides = array<i32>} : memref<72x384xf32, #tpu.memory_space<vmem>>, vector<8x384xf32>,
    %c1_71 = arith.constant 1 : index
    %c0_72 = arith.constant 0 : index
    %c36_73 = arith.constant 36 : index
    %59 = vector.load %arg2[%c1_71, %c0_72, %c36_73] : memref<8x8x512xf32, #tpu.memory_space<vmem>>, vector<1x8x384xf32>
    %60 = vector.shape_cast %59 : vector<1x8x384xf32> to vector<8x384xf32>
    %c48_74 = arith.constant 48 : index
    %c0_75 = arith.constant 0 : index
    %61 = vector.load %arg5[%c48_74, %c0_75] : memref<72x384xf32, #tpu.memory_space<vmem>>, vector<8x384xf32>
    tpu.vector_store %arg5[%c48_74, %c0_75], %60 {strides = array<i32>} : memref<72x384xf32, #tpu.memory_space<vmem>>, vector<8x384xf32>,
    %c1_76 = arith.constant 1 : index
    %c0_77 = arith.constant 0 : index
    %c37_78 = arith.constant 37 : index
    %62 = vector.load %arg2[%c1_76, %c0_77, %c37_78] : memref<8x8x512xf32, #tpu.memory_space<vmem>>, vector<1x8x384xf32>
    %63 = vector.shape_cast %62 : vector<1x8x384xf32> to vector<8x384xf32>
    %c56_79 = arith.constant 56 : index
    %c0_80 = arith.constant 0 : index
    %64 = vector.load %arg5[%c56_79, %c0_80] : memref<72x384xf32, #tpu.memory_space<vmem>>, vector<8x384xf32>
    tpu.vector_store %arg5[%c56_79, %c0_80], %63 {strides = array<i32>} : memref<72x384xf32, #tpu.memory_space<vmem>>, vector<8x384xf32>,
    %c1_81 = arith.constant 1 : index
    %c0_82 = arith.constant 0 : index
    %c38_83 = arith.constant 38 : index
    %65 = vector.load %arg2[%c1_81, %c0_82, %c38_83] : memref<8x8x512xf32, #tpu.memory_space<vmem>>, vector<1x8x384xf32>
    %66 = vector.shape_cast %65 : vector<1x8x384xf32> to vector<8x384xf32>
    %c64_84 = arith.constant 64 : index
    %c0_85 = arith.constant 0 : index
    %67 = vector.load %arg5[%c64_84, %c0_85] : memref<72x384xf32, #tpu.memory_space<vmem>>, vector<8x384xf32>
    tpu.vector_store %arg5[%c64_84, %c0_85], %66 {strides = array<i32>} : memref<72x384xf32, #tpu.memory_space<vmem>>, vector<8x384xf32>,
    %c0_86 = arith.constant 0 : index
    %c0_87 = arith.constant 0 : index
    %68 = vector.load %arg5[%c0_86, %c0_87] : memref<72x384xf32, #tpu.memory_space<vmem>>, vector<72x384xf32>
    %cst_88 = arith.constant dense<0.000000e+00> : vector<8x384xf32>
    %69 = tpu.matmul %40, %68, %cst_88 {dimension_numbers = #tpu.dot_dimension_numbers<[1], [0], [0], [1], [0, 0, 1, 1], [], []>} : vector<8x72xf32>, vector<72x384xf32>, vector<8x384xf32> -> vector<8x384xf32>
    %c1_89 = arith.constant 1 : index
    %c0_90 = arith.constant 0 : index
    %c0_91 = arith.constant 0 : index
    %70 = vector.load %arg4[%c1_89, %c0_90, %c0_91] : memref<8x8x384xf32, #tpu.memory_space<vmem>>, vector<1x8x384xf32>
    %71 = vector.shape_cast %70 : vector<1x8x384xf32> to vector<8x384xf32>
    %72 = vector.shape_cast %69 : vector<8x384xf32> to vector<1x8x384xf32>
    tpu.vector_store %arg4[%c1_89, %c0_90, %c0_91], %72 {strides = array<i32>} : memref<8x8x384xf32, #tpu.memory_space<vmem>>, vector<1x8x384xf32>,
    %c2_92 = arith.constant 2 : index
    %c0_93 = arith.constant 0 : index
    %c0_94 = arith.constant 0 : index
    %73 = vector.load %arg1[%c2_92, %c0_93, %c0_94] : memref<8x1x72xf32, #tpu.memory_space<vmem>>, vector<1x1x72xf32>
    %74 = vector.shape_cast %73 : vector<1x1x72xf32> to vector<1x72xf32>
    %75 = vector.broadcast %74 : vector<1x72xf32> to vector<8x72xf32>
    %76 = arith.mulf %0, %75 : vector<8x72xf32>
    %c2_95 = arith.constant 2 : index
    %c0_96 = arith.constant 0 : index
    %c0_97 = arith.constant 0 : index
    %77 = vector.load %arg2[%c2_95, %c0_96, %c0_97] : memref<8x8x512xf32, #tpu.memory_space<vmem>>, vector<1x8x384xf32>
    %78 = vector.shape_cast %77 : vector<1x8x384xf32> to vector<8x384xf32>
    %c0_98 = arith.constant 0 : index
    %c0_99 = arith.constant 0 : index
    %79 = vector.load %arg5[%c0_98, %c0_99] : memref<72x384xf32, #tpu.memory_space<vmem>>, vector<8x384xf32>
    tpu.vector_store %arg5[%c0_98, %c0_99], %78 {strides = array<i32>} : memref<72x384xf32, #tpu.memory_space<vmem>>, vector<8x384xf32>,
    %c2_100 = arith.constant 2 : index
    %c0_101 = arith.constant 0 : index
    %c1_102 = arith.constant 1 : index
    %80 = vector.load %arg2[%c2_100, %c0_101, %c1_102] : memref<8x8x512xf32, #tpu.memory_space<vmem>>, vector<1x8x384xf32>
    %81 = vector.shape_cast %80 : vector<1x8x384xf32> to vector<8x384xf32>
    %c8_103 = arith.constant 8 : index
    %c0_104 = arith.constant 0 : index
    %82 = vector.load %arg5[%c8_103, %c0_104] : memref<72x384xf32, #tpu.memory_space<vmem>>, vector<8x384xf32>
    tpu.vector_store %arg5[%c8_103, %c0_104], %81 {strides = array<i32>} : memref<72x384xf32, #tpu.memory_space<vmem>>, vector<8x384xf32>,
    %c2_105 = arith.constant 2 : index
    %c0_106 = arith.constant 0 : index
    %c2_107 = arith.constant 2 : index
    %83 = vector.load %arg2[%c2_105, %c0_106, %c2_107] : memref<8x8x512xf32, #tpu.memory_space<vmem>>, vector<1x8x384xf32>
    %84 = vector.shape_cast %83 : vector<1x8x384xf32> to vector<8x384xf32>
    %c16_108 = arith.constant 16 : index
    %c0_109 = arith.constant 0 : index
    %85 = vector.load %arg5[%c16_108, %c0_109] : memref<72x384xf32, #tpu.memory_space<vmem>>, vector<8x384xf32>
    tpu.vector_store %arg5[%c16_108, %c0_109], %84 {strides = array<i32>} : memref<72x384xf32, #tpu.memory_space<vmem>>, vector<8x384xf32>,
    %c2_110 = arith.constant 2 : index
    %c0_111 = arith.constant 0 : index
    %c18_112 = arith.constant 18 : index
    %86 = vector.load %arg2[%c2_110, %c0_111, %c18_112] : memref<8x8x512xf32, #tpu.memory_space<vmem>>, vector<1x8x384xf32>
    %87 = vector.shape_cast %86 : vector<1x8x384xf32> to vector<8x384xf32>
    %c24_113 = arith.constant 24 : index
    %c0_114 = arith.constant 0 : index
    %88 = vector.load %arg5[%c24_113, %c0_114] : memref<72x384xf32, #tpu.memory_space<vmem>>, vector<8x384xf32>
    tpu.vector_store %arg5[%c24_113, %c0_114], %87 {strides = array<i32>} : memref<72x384xf32, #tpu.memory_space<vmem>>, vector<8x384xf32>,
    %c2_115 = arith.constant 2 : index
    %c0_116 = arith.constant 0 : index
    %c19_117 = arith.constant 19 : index
    %89 = vector.load %arg2[%c2_115, %c0_116, %c19_117] : memref<8x8x512xf32, #tpu.memory_space<vmem>>, vector<1x8x384xf32>
    %90 = vector.shape_cast %89 : vector<1x8x384xf32> to vector<8x384xf32>
    %c32_118 = arith.constant 32 : index
    %c0_119 = arith.constant 0 : index
    %91 = vector.load %arg5[%c32_118, %c0_119] : memref<72x384xf32, #tpu.memory_space<vmem>>, vector<8x384xf32>
    tpu.vector_store %arg5[%c32_118, %c0_119], %90 {strides = array<i32>} : memref<72x384xf32, #tpu.memory_space<vmem>>, vector<8x384xf32>,
    %c2_120 = arith.constant 2 : index
    %c0_121 = arith.constant 0 : index
    %c20_122 = arith.constant 20 : index
    %92 = vector.load %arg2[%c2_120, %c0_121, %c20_122] : memref<8x8x512xf32, #tpu.memory_space<vmem>>, vector<1x8x384xf32>
    %93 = vector.shape_cast %92 : vector<1x8x384xf32> to vector<8x384xf32>
    %c40_123 = arith.constant 40 : index
    %c0_124 = arith.constant 0 : index
    %94 = vector.load %arg5[%c40_123, %c0_124] : memref<72x384xf32, #tpu.memory_space<vmem>>, vector<8x384xf32>
    tpu.vector_store %arg5[%c40_123, %c0_124], %93 {strides = array<i32>} : memref<72x384xf32, #tpu.memory_space<vmem>>, vector<8x384xf32>,
    %c2_125 = arith.constant 2 : index
    %c0_126 = arith.constant 0 : index
    %c36_127 = arith.constant 36 : index
    %95 = vector.load %arg2[%c2_125, %c0_126, %c36_127] : memref<8x8x512xf32, #tpu.memory_space<vmem>>, vector<1x8x384xf32>
    %96 = vector.shape_cast %95 : vector<1x8x384xf32> to vector<8x384xf32>
    %c48_128 = arith.constant 48 : index
    %c0_129 = arith.constant 0 : index
    %97 = vector.load %arg5[%c48_128, %c0_129] : memref<72x384xf32, #tpu.memory_space<vmem>>, vector<8x384xf32>
    tpu.vector_store %arg5[%c48_128, %c0_129], %96 {strides = array<i32>} : memref<72x384xf32, #tpu.memory_space<vmem>>, vector<8x384xf32>,
    %c2_130 = arith.constant 2 : index
    %c0_131 = arith.constant 0 : index
    %c37_132 = arith.constant 37 : index
    %98 = vector.load %arg2[%c2_130, %c0_131, %c37_132] : memref<8x8x512xf32, #tpu.memory_space<vmem>>, vector<1x8x384xf32>
    %99 = vector.shape_cast %98 : vector<1x8x384xf32> to vector<8x384xf32>
    %c56_133 = arith.constant 56 : index
    %c0_134 = arith.constant 0 : index
    %100 = vector.load %arg5[%c56_133, %c0_134] : memref<72x384xf32, #tpu.memory_space<vmem>>, vector<8x384xf32>
    tpu.vector_store %arg5[%c56_133, %c0_134], %99 {strides = array<i32>} : memref<72x384xf32, #tpu.memory_space<vmem>>, vector<8x384xf32>,
    %c2_135 = arith.constant 2 : index
    %c0_136 = arith.constant 0 : index
    %c38_137 = arith.constant 38 : index
    %101 = vector.load %arg2[%c2_135, %c0_136, %c38_137] : memref<8x8x512xf32, #tpu.memory_space<vmem>>, vector<1x8x384xf32>
    %102 = vector.shape_cast %101 : vector<1x8x384xf32> to vector<8x384xf32>
    %c64_138 = arith.constant 64 : index
    %c0_139 = arith.constant 0 : index
    %103 = vector.load %arg5[%c64_138, %c0_139] : memref<72x384xf32, #tpu.memory_space<vmem>>, vector<8x384xf32>
    tpu.vector_store %arg5[%c64_138, %c0_139], %102 {strides = array<i32>} : memref<72x384xf32, #tpu.memory_space<vmem>>, vector<8x384xf32>,
    %c0_140 = arith.constant 0 : index
    %c0_141 = arith.constant 0 : index
    %104 = vector.load %arg5[%c0_140, %c0_141] : memref<72x384xf32, #tpu.memory_space<vmem>>, vector<72x384xf32>
    %cst_142 = arith.constant dense<0.000000e+00> : vector<8x384xf32>
    %105 = tpu.matmul %76, %104, %cst_142 {dimension_numbers = #tpu.dot_dimension_numbers<[1], [0], [0], [1], [0, 0, 1, 1], [], []>} : vector<8x72xf32>, vector<72x384xf32>, vector<8x384xf32> -> vector<8x384xf32>
    %c2_143 = arith.constant 2 : index
    %c0_144 = arith.constant 0 : index
    %c0_145 = arith.constant 0 : index
    %106 = vector.load %arg4[%c2_143, %c0_144, %c0_145] : memref<8x8x384xf32, #tpu.memory_space<vmem>>, vector<1x8x384xf32>
    %107 = vector.shape_cast %106 : vector<1x8x384xf32> to vector<8x384xf32>
    %108 = vector.shape_cast %105 : vector<8x384xf32> to vector<1x8x384xf32>
    tpu.vector_store %arg4[%c2_143, %c0_144, %c0_145], %108 {strides = array<i32>} : memref<8x8x384xf32, #tpu.memory_space<vmem>>, vector<1x8x384xf32>,
    %c3 = arith.constant 3 : index
    %c0_146 = arith.constant 0 : index
    %c0_147 = arith.constant 0 : index
    %109 = vector.load %arg1[%c3, %c0_146, %c0_147] : memref<8x1x72xf32, #tpu.memory_space<vmem>>, vector<1x1x72xf32>
    %110 = vector.shape_cast %109 : vector<1x1x72xf32> to vector<1x72xf32>
    %111 = vector.broadcast %110 : vector<1x72xf32> to vector<8x72xf32>
    %112 = arith.mulf %0, %111 : vector<8x72xf32>
    %c3_148 = arith.constant 3 : index
    %c0_149 = arith.constant 0 : index
    %c0_150 = arith.constant 0 : index
    %113 = vector.load %arg2[%c3_148, %c0_149, %c0_150] : memref<8x8x512xf32, #tpu.memory_space<vmem>>, vector<1x8x384xf32>
    %114 = vector.shape_cast %113 : vector<1x8x384xf32> to vector<8x384xf32>
    %c0_151 = arith.constant 0 : index
    %c0_152 = arith.constant 0 : index
    %115 = vector.load %arg5[%c0_151, %c0_152] : memref<72x384xf32, #tpu.memory_space<vmem>>, vector<8x384xf32>
    tpu.vector_store %arg5[%c0_151, %c0_152], %114 {strides = array<i32>} : memref<72x384xf32, #tpu.memory_space<vmem>>, vector<8x384xf32>,
    %c3_153 = arith.constant 3 : index
    %c0_154 = arith.constant 0 : index
    %c1_155 = arith.constant 1 : index
    %116 = vector.load %arg2[%c3_153, %c0_154, %c1_155] : memref<8x8x512xf32, #tpu.memory_space<vmem>>, vector<1x8x384xf32>
    %117 = vector.shape_cast %116 : vector<1x8x384xf32> to vector<8x384xf32>
    %c8_156 = arith.constant 8 : index
    %c0_157 = arith.constant 0 : index
    %118 = vector.load %arg5[%c8_156, %c0_157] : memref<72x384xf32, #tpu.memory_space<vmem>>, vector<8x384xf32>
    tpu.vector_store %arg5[%c8_156, %c0_157], %117 {strides = array<i32>} : memref<72x384xf32, #tpu.memory_space<vmem>>, vector<8x384xf32>,
    %c3_158 = arith.constant 3 : index
    %c0_159 = arith.constant 0 : index
    %c2_160 = arith.constant 2 : index
    %119 = vector.load %arg2[%c3_158, %c0_159, %c2_160] : memref<8x8x512xf32, #tpu.memory_space<vmem>>, vector<1x8x384xf32>
    %120 = vector.shape_cast %119 : vector<1x8x384xf32> to vector<8x384xf32>
    %c16_161 = arith.constant 16 : index
    %c0_162 = arith.constant 0 : index
    %121 = vector.load %arg5[%c16_161, %c0_162] : memref<72x384xf32, #tpu.memory_space<vmem>>, vector<8x384xf32>
    tpu.vector_store %arg5[%c16_161, %c0_162], %120 {strides = array<i32>} : memref<72x384xf32, #tpu.memory_space<vmem>>, vector<8x384xf32>,
    %c3_163 = arith.constant 3 : index
    %c0_164 = arith.constant 0 : index
    %c18_165 = arith.constant 18 : index
    %122 = vector.load %arg2[%c3_163, %c0_164, %c18_165] : memref<8x8x512xf32, #tpu.memory_space<vmem>>, vector<1x8x384xf32>
    %123 = vector.shape_cast %122 : vector<1x8x384xf32> to vector<8x384xf32>
    %c24_166 = arith.constant 24 : index
    %c0_167 = arith.constant 0 : index
    %124 = vector.load %arg5[%c24_166, %c0_167] : memref<72x384xf32, #tpu.memory_space<vmem>>, vector<8x384xf32>
    tpu.vector_store %arg5[%c24_166, %c0_167], %123 {strides = array<i32>} : memref<72x384xf32, #tpu.memory_space<vmem>>, vector<8x384xf32>,
    %c3_168 = arith.constant 3 : index
    %c0_169 = arith.constant 0 : index
    %c19_170 = arith.constant 19 : index
    %125 = vector.load %arg2[%c3_168, %c0_169, %c19_170] : memref<8x8x512xf32, #tpu.memory_space<vmem>>, vector<1x8x384xf32>
    %126 = vector.shape_cast %125 : vector<1x8x384xf32> to vector<8x384xf32>
    %c32_171 = arith.constant 32 : index
    %c0_172 = arith.constant 0 : index
    %127 = vector.load %arg5[%c32_171, %c0_172] : memref<72x384xf32, #tpu.memory_space<vmem>>, vector<8x384xf32>
    tpu.vector_store %arg5[%c32_171, %c0_172], %126 {strides = array<i32>} : memref<72x384xf32, #tpu.memory_space<vmem>>, vector<8x384xf32>,
    %c3_173 = arith.constant 3 : index
    %c0_174 = arith.constant 0 : index
    %c20_175 = arith.constant 20 : index
    %128 = vector.load %arg2[%c3_173, %c0_174, %c20_175] : memref<8x8x512xf32, #tpu.memory_space<vmem>>, vector<1x8x384xf32>
    %129 = vector.shape_cast %128 : vector<1x8x384xf32> to vector<8x384xf32>
    %c40_176 = arith.constant 40 : index
    %c0_177 = arith.constant 0 : index
    %130 = vector.load %arg5[%c40_176, %c0_177] : memref<72x384xf32, #tpu.memory_space<vmem>>, vector<8x384xf32>
    tpu.vector_store %arg5[%c40_176, %c0_177], %129 {strides = array<i32>} : memref<72x384xf32, #tpu.memory_space<vmem>>, vector<8x384xf32>,
    %c3_178 = arith.constant 3 : index
    %c0_179 = arith.constant 0 : index
    %c36_180 = arith.constant 36 : index
    %131 = vector.load %arg2[%c3_178, %c0_179, %c36_180] : memref<8x8x512xf32, #tpu.memory_space<vmem>>, vector<1x8x384xf32>
    %132 = vector.shape_cast %131 : vector<1x8x384xf32> to vector<8x384xf32>
    %c48_181 = arith.constant 48 : index
    %c0_182 = arith.constant 0 : index
    %133 = vector.load %arg5[%c48_181, %c0_182] : memref<72x384xf32, #tpu.memory_space<vmem>>, vector<8x384xf32>
    tpu.vector_store %arg5[%c48_181, %c0_182], %132 {strides = array<i32>} : memref<72x384xf32, #tpu.memory_space<vmem>>, vector<8x384xf32>,
    %c3_183 = arith.constant 3 : index
    %c0_184 = arith.constant 0 : index
    %c37_185 = arith.constant 37 : index
    %134 = vector.load %arg2[%c3_183, %c0_184, %c37_185] : memref<8x8x512xf32, #tpu.memory_space<vmem>>, vector<1x8x384xf32>
    %135 = vector.shape_cast %134 : vector<1x8x384xf32> to vector<8x384xf32>
    %c56_186 = arith.constant 56 : index
    %c0_187 = arith.constant 0 : index
    %136 = vector.load %arg5[%c56_186, %c0_187] : memref<72x384xf32, #tpu.memory_space<vmem>>, vector<8x384xf32>
    tpu.vector_store %arg5[%c56_186, %c0_187], %135 {strides = array<i32>} : memref<72x384xf32, #tpu.memory_space<vmem>>, vector<8x384xf32>,
    %c3_188 = arith.constant 3 : index
    %c0_189 = arith.constant 0 : index
    %c38_190 = arith.constant 38 : index
    %137 = vector.load %arg2[%c3_188, %c0_189, %c38_190] : memref<8x8x512xf32, #tpu.memory_space<vmem>>, vector<1x8x384xf32>
    %138 = vector.shape_cast %137 : vector<1x8x384xf32> to vector<8x384xf32>
    %c64_191 = arith.constant 64 : index
    %c0_192 = arith.constant 0 : index
    %139 = vector.load %arg5[%c64_191, %c0_192] : memref<72x384xf32, #tpu.memory_space<vmem>>, vector<8x384xf32>
    tpu.vector_store %arg5[%c64_191, %c0_192], %138 {strides = array<i32>} : memref<72x384xf32, #tpu.memory_space<vmem>>, vector<8x384xf32>,
    %c0_193 = arith.constant 0 : index
    %c0_194 = arith.constant 0 : index
    %140 = vector.load %arg5[%c0_193, %c0_194] : memref<72x384xf32, #tpu.memory_space<vmem>>, vector<72x384xf32>
    %cst_195 = arith.constant dense<0.000000e+00> : vector<8x384xf32>
    %141 = tpu.matmul %112, %140, %cst_195 {dimension_numbers = #tpu.dot_dimension_numbers<[1], [0], [0], [1], [0, 0, 1, 1], [], []>} : vector<8x72xf32>, vector<72x384xf32>, vector<8x384xf32> -> vector<8x384xf32>
    %c3_196 = arith.constant 3 : index
    %c0_197 = arith.constant 0 : index
    %c0_198 = arith.constant 0 : index
    %142 = vector.load %arg4[%c3_196, %c0_197, %c0_198] : memref<8x8x384xf32, #tpu.memory_space<vmem>>, vector<1x8x384xf32>
    %143 = vector.shape_cast %142 : vector<1x8x384xf32> to vector<8x384xf32>
    %144 = vector.shape_cast %141 : vector<8x384xf32> to vector<1x8x384xf32>
    tpu.vector_store %arg4[%c3_196, %c0_197, %c0_198], %144 {strides = array<i32>} : memref<8x8x384xf32, #tpu.memory_space<vmem>>, vector<1x8x384xf32>,
    %c4 = arith.constant 4 : index
    %c0_199 = arith.constant 0 : index
    %c0_200 = arith.constant 0 : index
    %145 = vector.load %arg1[%c4, %c0_199, %c0_200] : memref<8x1x72xf32, #tpu.memory_space<vmem>>, vector<1x1x72xf32>
    %146 = vector.shape_cast %145 : vector<1x1x72xf32> to vector<1x72xf32>
    %147 = vector.broadcast %146 : vector<1x72xf32> to vector<8x72xf32>
    %148 = arith.mulf %0, %147 : vector<8x72xf32>
    %c4_201 = arith.constant 4 : index
    %c0_202 = arith.constant 0 : index
    %c0_203 = arith.constant 0 : index
    %149 = vector.load %arg2[%c4_201, %c0_202, %c0_203] : memref<8x8x512xf32, #tpu.memory_space<vmem>>, vector<1x8x384xf32>
    %150 = vector.shape_cast %149 : vector<1x8x384xf32> to vector<8x384xf32>
    %c0_204 = arith.constant 0 : index
    %c0_205 = arith.constant 0 : index
    %151 = vector.load %arg5[%c0_204, %c0_205] : memref<72x384xf32, #tpu.memory_space<vmem>>, vector<8x384xf32>
    tpu.vector_store %arg5[%c0_204, %c0_205], %150 {strides = array<i32>} : memref<72x384xf32, #tpu.memory_space<vmem>>, vector<8x384xf32>,
    %c4_206 = arith.constant 4 : index
    %c0_207 = arith.constant 0 : index
    %c1_208 = arith.constant 1 : index
    %152 = vector.load %arg2[%c4_206, %c0_207, %c1_208] : memref<8x8x512xf32, #tpu.memory_space<vmem>>, vector<1x8x384xf32>
    %153 = vector.shape_cast %152 : vector<1x8x384xf32> to vector<8x384xf32>
    %c8_209 = arith.constant 8 : index
    %c0_210 = arith.constant 0 : index
    %154 = vector.load %arg5[%c8_209, %c0_210] : memref<72x384xf32, #tpu.memory_space<vmem>>, vector<8x384xf32>
    tpu.vector_store %arg5[%c8_209, %c0_210], %153 {strides = array<i32>} : memref<72x384xf32, #tpu.memory_space<vmem>>, vector<8x384xf32>,
    %c4_211 = arith.constant 4 : index
    %c0_212 = arith.constant 0 : index
    %c2_213 = arith.constant 2 : index
    %155 = vector.load %arg2[%c4_211, %c0_212, %c2_213] : memref<8x8x512xf32, #tpu.memory_space<vmem>>, vector<1x8x384xf32>
    %156 = vector.shape_cast %155 : vector<1x8x384xf32> to vector<8x384xf32>
    %c16_214 = arith.constant 16 : index
    %c0_215 = arith.constant 0 : index
    %157 = vector.load %arg5[%c16_214, %c0_215] : memref<72x384xf32, #tpu.memory_space<vmem>>, vector<8x384xf32>
    tpu.vector_store %arg5[%c16_214, %c0_215], %156 {strides = array<i32>} : memref<72x384xf32, #tpu.memory_space<vmem>>, vector<8x384xf32>,
    %c4_216 = arith.constant 4 : index
    %c0_217 = arith.constant 0 : index
    %c18_218 = arith.constant 18 : index
    %158 = vector.load %arg2[%c4_216, %c0_217, %c18_218] : memref<8x8x512xf32, #tpu.memory_space<vmem>>, vector<1x8x384xf32>
    %159 = vector.shape_cast %158 : vector<1x8x384xf32> to vector<8x384xf32>
    %c24_219 = arith.constant 24 : index
    %c0_220 = arith.constant 0 : index
    %160 = vector.load %arg5[%c24_219, %c0_220] : memref<72x384xf32, #tpu.memory_space<vmem>>, vector<8x384xf32>
    tpu.vector_store %arg5[%c24_219, %c0_220], %159 {strides = array<i32>} : memref<72x384xf32, #tpu.memory_space<vmem>>, vector<8x384xf32>,
    %c4_221 = arith.constant 4 : index
    %c0_222 = arith.constant 0 : index
    %c19_223 = arith.constant 19 : index
    %161 = vector.load %arg2[%c4_221, %c0_222, %c19_223] : memref<8x8x512xf32, #tpu.memory_space<vmem>>, vector<1x8x384xf32>
    %162 = vector.shape_cast %161 : vector<1x8x384xf32> to vector<8x384xf32>
    %c32_224 = arith.constant 32 : index
    %c0_225 = arith.constant 0 : index
    %163 = vector.load %arg5[%c32_224, %c0_225] : memref<72x384xf32, #tpu.memory_space<vmem>>, vector<8x384xf32>
    tpu.vector_store %arg5[%c32_224, %c0_225], %162 {strides = array<i32>} : memref<72x384xf32, #tpu.memory_space<vmem>>, vector<8x384xf32>,
    %c4_226 = arith.constant 4 : index
    %c0_227 = arith.constant 0 : index
    %c20_228 = arith.constant 20 : index
    %164 = vector.load %arg2[%c4_226, %c0_227, %c20_228] : memref<8x8x512xf32, #tpu.memory_space<vmem>>, vector<1x8x384xf32>
    %165 = vector.shape_cast %164 : vector<1x8x384xf32> to vector<8x384xf32>
    %c40_229 = arith.constant 40 : index
    %c0_230 = arith.constant 0 : index
    %166 = vector.load %arg5[%c40_229, %c0_230] : memref<72x384xf32, #tpu.memory_space<vmem>>, vector<8x384xf32>
    tpu.vector_store %arg5[%c40_229, %c0_230], %165 {strides = array<i32>} : memref<72x384xf32, #tpu.memory_space<vmem>>, vector<8x384xf32>,
    %c4_231 = arith.constant 4 : index
    %c0_232 = arith.constant 0 : index
    %c36_233 = arith.constant 36 : index
    %167 = vector.load %arg2[%c4_231, %c0_232, %c36_233] : memref<8x8x512xf32, #tpu.memory_space<vmem>>, vector<1x8x384xf32>
    %168 = vector.shape_cast %167 : vector<1x8x384xf32> to vector<8x384xf32>
    %c48_234 = arith.constant 48 : index
    %c0_235 = arith.constant 0 : index
    %169 = vector.load %arg5[%c48_234, %c0_235] : memref<72x384xf32, #tpu.memory_space<vmem>>, vector<8x384xf32>
    tpu.vector_store %arg5[%c48_234, %c0_235], %168 {strides = array<i32>} : memref<72x384xf32, #tpu.memory_space<vmem>>, vector<8x384xf32>,
    %c4_236 = arith.constant 4 : index
    %c0_237 = arith.constant 0 : index
    %c37_238 = arith.constant 37 : index
    %170 = vector.load %arg2[%c4_236, %c0_237, %c37_238] : memref<8x8x512xf32, #tpu.memory_space<vmem>>, vector<1x8x384xf32>
    %171 = vector.shape_cast %170 : vector<1x8x384xf32> to vector<8x384xf32>
    %c56_239 = arith.constant 56 : index
    %c0_240 = arith.constant 0 : index
    %172 = vector.load %arg5[%c56_239, %c0_240] : memref<72x384xf32, #tpu.memory_space<vmem>>, vector<8x384xf32>
    tpu.vector_store %arg5[%c56_239, %c0_240], %171 {strides = array<i32>} : memref<72x384xf32, #tpu.memory_space<vmem>>, vector<8x384xf32>,
    %c4_241 = arith.constant 4 : index
    %c0_242 = arith.constant 0 : index
    %c38_243 = arith.constant 38 : index
    %173 = vector.load %arg2[%c4_241, %c0_242, %c38_243] : memref<8x8x512xf32, #tpu.memory_space<vmem>>, vector<1x8x384xf32>
    %174 = vector.shape_cast %173 : vector<1x8x384xf32> to vector<8x384xf32>
    %c64_244 = arith.constant 64 : index
    %c0_245 = arith.constant 0 : index
    %175 = vector.load %arg5[%c64_244, %c0_245] : memref<72x384xf32, #tpu.memory_space<vmem>>, vector<8x384xf32>
    tpu.vector_store %arg5[%c64_244, %c0_245], %174 {strides = array<i32>} : memref<72x384xf32, #tpu.memory_space<vmem>>, vector<8x384xf32>,
    %c0_246 = arith.constant 0 : index
    %c0_247 = arith.constant 0 : index
    %176 = vector.load %arg5[%c0_246, %c0_247] : memref<72x384xf32, #tpu.memory_space<vmem>>, vector<72x384xf32>
    %cst_248 = arith.constant dense<0.000000e+00> : vector<8x384xf32>
    %177 = tpu.matmul %148, %176, %cst_248 {dimension_numbers = #tpu.dot_dimension_numbers<[1], [0], [0], [1], [0, 0, 1, 1], [], []>} : vector<8x72xf32>, vector<72x384xf32>, vector<8x384xf32> -> vector<8x384xf32>
    %c4_249 = arith.constant 4 : index
    %c0_250 = arith.constant 0 : index
    %c0_251 = arith.constant 0 : index
    %178 = vector.load %arg4[%c4_249, %c0_250, %c0_251] : memref<8x8x384xf32, #tpu.memory_space<vmem>>, vector<1x8x384xf32>
    %179 = vector.shape_cast %178 : vector<1x8x384xf32> to vector<8x384xf32>
    %180 = vector.shape_cast %177 : vector<8x384xf32> to vector<1x8x384xf32>
    tpu.vector_store %arg4[%c4_249, %c0_250, %c0_251], %180 {strides = array<i32>} : memref<8x8x384xf32, #tpu.memory_space<vmem>>, vector<1x8x384xf32>,
    %c5 = arith.constant 5 : index
    %c0_252 = arith.constant 0 : index
    %c0_253 = arith.constant 0 : index
    %181 = vector.load %arg1[%c5, %c0_252, %c0_253] : memref<8x1x72xf32, #tpu.memory_space<vmem>>, vector<1x1x72xf32>
    %182 = vector.shape_cast %181 : vector<1x1x72xf32> to vector<1x72xf32>
    %183 = vector.broadcast %182 : vector<1x72xf32> to vector<8x72xf32>
    %184 = arith.mulf %0, %183 : vector<8x72xf32>
    %c5_254 = arith.constant 5 : index
    %c0_255 = arith.constant 0 : index
    %c0_256 = arith.constant 0 : index
    %185 = vector.load %arg2[%c5_254, %c0_255, %c0_256] : memref<8x8x512xf32, #tpu.memory_space<vmem>>, vector<1x8x384xf32>
    %186 = vector.shape_cast %185 : vector<1x8x384xf32> to vector<8x384xf32>
    %c0_257 = arith.constant 0 : index
    %c0_258 = arith.constant 0 : index
    %187 = vector.load %arg5[%c0_257, %c0_258] : memref<72x384xf32, #tpu.memory_space<vmem>>, vector<8x384xf32>
    tpu.vector_store %arg5[%c0_257, %c0_258], %186 {strides = array<i32>} : memref<72x384xf32, #tpu.memory_space<vmem>>, vector<8x384xf32>,
    %c5_259 = arith.constant 5 : index
    %c0_260 = arith.constant 0 : index
    %c1_261 = arith.constant 1 : index
    %188 = vector.load %arg2[%c5_259, %c0_260, %c1_261] : memref<8x8x512xf32, #tpu.memory_space<vmem>>, vector<1x8x384xf32>
    %189 = vector.shape_cast %188 : vector<1x8x384xf32> to vector<8x384xf32>
    %c8_262 = arith.constant 8 : index
    %c0_263 = arith.constant 0 : index
    %190 = vector.load %arg5[%c8_262, %c0_263] : memref<72x384xf32, #tpu.memory_space<vmem>>, vector<8x384xf32>
    tpu.vector_store %arg5[%c8_262, %c0_263], %189 {strides = array<i32>} : memref<72x384xf32, #tpu.memory_space<vmem>>, vector<8x384xf32>,
    %c5_264 = arith.constant 5 : index
    %c0_265 = arith.constant 0 : index
    %c2_266 = arith.constant 2 : index
    %191 = vector.load %arg2[%c5_264, %c0_265, %c2_266] : memref<8x8x512xf32, #tpu.memory_space<vmem>>, vector<1x8x384xf32>
    %192 = vector.shape_cast %191 : vector<1x8x384xf32> to vector<8x384xf32>
    %c16_267 = arith.constant 16 : index
    %c0_268 = arith.constant 0 : index
    %193 = vector.load %arg5[%c16_267, %c0_268] : memref<72x384xf32, #tpu.memory_space<vmem>>, vector<8x384xf32>
    tpu.vector_store %arg5[%c16_267, %c0_268], %192 {strides = array<i32>} : memref<72x384xf32, #tpu.memory_space<vmem>>, vector<8x384xf32>,
    %c5_269 = arith.constant 5 : index
    %c0_270 = arith.constant 0 : index
    %c18_271 = arith.constant 18 : index
    %194 = vector.load %arg2[%c5_269, %c0_270, %c18_271] : memref<8x8x512xf32, #tpu.memory_space<vmem>>, vector<1x8x384xf32>
    %195 = vector.shape_cast %194 : vector<1x8x384xf32> to vector<8x384xf32>
    %c24_272 = arith.constant 24 : index
    %c0_273 = arith.constant 0 : index
    %196 = vector.load %arg5[%c24_272, %c0_273] : memref<72x384xf32, #tpu.memory_space<vmem>>, vector<8x384xf32>
    tpu.vector_store %arg5[%c24_272, %c0_273], %195 {strides = array<i32>} : memref<72x384xf32, #tpu.memory_space<vmem>>, vector<8x384xf32>,
    %c5_274 = arith.constant 5 : index
    %c0_275 = arith.constant 0 : index
    %c19_276 = arith.constant 19 : index
    %197 = vector.load %arg2[%c5_274, %c0_275, %c19_276] : memref<8x8x512xf32, #tpu.memory_space<vmem>>, vector<1x8x384xf32>
    %198 = vector.shape_cast %197 : vector<1x8x384xf32> to vector<8x384xf32>
    %c32_277 = arith.constant 32 : index
    %c0_278 = arith.constant 0 : index
    %199 = vector.load %arg5[%c32_277, %c0_278] : memref<72x384xf32, #tpu.memory_space<vmem>>, vector<8x384xf32>
    tpu.vector_store %arg5[%c32_277, %c0_278], %198 {strides = array<i32>} : memref<72x384xf32, #tpu.memory_space<vmem>>, vector<8x384xf32>,
    %c5_279 = arith.constant 5 : index
    %c0_280 = arith.constant 0 : index
    %c20_281 = arith.constant 20 : index
    %200 = vector.load %arg2[%c5_279, %c0_280, %c20_281] : memref<8x8x512xf32, #tpu.memory_space<vmem>>, vector<1x8x384xf32>
    %201 = vector.shape_cast %200 : vector<1x8x384xf32> to vector<8x384xf32>
    %c40_282 = arith.constant 40 : index
    %c0_283 = arith.constant 0 : index
    %202 = vector.load %arg5[%c40_282, %c0_283] : memref<72x384xf32, #tpu.memory_space<vmem>>, vector<8x384xf32>
    tpu.vector_store %arg5[%c40_282, %c0_283], %201 {strides = array<i32>} : memref<72x384xf32, #tpu.memory_space<vmem>>, vector<8x384xf32>,
    %c5_284 = arith.constant 5 : index
    %c0_285 = arith.constant 0 : index
    %c36_286 = arith.constant 36 : index
    %203 = vector.load %arg2[%c5_284, %c0_285, %c36_286] : memref<8x8x512xf32, #tpu.memory_space<vmem>>, vector<1x8x384xf32>
    %204 = vector.shape_cast %203 : vector<1x8x384xf32> to vector<8x384xf32>
    %c48_287 = arith.constant 48 : index
    %c0_288 = arith.constant 0 : index
    %205 = vector.load %arg5[%c48_287, %c0_288] : memref<72x384xf32, #tpu.memory_space<vmem>>, vector<8x384xf32>
    tpu.vector_store %arg5[%c48_287, %c0_288], %204 {strides = array<i32>} : memref<72x384xf32, #tpu.memory_space<vmem>>, vector<8x384xf32>,
    %c5_289 = arith.constant 5 : index
    %c0_290 = arith.constant 0 : index
    %c37_291 = arith.constant 37 : index
    %206 = vector.load %arg2[%c5_289, %c0_290, %c37_291] : memref<8x8x512xf32, #tpu.memory_space<vmem>>, vector<1x8x384xf32>
    %207 = vector.shape_cast %206 : vector<1x8x384xf32> to vector<8x384xf32>
    %c56_292 = arith.constant 56 : index
    %c0_293 = arith.constant 0 : index
    %208 = vector.load %arg5[%c56_292, %c0_293] : memref<72x384xf32, #tpu.memory_space<vmem>>, vector<8x384xf32>
    tpu.vector_store %arg5[%c56_292, %c0_293], %207 {strides = array<i32>} : memref<72x384xf32, #tpu.memory_space<vmem>>, vector<8x384xf32>,
    %c5_294 = arith.constant 5 : index
    %c0_295 = arith.constant 0 : index
    %c38_296 = arith.constant 38 : index
    %209 = vector.load %arg2[%c5_294, %c0_295, %c38_296] : memref<8x8x512xf32, #tpu.memory_space<vmem>>, vector<1x8x384xf32>
    %210 = vector.shape_cast %209 : vector<1x8x384xf32> to vector<8x384xf32>
    %c64_297 = arith.constant 64 : index
    %c0_298 = arith.constant 0 : index
    %211 = vector.load %arg5[%c64_297, %c0_298] : memref<72x384xf32, #tpu.memory_space<vmem>>, vector<8x384xf32>
    tpu.vector_store %arg5[%c64_297, %c0_298], %210 {strides = array<i32>} : memref<72x384xf32, #tpu.memory_space<vmem>>, vector<8x384xf32>,
    %c0_299 = arith.constant 0 : index
    %c0_300 = arith.constant 0 : index
    %212 = vector.load %arg5[%c0_299, %c0_300] : memref<72x384xf32, #tpu.memory_space<vmem>>, vector<72x384xf32>
    %cst_301 = arith.constant dense<0.000000e+00> : vector<8x384xf32>
    %213 = tpu.matmul %184, %212, %cst_301 {dimension_numbers = #tpu.dot_dimension_numbers<[1], [0], [0], [1], [0, 0, 1, 1], [], []>} : vector<8x72xf32>, vector<72x384xf32>, vector<8x384xf32> -> vector<8x384xf32>
    %c5_302 = arith.constant 5 : index
    %c0_303 = arith.constant 0 : index
    %c0_304 = arith.constant 0 : index
    %214 = vector.load %arg4[%c5_302, %c0_303, %c0_304] : memref<8x8x384xf32, #tpu.memory_space<vmem>>, vector<1x8x384xf32>
    %215 = vector.shape_cast %214 : vector<1x8x384xf32> to vector<8x384xf32>
    %216 = vector.shape_cast %213 : vector<8x384xf32> to vector<1x8x384xf32>
    tpu.vector_store %arg4[%c5_302, %c0_303, %c0_304], %216 {strides = array<i32>} : memref<8x8x384xf32, #tpu.memory_space<vmem>>, vector<1x8x384xf32>,
    %c6 = arith.constant 6 : index
    %c0_305 = arith.constant 0 : index
    %c0_306 = arith.constant 0 : index
    %217 = vector.load %arg1[%c6, %c0_305, %c0_306] : memref<8x1x72xf32, #tpu.memory_space<vmem>>, vector<1x1x72xf32>
    %218 = vector.shape_cast %217 : vector<1x1x72xf32> to vector<1x72xf32>
    %219 = vector.broadcast %218 : vector<1x72xf32> to vector<8x72xf32>
    %220 = arith.mulf %0, %219 : vector<8x72xf32>
    %c6_307 = arith.constant 6 : index
    %c0_308 = arith.constant 0 : index
    %c0_309 = arith.constant 0 : index
    %221 = vector.load %arg2[%c6_307, %c0_308, %c0_309] : memref<8x8x512xf32, #tpu.memory_space<vmem>>, vector<1x8x384xf32>
    %222 = vector.shape_cast %221 : vector<1x8x384xf32> to vector<8x384xf32>
    %c0_310 = arith.constant 0 : index
    %c0_311 = arith.constant 0 : index
    %223 = vector.load %arg5[%c0_310, %c0_311] : memref<72x384xf32, #tpu.memory_space<vmem>>, vector<8x384xf32>
    tpu.vector_store %arg5[%c0_310, %c0_311], %222 {strides = array<i32>} : memref<72x384xf32, #tpu.memory_space<vmem>>, vector<8x384xf32>,
    %c6_312 = arith.constant 6 : index
    %c0_313 = arith.constant 0 : index
    %c1_314 = arith.constant 1 : index
    %224 = vector.load %arg2[%c6_312, %c0_313, %c1_314] : memref<8x8x512xf32, #tpu.memory_space<vmem>>, vector<1x8x384xf32>
    %225 = vector.shape_cast %224 : vector<1x8x384xf32> to vector<8x384xf32>
    %c8_315 = arith.constant 8 : index
    %c0_316 = arith.constant 0 : index
    %226 = vector.load %arg5[%c8_315, %c0_316] : memref<72x384xf32, #tpu.memory_space<vmem>>, vector<8x384xf32>
    tpu.vector_store %arg5[%c8_315, %c0_316], %225 {strides = array<i32>} : memref<72x384xf32, #tpu.memory_space<vmem>>, vector<8x384xf32>,
    %c6_317 = arith.constant 6 : index
    %c0_318 = arith.constant 0 : index
    %c2_319 = arith.constant 2 : index
    %227 = vector.load %arg2[%c6_317, %c0_318, %c2_319] : memref<8x8x512xf32, #tpu.memory_space<vmem>>, vector<1x8x384xf32>
    %228 = vector.shape_cast %227 : vector<1x8x384xf32> to vector<8x384xf32>
    %c16_320 = arith.constant 16 : index
    %c0_321 = arith.constant 0 : index
    %229 = vector.load %arg5[%c16_320, %c0_321] : memref<72x384xf32, #tpu.memory_space<vmem>>, vector<8x384xf32>
    tpu.vector_store %arg5[%c16_320, %c0_321], %228 {strides = array<i32>} : memref<72x384xf32, #tpu.memory_space<vmem>>, vector<8x384xf32>,
    %c6_322 = arith.constant 6 : index
    %c0_323 = arith.constant 0 : index
    %c18_324 = arith.constant 18 : index
    %230 = vector.load %arg2[%c6_322, %c0_323, %c18_324] : memref<8x8x512xf32, #tpu.memory_space<vmem>>, vector<1x8x384xf32>
    %231 = vector.shape_cast %230 : vector<1x8x384xf32> to vector<8x384xf32>
    %c24_325 = arith.constant 24 : index
    %c0_326 = arith.constant 0 : index
    %232 = vector.load %arg5[%c24_325, %c0_326] : memref<72x384xf32, #tpu.memory_space<vmem>>, vector<8x384xf32>
    tpu.vector_store %arg5[%c24_325, %c0_326], %231 {strides = array<i32>} : memref<72x384xf32, #tpu.memory_space<vmem>>, vector<8x384xf32>,
    %c6_327 = arith.constant 6 : index
    %c0_328 = arith.constant 0 : index
    %c19_329 = arith.constant 19 : index
    %233 = vector.load %arg2[%c6_327, %c0_328, %c19_329] : memref<8x8x512xf32, #tpu.memory_space<vmem>>, vector<1x8x384xf32>
    %234 = vector.shape_cast %233 : vector<1x8x384xf32> to vector<8x384xf32>
    %c32_330 = arith.constant 32 : index
    %c0_331 = arith.constant 0 : index
    %235 = vector.load %arg5[%c32_330, %c0_331] : memref<72x384xf32, #tpu.memory_space<vmem>>, vector<8x384xf32>
    tpu.vector_store %arg5[%c32_330, %c0_331], %234 {strides = array<i32>} : memref<72x384xf32, #tpu.memory_space<vmem>>, vector<8x384xf32>,
    %c6_332 = arith.constant 6 : index
    %c0_333 = arith.constant 0 : index
    %c20_334 = arith.constant 20 : index
    %236 = vector.load %arg2[%c6_332, %c0_333, %c20_334] : memref<8x8x512xf32, #tpu.memory_space<vmem>>, vector<1x8x384xf32>
    %237 = vector.shape_cast %236 : vector<1x8x384xf32> to vector<8x384xf32>
    %c40_335 = arith.constant 40 : index
    %c0_336 = arith.constant 0 : index
    %238 = vector.load %arg5[%c40_335, %c0_336] : memref<72x384xf32, #tpu.memory_space<vmem>>, vector<8x384xf32>
    tpu.vector_store %arg5[%c40_335, %c0_336], %237 {strides = array<i32>} : memref<72x384xf32, #tpu.memory_space<vmem>>, vector<8x384xf32>,
    %c6_337 = arith.constant 6 : index
    %c0_338 = arith.constant 0 : index
    %c36_339 = arith.constant 36 : index
    %239 = vector.load %arg2[%c6_337, %c0_338, %c36_339] : memref<8x8x512xf32, #tpu.memory_space<vmem>>, vector<1x8x384xf32>
    %240 = vector.shape_cast %239 : vector<1x8x384xf32> to vector<8x384xf32>
    %c48_340 = arith.constant 48 : index
    %c0_341 = arith.constant 0 : index
    %241 = vector.load %arg5[%c48_340, %c0_341] : memref<72x384xf32, #tpu.memory_space<vmem>>, vector<8x384xf32>
    tpu.vector_store %arg5[%c48_340, %c0_341], %240 {strides = array<i32>} : memref<72x384xf32, #tpu.memory_space<vmem>>, vector<8x384xf32>,
    %c6_342 = arith.constant 6 : index
    %c0_343 = arith.constant 0 : index
    %c37_344 = arith.constant 37 : index
    %242 = vector.load %arg2[%c6_342, %c0_343, %c37_344] : memref<8x8x512xf32, #tpu.memory_space<vmem>>, vector<1x8x384xf32>
    %243 = vector.shape_cast %242 : vector<1x8x384xf32> to vector<8x384xf32>
    %c56_345 = arith.constant 56 : index
    %c0_346 = arith.constant 0 : index
    %244 = vector.load %arg5[%c56_345, %c0_346] : memref<72x384xf32, #tpu.memory_space<vmem>>, vector<8x384xf32>
    tpu.vector_store %arg5[%c56_345, %c0_346], %243 {strides = array<i32>} : memref<72x384xf32, #tpu.memory_space<vmem>>, vector<8x384xf32>,
    %c6_347 = arith.constant 6 : index
    %c0_348 = arith.constant 0 : index
    %c38_349 = arith.constant 38 : index
    %245 = vector.load %arg2[%c6_347, %c0_348, %c38_349] : memref<8x8x512xf32, #tpu.memory_space<vmem>>, vector<1x8x384xf32>
    %246 = vector.shape_cast %245 : vector<1x8x384xf32> to vector<8x384xf32>
    %c64_350 = arith.constant 64 : index
    %c0_351 = arith.constant 0 : index
    %247 = vector.load %arg5[%c64_350, %c0_351] : memref<72x384xf32, #tpu.memory_space<vmem>>, vector<8x384xf32>
    tpu.vector_store %arg5[%c64_350, %c0_351], %246 {strides = array<i32>} : memref<72x384xf32, #tpu.memory_space<vmem>>, vector<8x384xf32>,
    %c0_352 = arith.constant 0 : index
    %c0_353 = arith.constant 0 : index
    %248 = vector.load %arg5[%c0_352, %c0_353] : memref<72x384xf32, #tpu.memory_space<vmem>>, vector<72x384xf32>
    %cst_354 = arith.constant dense<0.000000e+00> : vector<8x384xf32>
    %249 = tpu.matmul %220, %248, %cst_354 {dimension_numbers = #tpu.dot_dimension_numbers<[1], [0], [0], [1], [0, 0, 1, 1], [], []>} : vector<8x72xf32>, vector<72x384xf32>, vector<8x384xf32> -> vector<8x384xf32>
    %c6_355 = arith.constant 6 : index
    %c0_356 = arith.constant 0 : index
    %c0_357 = arith.constant 0 : index
    %250 = vector.load %arg4[%c6_355, %c0_356, %c0_357] : memref<8x8x384xf32, #tpu.memory_space<vmem>>, vector<1x8x384xf32>
    %251 = vector.shape_cast %250 : vector<1x8x384xf32> to vector<8x384xf32>
    %252 = vector.shape_cast %249 : vector<8x384xf32> to vector<1x8x384xf32>
    tpu.vector_store %arg4[%c6_355, %c0_356, %c0_357], %252 {strides = array<i32>} : memref<8x8x384xf32, #tpu.memory_space<vmem>>, vector<1x8x384xf32>,
    %c7 = arith.constant 7 : index
    %c0_358 = arith.constant 0 : index
    %c0_359 = arith.constant 0 : index
    %253 = vector.load %arg1[%c7, %c0_358, %c0_359] : memref<8x1x72xf32, #tpu.memory_space<vmem>>, vector<1x1x72xf32>
    %254 = vector.shape_cast %253 : vector<1x1x72xf32> to vector<1x72xf32>
    %255 = vector.broadcast %254 : vector<1x72xf32> to vector<8x72xf32>
    %256 = arith.mulf %0, %255 : vector<8x72xf32>
    %c7_360 = arith.constant 7 : index
    %c0_361 = arith.constant 0 : index
    %c0_362 = arith.constant 0 : index
    %257 = vector.load %arg2[%c7_360, %c0_361, %c0_362] : memref<8x8x512xf32, #tpu.memory_space<vmem>>, vector<1x8x384xf32>
    %258 = vector.shape_cast %257 : vector<1x8x384xf32> to vector<8x384xf32>
    %c0_363 = arith.constant 0 : index
    %c0_364 = arith.constant 0 : index
    %259 = vector.load %arg5[%c0_363, %c0_364] : memref<72x384xf32, #tpu.memory_space<vmem>>, vector<8x384xf32>
    tpu.vector_store %arg5[%c0_363, %c0_364], %258 {strides = array<i32>} : memref<72x384xf32, #tpu.memory_space<vmem>>, vector<8x384xf32>,
    %c7_365 = arith.constant 7 : index
    %c0_366 = arith.constant 0 : index
    %c1_367 = arith.constant 1 : index
    %260 = vector.load %arg2[%c7_365, %c0_366, %c1_367] : memref<8x8x512xf32, #tpu.memory_space<vmem>>, vector<1x8x384xf32>
    %261 = vector.shape_cast %260 : vector<1x8x384xf32> to vector<8x384xf32>
    %c8_368 = arith.constant 8 : index
    %c0_369 = arith.constant 0 : index
    %262 = vector.load %arg5[%c8_368, %c0_369] : memref<72x384xf32, #tpu.memory_space<vmem>>, vector<8x384xf32>
    tpu.vector_store %arg5[%c8_368, %c0_369], %261 {strides = array<i32>} : memref<72x384xf32, #tpu.memory_space<vmem>>, vector<8x384xf32>,
    %c7_370 = arith.constant 7 : index
    %c0_371 = arith.constant 0 : index
    %c2_372 = arith.constant 2 : index
    %263 = vector.load %arg2[%c7_370, %c0_371, %c2_372] : memref<8x8x512xf32, #tpu.memory_space<vmem>>, vector<1x8x384xf32>
    %264 = vector.shape_cast %263 : vector<1x8x384xf32> to vector<8x384xf32>
    %c16_373 = arith.constant 16 : index
    %c0_374 = arith.constant 0 : index
    %265 = vector.load %arg5[%c16_373, %c0_374] : memref<72x384xf32, #tpu.memory_space<vmem>>, vector<8x384xf32>
    tpu.vector_store %arg5[%c16_373, %c0_374], %264 {strides = array<i32>} : memref<72x384xf32, #tpu.memory_space<vmem>>, vector<8x384xf32>,
    %c7_375 = arith.constant 7 : index
    %c0_376 = arith.constant 0 : index
    %c18_377 = arith.constant 18 : index
    %266 = vector.load %arg2[%c7_375, %c0_376, %c18_377] : memref<8x8x512xf32, #tpu.memory_space<vmem>>, vector<1x8x384xf32>
    %267 = vector.shape_cast %266 : vector<1x8x384xf32> to vector<8x384xf32>
    %c24_378 = arith.constant 24 : index
    %c0_379 = arith.constant 0 : index
    %268 = vector.load %arg5[%c24_378, %c0_379] : memref<72x384xf32, #tpu.memory_space<vmem>>, vector<8x384xf32>
    tpu.vector_store %arg5[%c24_378, %c0_379], %267 {strides = array<i32>} : memref<72x384xf32, #tpu.memory_space<vmem>>, vector<8x384xf32>,
    %c7_380 = arith.constant 7 : index
    %c0_381 = arith.constant 0 : index
    %c19_382 = arith.constant 19 : index
    %269 = vector.load %arg2[%c7_380, %c0_381, %c19_382] : memref<8x8x512xf32, #tpu.memory_space<vmem>>, vector<1x8x384xf32>
    %270 = vector.shape_cast %269 : vector<1x8x384xf32> to vector<8x384xf32>
    %c32_383 = arith.constant 32 : index
    %c0_384 = arith.constant 0 : index
    %271 = vector.load %arg5[%c32_383, %c0_384] : memref<72x384xf32, #tpu.memory_space<vmem>>, vector<8x384xf32>
    tpu.vector_store %arg5[%c32_383, %c0_384], %270 {strides = array<i32>} : memref<72x384xf32, #tpu.memory_space<vmem>>, vector<8x384xf32>,
    %c7_385 = arith.constant 7 : index
    %c0_386 = arith.constant 0 : index
    %c20_387 = arith.constant 20 : index
    %272 = vector.load %arg2[%c7_385, %c0_386, %c20_387] : memref<8x8x512xf32, #tpu.memory_space<vmem>>, vector<1x8x384xf32>
    %273 = vector.shape_cast %272 : vector<1x8x384xf32> to vector<8x384xf32>
    %c40_388 = arith.constant 40 : index
    %c0_389 = arith.constant 0 : index
    %274 = vector.load %arg5[%c40_388, %c0_389] : memref<72x384xf32, #tpu.memory_space<vmem>>, vector<8x384xf32>
    tpu.vector_store %arg5[%c40_388, %c0_389], %273 {strides = array<i32>} : memref<72x384xf32, #tpu.memory_space<vmem>>, vector<8x384xf32>,
    %c7_390 = arith.constant 7 : index
    %c0_391 = arith.constant 0 : index
    %c36_392 = arith.constant 36 : index
    %275 = vector.load %arg2[%c7_390, %c0_391, %c36_392] : memref<8x8x512xf32, #tpu.memory_space<vmem>>, vector<1x8x384xf32>
    %276 = vector.shape_cast %275 : vector<1x8x384xf32> to vector<8x384xf32>
    %c48_393 = arith.constant 48 : index
    %c0_394 = arith.constant 0 : index
    %277 = vector.load %arg5[%c48_393, %c0_394] : memref<72x384xf32, #tpu.memory_space<vmem>>, vector<8x384xf32>
    tpu.vector_store %arg5[%c48_393, %c0_394], %276 {strides = array<i32>} : memref<72x384xf32, #tpu.memory_space<vmem>>, vector<8x384xf32>,
    %c7_395 = arith.constant 7 : index
    %c0_396 = arith.constant 0 : index
    %c37_397 = arith.constant 37 : index
    %278 = vector.load %arg2[%c7_395, %c0_396, %c37_397] : memref<8x8x512xf32, #tpu.memory_space<vmem>>, vector<1x8x384xf32>
    %279 = vector.shape_cast %278 : vector<1x8x384xf32> to vector<8x384xf32>
    %c56_398 = arith.constant 56 : index
    %c0_399 = arith.constant 0 : index
    %280 = vector.load %arg5[%c56_398, %c0_399] : memref<72x384xf32, #tpu.memory_space<vmem>>, vector<8x384xf32>
    tpu.vector_store %arg5[%c56_398, %c0_399], %279 {strides = array<i32>} : memref<72x384xf32, #tpu.memory_space<vmem>>, vector<8x384xf32>,
    %c7_400 = arith.constant 7 : index
    %c0_401 = arith.constant 0 : index
    %c38_402 = arith.constant 38 : index
    %281 = vector.load %arg2[%c7_400, %c0_401, %c38_402] : memref<8x8x512xf32, #tpu.memory_space<vmem>>, vector<1x8x384xf32>
    %282 = vector.shape_cast %281 : vector<1x8x384xf32> to vector<8x384xf32>
    %c64_403 = arith.constant 64 : index
    %c0_404 = arith.constant 0 : index
    %283 = vector.load %arg5[%c64_403, %c0_404] : memref<72x384xf32, #tpu.memory_space<vmem>>, vector<8x384xf32>
    tpu.vector_store %arg5[%c64_403, %c0_404], %282 {strides = array<i32>} : memref<72x384xf32, #tpu.memory_space<vmem>>, vector<8x384xf32>,
    %c0_405 = arith.constant 0 : index
    %c0_406 = arith.constant 0 : index
    %284 = vector.load %arg5[%c0_405, %c0_406] : memref<72x384xf32, #tpu.memory_space<vmem>>, vector<72x384xf32>
    %cst_407 = arith.constant dense<0.000000e+00> : vector<8x384xf32>
    %285 = tpu.matmul %256, %284, %cst_407 {dimension_numbers = #tpu.dot_dimension_numbers<[1], [0], [0], [1], [0, 0, 1, 1], [], []>} : vector<8x72xf32>, vector<72x384xf32>, vector<8x384xf32> -> vector<8x384xf32>
    %c7_408 = arith.constant 7 : index
    %c0_409 = arith.constant 0 : index
    %c0_410 = arith.constant 0 : index
    %286 = vector.load %arg4[%c7_408, %c0_409, %c0_410] : memref<8x8x384xf32, #tpu.memory_space<vmem>>, vector<1x8x384xf32>
    %287 = vector.shape_cast %286 : vector<1x8x384xf32> to vector<8x384xf32>
    %288 = vector.shape_cast %285 : vector<8x384xf32> to vector<1x8x384xf32>
    tpu.vector_store %arg4[%c7_408, %c0_409, %c0_410], %288 {strides = array<i32>} : memref<8x8x384xf32, #tpu.memory_space<vmem>>, vector<1x8x384xf32>,
    return
  }
  func.func @transform_0(%arg0: i32) -> (i32, i32, i32) {
    %c0_i32 = arith.constant 0 : i32
    %c0_i32_0 = arith.constant 0 : i32
    %c0_i32_1 = arith.constant 0 : i32
    return %arg0, %c0_i32, %c0_i32_0 : i32, i32, i32
  }
  func.func @transform_1(%arg0: i32) -> (i32, i32, i32) {
    %c0_i32 = arith.constant 0 : i32
    %c0_i32_0 = arith.constant 0 : i32
    %c0_i32_1 = arith.constant 0 : i32
    return %arg0, %c0_i32, %c0_i32_0 : i32, i32, i32
  }
  func.func @transform_2(%arg0: i32) -> (i32, i32) {
    %c0_i32 = arith.constant 0 : i32
    %c0_i32_0 = arith.constant 0 : i32
    %c0_i32_1 = arith.constant 0 : i32
    return %c0_i32, %c0_i32_0 : i32, i32
  }
  func.func @transform_3(%arg0: i32) -> (i32, i32, i32) {
    %c0_i32 = arith.constant 0 : i32
    %c0_i32_0 = arith.constant 0 : i32
    %c0_i32_1 = arith.constant 0 : i32
    return %arg0, %c0_i32, %c0_i32_0 : i32, i32, i32
  }
}

</mosaic_0001>

<bundles_post_ra>
// kernel: tpu_custom_call.1
= control target key start
LH: loop header
LB: loop body
LE: loop exit
PB: predicated region body
PF: predicated region fallthrough
CT: control target
= control target key end

     0   :  { %8 = vsyncpa [#allocation4], 0  ;;  %s4691_s0 = inlined_call_operand.hbm [shape: f32[8,1,72], index: 0, kind: input, shape index: {}]   ;;  %s4692_s1 = inlined_call_operand.hbm [shape: f32[8,8,512], index: 1, kind: input, shape index: {}]   ;;  %s4693_s2 = inlined_call_operand.hbm [shape: f32[8,72], index: 2, kind: input, shape index: {}]   ;;  %s4694_s3 = inlined_call_operand.hbm [shape: f32[8,8,384], index: 3, kind: output, shape index: {}]  }
   0x1   :  { %9 = vsyncpa [#allocation7], 0 }
   0x2   :  { %10 = vsyncpa [#allocation5], 0  ;;  %s3586_s12 = smov [#allocation6]  }
   0x3   :  { %s28_s13 = sshll.u32 %s3586_s12, 4  ;;  %s29_s13 = int_to_ptr.vmem [resolvable:$true] %s28_s13 }
   0x4   :  { %s3508_s14 = scalar_lea.vmem %s29_s13, 4096  ;;  %p3513_p1 = scmp.lt.s32.totalorder %s29_s13, %s29_s13 }
   0x5   :  { %p3509_p0 = scmp.ne.s32.totalorder %s29_s13, %s3508_s14  ;;  %p3514_p2 = scmp.lt.s32.totalorder %s3508_s14, %s3508_s14 }
   0x7   :  { %p3515_p3 = por %p3514_p2, %p3513_p1 }
   0x9   :  { %p3516_p4 = pnand %p3515_p3, %p3509_p0 }
   0xb   :  { %3519 = shalt.err (!%p3516_p4)
}
   0xc   :  { %s3587_s15 = smov 512   ;;  %s3588_s16 = smov 32  }
   0xd   :  { %34 = dma.hbm_to_vmem [thread:$0]  %s4692_s1, 4096, %s29_s13, [#allocation7], %s3587_s15, %s3587_s15, %s3588_s16  }
   0xe   :  { %s3589_s19 = smov [#allocation3]  }
   0xf   :  { %s16_s20 = sshll.u32 %s3589_s19, 4  ;;  %s17_s20 = int_to_ptr.vmem [resolvable:$true] %s16_s20 }
  0x10   :  { %s3528_s21 = scalar_lea.vmem %s17_s20, 128  ;;  %p3533_p6 = scmp.lt.s32.totalorder %s17_s20, %s17_s20 }
  0x11   :  { %p3529_p5 = scmp.ne.s32.totalorder %s17_s20, %s3528_s21  ;;  %p3534_p7 = scmp.lt.s32.totalorder %s3528_s21, %s3528_s21 }
  0x13   :  { %p3535_p8 = por %p3534_p7, %p3533_p6 }
  0x15   :  { %p3536_p9 = pnand %p3535_p8, %p3529_p5 }
  0x17   :  { %3539 = shalt.err (!%p3536_p9)
}
  0x18   :  { %s3590_s22 = smov 16   ;;  %s3591_s23 = smov 1  }
  0x19   :  { %22 = dma.hbm_to_vmem [thread:$0]  %s4691_s0, 128, %s17_s20, [#allocation4], %s3590_s22, %s3590_s22, %s3591_s23  }
  0x1a   :  { %s3592_s26 = smov [#allocation8]  }
  0x1b   :  { %s41_s27 = sshll.u32 %s3592_s26, 4  ;;  %s42_s27 = int_to_ptr.vmem [resolvable:$true] %s41_s27 }
  0x1c   :  { %s3548_s1 = scalar_lea.vmem %s42_s27, 128  ;;  %p3553_p11 = scmp.lt.s32.totalorder %s42_s27, %s42_s27 }
  0x1d   :  { %p3549_p10 = scmp.ne.s32.totalorder %s42_s27, %s3548_s1  ;;  %p3554_p12 = scmp.lt.s32.totalorder %s3548_s1, %s3548_s1 }
  0x1f   :  { %p3555_p13 = por %p3554_p12, %p3553_p11 }
  0x21   :  { %p3556_p0 = pnand %p3555_p13, %p3549_p10 }
  0x23   :  { %3559 = shalt.err (!%p3556_p0)
}
  0x24   :  { %44 = dma.hbm_to_vmem [thread:$0]  %s4693_s2, 128, %s42_s27, [#allocation7]  }
  0x25   :  { %3580 = dma.done.wait [#allocation4], 128  }
  0x26   :  { %3581 = vsyncadd [#allocation4], 4294967168 }
  0x27   :  { %3582 = dma.done.wait [#allocation7], 4224  }
  0x28   :  { %3583 = vsyncadd [#allocation7], 4294963072  ;;  %v3635_v0 = vld [vmem:[#allocation6 + $0x10] sm:$0xff]  ;;  %v3637_v1 = vld [vmem:[#allocation6] sm:$0xff]  ;;  %s3593_s0 = smov 127   ;;  %s3594_s2 = smov 126  }
  0x29   :  { %81 = vrot.lane.b32.xlu1 %v3635_v0, %s3593_s0  ;;  %77 = vrot.lane.b32.xlu0 %v3637_v1, %s3593_s0  ;;  %v72_v2 = vld [vmem:[#allocation6 + $0x18] sm:$0xff]  ;;  %v3643_v3 = vld [vmem:[#allocation6 + $0x8] sm:$0xff]  ;;  %s3595_s30 = smov 110   ;;  %s3596_s4 = smov 109   ;;  %v3599_v4 = vmov 0.0   ;;  %v3701_v6 = vld [vmem:[#allocation6 + $0x20] sm:$0xff] }
  0x2a   :  { %s3597_s5 = smov 108   ;;  %s3598_s6 = smov 92   ;;  %3311 = vmatprep.subr.mxu1 %v3599_v4  ;;  %372 = vmatprep.mubr.f32.mxu0 %v3599_v4  ;;  %v3699_v5 = vld [vmem:[#allocation6 + $0x28] sm:$0xff]  ;;  %v471_v7 = vld [vmem:[#allocation6 + $0x38] sm:$0xff]  ;;  %v3707_v8 = vld [vmem:[#allocation6 + $0x30] sm:$0xff]  ;;  %vm3602_vm0 = vmmov 0  }
  0x2b   :  { %s3600_s7 = smov 91   ;;  %s3601_s8 = smov 90   ;;  %3329 = vmatprep.mubr.msk.f32.mxu1 %vm3602_vm0, %v3599_v4  ;;  %v3775_v15 = vld [vmem:[#allocation6 + $0x48] sm:$0xff]  ;;  %v3777_v16 = vld [vmem:[#allocation6 + $0x40] sm:$0xff]  ;;  %v3787_v19 = vld [vmem:[#allocation6 + $0x58] sm:$0xff]  ;;  %vm267_vm1 = vcmask 736256  }
  0x2c   :  { %v3789_v20 = vld [vmem:[#allocation6 + $0x50] sm:$0xff]  ;;  %vm241_vm2 = vcmask 744448   ;;  %vm215_vm3 = vcmask 752640   ;;  %vm189_vm4 = vcmask 883712   ;;  %vm163_vm5 = vcmask 891904   ;;  %s3603_s9 = smov [#allocation9]  }
  0x2d   :  { %83 = vrot.lane.b32.xlu1 %v72_v2, %s3593_s0  ;;  %79 = vrot.lane.b32.xlu0 %v3643_v3, %s3593_s0  ;;  %vm137_vm6 = vcmask 900096   ;;  %vm111_vm7 = vcmask 1031168   ;;  %vm85_vm8 = vcmask 1039360   ;;  %vm304_vm9 = vcmask 588800   ;;  %s3194_s10 = sshll.u32 %s3603_s9, 4  ;;  %s3195_s10 = int_to_ptr.vmem [resolvable:$true] %s3194_s10 }
  0x2e   :  { %s3560_s11 = scalar_lea.vmem %s3195_s10, 3072  ;;  %p3565_p2 = scmp.lt.s32.totalorder %s3195_s10, %s3195_s10 }
  0x2f   :  { %p3561_p1 = scmp.ne.s32.totalorder %s3195_s10, %s3560_s11  ;;  %p3566_p3 = scmp.lt.s32.totalorder %s3560_s11, %s3560_s11 }
  0x31   :  { %105 = vrot.lane.b32.xlu1 %v3643_v3, %s3594_s2  ;;  %103 = vrot.lane.b32.xlu0 %v3637_v1, %s3594_s2  ;;  %p3567_p4 = por %p3566_p3, %p3565_p2 }
  0x33   :  { %p3568_p5 = pnand %p3567_p4, %p3561_p1 }
  0x35   :  { %109 = vrot.lane.b32.xlu1 %v72_v2, %s3594_s2  ;;  %107 = vrot.lane.b32.xlu0 %v3635_v0, %s3594_s2 }
  0x39   :  { %131 = vrot.lane.b32.xlu1 %v3643_v3, %s3595_s30  ;;  %129 = vrot.lane.b32.xlu0 %v3637_v1, %s3595_s30 }
  0x3d   :  { %135 = vrot.lane.b32.xlu1 %v72_v2, %s3595_s30  ;;  %133 = vrot.lane.b32.xlu0 %v3635_v0, %s3595_s30 }
  0x41   :  { %157 = vrot.lane.b32.xlu1 %v3643_v3, %s3596_s4  ;;  %155 = vrot.lane.b32.xlu0 %v3637_v1, %s3596_s4 }
  0x45   :  { %161 = vrot.lane.b32.xlu1 %v72_v2, %s3596_s4  ;;  %159 = vrot.lane.b32.xlu0 %v3635_v0, %s3596_s4 }
  0x49   :  { %183 = vrot.lane.b32.xlu1 %v3643_v3, %s3597_s5  ;;  %181 = vrot.lane.b32.xlu0 %v3637_v1, %s3597_s5 }
  0x4d   :  { %187 = vrot.lane.b32.xlu1 %v72_v2, %s3597_s5  ;;  %185 = vrot.lane.b32.xlu0 %v3635_v0, %s3597_s5 }
  0x51   :  { %209 = vrot.lane.b32.xlu1 %v3643_v3, %s3598_s6  ;;  %207 = vrot.lane.b32.xlu0 %v3637_v1, %s3598_s6 }
  0x55   :  { %213 = vrot.lane.b32.xlu1 %v72_v2, %s3598_s6  ;;  %211 = vrot.lane.b32.xlu0 %v3635_v0, %s3598_s6 }
  0x59   :  { %235 = vrot.lane.b32.xlu1 %v3643_v3, %s3600_s7  ;;  %233 = vrot.lane.b32.xlu0 %v3637_v1, %s3600_s7 }
  0x5d   :  { %239 = vrot.lane.b32.xlu1 %v72_v2, %s3600_s7  ;;  %237 = vrot.lane.b32.xlu0 %v3635_v0, %s3600_s7 }
  0x61   :  { %261 = vrot.lane.b32.xlu1 %v3643_v3, %s3601_s8  ;;  %259 = vrot.lane.b32.xlu0 %v3637_v1, %s3601_s8 }
  0x65   :  { %265 = vrot.lane.b32.xlu1 %v72_v2, %s3601_s8  ;;  %263 = vrot.lane.b32.xlu0 %v3635_v0, %s3601_s8 }
  0x69   :  { %478 = vrot.lane.b32.xlu1 %v3699_v5, %s3593_s0  ;;  %476 = vrot.lane.b32.xlu0 %v3701_v6, %s3593_s0 }
  0x6d   :  { %482 = vrot.lane.b32.xlu1 %v471_v7, %s3593_s0  ;;  %480 = vrot.lane.b32.xlu0 %v3707_v8, %s3593_s0 }
  0x71   :  { %503 = vrot.lane.b32.xlu1 %v3699_v5, %s3594_s2  ;;  %501 = vrot.lane.b32.xlu0 %v3701_v6, %s3594_s2 }
  0x75   :  { %507 = vrot.lane.b32.xlu1 %v471_v7, %s3594_s2  ;;  %505 = vrot.lane.b32.xlu0 %v3707_v8, %s3594_s2 }
  0x79   :  { %528 = vrot.lane.b32.xlu1 %v3699_v5, %s3595_s30  ;;  %526 = vrot.lane.b32.xlu0 %v3701_v6, %s3595_s30 }
  0x7d   :  { %532 = vrot.lane.b32.xlu1 %v471_v7, %s3595_s30  ;;  %530 = vrot.lane.b32.xlu0 %v3707_v8, %s3595_s30 }
  0x81   :  { %553 = vrot.lane.b32.xlu1 %v3699_v5, %s3596_s4  ;;  %551 = vrot.lane.b32.xlu0 %v3701_v6, %s3596_s4 }
  0x85   :  { %557 = vrot.lane.b32.xlu1 %v471_v7, %s3596_s4  ;;  %555 = vrot.lane.b32.xlu0 %v3707_v8, %s3596_s4 }
  0x89   :  { %578 = vrot.lane.b32.xlu1 %v3699_v5, %s3597_s5  ;;  %576 = vrot.lane.b32.xlu0 %v3701_v6, %s3597_s5 }
  0x8d   :  { %582 = vrot.lane.b32.xlu1 %v471_v7, %s3597_s5  ;;  %580 = vrot.lane.b32.xlu0 %v3707_v8, %s3597_s5 }
  0x91   :  { %603 = vrot.lane.b32.xlu1 %v3699_v5, %s3598_s6  ;;  %601 = vrot.lane.b32.xlu0 %v3701_v6, %s3598_s6 }
  0x95   :  { %607 = vrot.lane.b32.xlu1 %v471_v7, %s3598_s6  ;;  %605 = vrot.lane.b32.xlu0 %v3707_v8, %s3598_s6 }
  0x99   :  { %628 = vrot.lane.b32.xlu1 %v3699_v5, %s3600_s7  ;;  %626 = vrot.lane.b32.xlu0 %v3701_v6, %s3600_s7 }
  0x9b   :  { %v3753_v9 = vpop.permute.xlu1 %81  ;;  %v3755_v10 = vpop.permute.xlu0 %77 }
  0x9d   :  { %632 = vrot.lane.b32.xlu1 %v471_v7, %s3600_s7  ;;  %630 = vrot.lane.b32.xlu0 %v3707_v8, %s3600_s7 }
  0x9f   :  { %v3760_v11 = vpop.permute.xlu1 %83  ;;  %v3762_v12 = vpop.permute.xlu0 %79 }
  0xa1   :  { %653 = vrot.lane.b32.xlu1 %v3699_v5, %s3601_s8  ;;  %651 = vrot.lane.b32.xlu0 %v3701_v6, %s3601_s8 }
  0xa3   :  { %v3768_v13 = vpop.permute.xlu1 %105  ;;  %v3770_v14 = vpop.permute.xlu0 %103 }
  0xa5   :  { %657 = vrot.lane.b32.xlu1 %v471_v7, %s3601_s8  ;;  %655 = vrot.lane.b32.xlu0 %v3707_v8, %s3601_s8 }
  0xa7   :  { %v3779_v17 = vpop.permute.xlu1 %109  ;;  %v3781_v18 = vpop.permute.xlu0 %107 }
  0xa9   :  { %869 = vrot.lane.b32.xlu1 %v3775_v15, %s3593_s0  ;;  %867 = vrot.lane.b32.xlu0 %v3777_v16, %s3593_s0 }
  0xab   :  { %v3791_v21 = vpop.permute.xlu1 %131  ;;  %v3793_v22 = vpop.permute.xlu0 %129 }
  0xad   :  { %873 = vrot.lane.b32.xlu1 %v3787_v19, %s3593_s0  ;;  %871 = vrot.lane.b32.xlu0 %v3789_v20, %s3593_s0 }
  0xaf   :  { %v3799_v23 = vpop.permute.xlu1 %135  ;;  %v3801_v24 = vpop.permute.xlu0 %133 }
  0xb1   :  { %894 = vrot.lane.b32.xlu1 %v3775_v15, %s3594_s2  ;;  %892 = vrot.lane.b32.xlu0 %v3777_v16, %s3594_s2 }
  0xb3   :  { %v3807_v25 = vpop.permute.xlu1 %157  ;;  %v3809_v26 = vpop.permute.xlu0 %155 }
  0xb4   :  { %v164_v7 = vsel %vm163_vm5, %v3809_v26, %v3807_v25 }
  0xb5   :  { %898 = vrot.lane.b32.xlu1 %v3787_v19, %s3594_s2  ;;  %896 = vrot.lane.b32.xlu0 %v3789_v20, %s3594_s2 }
  0xb7   :  { %v3815_v27 = vpop.permute.xlu1 %161  ;;  %v3817_v28 = vpop.permute.xlu0 %159 }
  0xb8   :  { %v165_v61 = vsel %vm163_vm5, %v3807_v25, %v3817_v28  ;;  %v166_v62 = vsel %vm163_vm5, %v3817_v28, %v3815_v27  ;;  %v140_v27 = vsel %vm137_vm6, %v3801_v24, %v3799_v23  ;;  %v138_v28 = vsel %vm137_vm6, %v3793_v22, %v3791_v21 }
  0xb9   :  { %919 = vrot.lane.b32.xlu1 %v3775_v15, %s3595_s30  ;;  %917 = vrot.lane.b32.xlu0 %v3777_v16, %s3595_s30  ;;  %v113_v23 = vsel %vm111_vm7, %v3768_v13, %v3781_v18  ;;  %v112_v22 = vsel %vm111_vm7, %v3770_v14, %v3768_v13  ;;  %v86_v13 = vsel %vm85_vm8, %v3755_v10, %v3762_v12 }
  0xbb   :  { %v3823_v29 = vpop.permute.xlu1 %183  ;;  %v3825_v30 = vpop.permute.xlu0 %181 }
  0xbc   :  { %v190_v60 = vsel %vm189_vm4, %v3825_v30, %v3823_v29  ;;  %v3937_v30 = vld [vmem:[#allocation8] sm:$0xff] }
  0xbd   :  { %1044 = vrot.lane.b32.xlu1 %v3775_v15, %s3601_s8  ;;  %921 = vrot.lane.b32.xlu0 %v3789_v20, %s3595_s30 }
  0xbf   :  { %v188_v31 = vpop.permute.xlu1 %187  ;;  %v186_v32 = vpop.permute.xlu0 %185 }
  0xc0   :  { %v191_v58 = vsel %vm189_vm4, %v3823_v29, %v186_v32  ;;  %v192_v59 = vsel %vm189_vm4, %v186_v32, %v188_v31  ;;  %v139_v29 = vsel %vm137_vm6, %v3791_v21, %v3801_v24  ;;  %v114_v21 = vsel %vm111_vm7, %v3781_v18, %v3779_v17  ;;  %v3935_v24 = vld [vmem:[#allocation6 + $0x70] sm:$0xff]  ;;  %v3207_v31 = vld [vmem:[#allocation3] ss:$0 sm:$0xff]  ;;  %v3946_v18 = vld [vmem:[#allocation6 + $0x68] sm:$0xff] }
  0xc1   :  { %1042 = vrot.lane.b32.xlu1 %v3777_v16, %s3601_s8  ;;  %1046 = vrot.lane.b32.xlu0 %v3789_v20, %s3601_s8  ;;  %v88_v17 = vsel %vm85_vm8, %v3753_v9, %v3760_v11 }
  0xc3   :  { %v210_v33 = vpop.permute.xlu1 %209  ;;  %v208_v34 = vpop.permute.xlu0 %207 }
  0xc4   :  { %v216_v55 = vsel %vm215_vm3, %v208_v34, %v210_v33 }
  0xc5   :  { %1021 = vrot.lane.b32.xlu1 %v3789_v20, %s3600_s7  ;;  %1019 = vrot.lane.b32.xlu0 %v3775_v15, %s3600_s7 }
  0xc7   :  { %v214_v35 = vpop.permute.xlu1 %213  ;;  %v212_v36 = vpop.permute.xlu0 %211 }
  0xc8   :  { %v217_v53 = vsel %vm215_vm3, %v210_v33, %v212_v36  ;;  %v218_v54 = vsel %vm215_vm3, %v212_v36, %v214_v35  ;;  %v62_v33 = vmul.f32 %v3207_v31, %v3937_v30 }
  0xc9   :  { %1048 = vrot.lane.b32.xlu1 %v3787_v19, %s3601_s8  ;;  %1017 = vrot.lane.b32.xlu0 %v3777_v16, %s3600_s7 }
  0xcb   :  { %v236_v37 = vpop.permute.xlu1 %235  ;;  %v234_v38 = vpop.permute.xlu0 %233 }
  0xcc   :  { %v242_v52 = vsel %vm241_vm2, %v234_v38, %v236_v37 }
  0xcd   :  { %996 = vrot.lane.b32.xlu1 %v3789_v20, %s3598_s6  ;;  %994 = vrot.lane.b32.xlu0 %v3775_v15, %s3598_s6 }
  0xcf   :  { %v240_v39 = vpop.permute.xlu1 %239  ;;  %v238_v40 = vpop.permute.xlu0 %237 }
  0xd0   :  { %v243_v49 = vsel %vm241_vm2, %v236_v37, %v238_v40  ;;  %v244_v50 = vsel %vm241_vm2, %v238_v40, %v240_v39 }
  0xd1   :  { %1023 = vrot.lane.b32.xlu1 %v3787_v19, %s3600_s7  ;;  %992 = vrot.lane.b32.xlu0 %v3777_v16, %s3598_s6 }
  0xd3   :  { %v262_v41 = vpop.permute.xlu1 %261  ;;  %v260_v42 = vpop.permute.xlu0 %259 }
  0xd4   :  { %v268_v47 = vsel %vm267_vm1, %v260_v42, %v262_v41 }
  0xd5   :  { %971 = vrot.lane.b32.xlu1 %v3789_v20, %s3597_s5  ;;  %969 = vrot.lane.b32.xlu0 %v3775_v15, %s3597_s5 }
  0xd7   :  { %v266_v43 = vpop.permute.xlu1 %265  ;;  %v264_v44 = vpop.permute.xlu0 %263 }
  0xd8   :  { %v269_v45 = vsel %vm267_vm1, %v262_v41, %v264_v44  ;;  %v270_v46 = vsel %vm267_vm1, %v264_v44, %v266_v43 }
  0xd9   :  { %998 = vrot.lane.b32.xlu1 %v3787_v19, %s3598_s6  ;;  %967 = vrot.lane.b32.xlu0 %v3777_v16, %s3597_s5 }
  0xda   :  { %322 = vmatprep.subr.mxu0 %v269_v45  ;;  %3312 = vmatpush3.msra.mxu1 %v270_v46 }
  0xdb   :  { %323 = vmatpush1.msra.mxu0 %v268_v47  ;;  %3313 = vmatprep.subr.mxu1 %v3599_v4  ;;  %v3863_v48 = vpop.permute.xlu1 %478  ;;  %v3867_v51 = vpop.permute.xlu0 %476 }
  0xdc   :  { %324 = vmatprep.subr.mxu0 %v243_v49  ;;  %3314 = vmatpush3.msra.mxu1 %v244_v50 }
  0xdd   :  { %325 = vmatpush1.msra.mxu0 %v242_v52  ;;  %3315 = vmatprep.subr.mxu1 %v3599_v4 }
  0xde   :  { %946 = vrot.lane.b32.xlu1 %v3789_v20, %s3596_s4  ;;  %944 = vrot.lane.b32.xlu0 %v3775_v15, %s3596_s4 }
  0xdf   :  { %326 = vmatprep.subr.mxu0 %v217_v53  ;;  %3316 = vmatpush3.msra.mxu1 %v218_v54  ;;  %v3878_v56 = vpop.permute.xlu1 %482  ;;  %v3880_v57 = vpop.permute.xlu0 %480 }
  0xe0   :  { %327 = vmatpush1.msra.mxu0 %v216_v55  ;;  %3317 = vmatprep.subr.mxu1 %v3599_v4 }
  0xe1   :  { %328 = vmatprep.subr.mxu0 %v191_v58  ;;  %3318 = vmatpush3.msra.mxu1 %v192_v59 }
  0xe2   :  { %329 = vmatpush1.msra.mxu0 %v190_v60  ;;  %3319 = vmatprep.subr.mxu1 %v3599_v4 }
  0xe3   :  { %973 = vrot.lane.b32.xlu1 %v3787_v19, %s3597_s5  ;;  %942 = vrot.lane.b32.xlu0 %v3777_v16, %s3596_s4  ;;  %v3900_v63 = vpop.permute.xlu1 %503  ;;  %v3902_v2 = vpop.permute.xlu0 %501 }
  0xe4   :  { %330 = vmatprep.subr.mxu0 %v165_v61  ;;  %3320 = vmatpush3.msra.mxu1 %v166_v62 }
  0xe5   :  { %331 = vmatpush1.msra.mxu0 %v164_v7  ;;  %3321 = vmatprep.subr.mxu1 %v3599_v4 }
  0xe6   :  { %332 = vmatprep.subr.mxu0 %v139_v29  ;;  %3322 = vmatpush3.msra.mxu1 %v140_v27 }
  0xe7   :  { %333 = vmatpush1.msra.mxu0 %v138_v28  ;;  %3323 = vmatprep.subr.mxu1 %v3599_v4  ;;  %v3918_v25 = vpop.permute.xlu1 %507  ;;  %v3920_v26 = vpop.permute.xlu0 %505 }
  0xe8   :  { %923 = vrot.lane.b32.xlu1 %v3787_v19, %s3595_s30  ;;  %948 = vrot.lane.b32.xlu0 %v3787_v19, %s3596_s4  ;;  %v87_v19 = vsel %vm85_vm8, %v3762_v12, %v3753_v9  ;;  %v3961_v9 = vld [vmem:[#allocation6 + $0x60] sm:$0xff] }
  0xe9   :  { %334 = vmatprep.subr.mxu0 %v113_v23  ;;  %3324 = vmatpush3.msra.mxu1 %v114_v21 }
  0xea   :  { %335 = vmatpush1.msra.mxu0 %v112_v22  ;;  %3325 = vmatprep.subr.mxu1 %v3599_v4 }
  0xeb   :  { %336 = vmatprep.subr.mxu0 %v87_v19  ;;  %3326 = vmatpush3.msra.mxu1 %v88_v17  ;;  %v3951_v14 = vpop.permute.xlu1 %528  ;;  %v3953_v32 = vpop.permute.xlu0 %526 }
  0xec   :  { %337 = vmatpush1.msra.mxu0 %v86_v13  ;;  %1437 = vrot.lane.b32.xlu1 %v3935_v24, %s3601_s8 }
  0xed   :  { %1435 = vrot.lane.b32.xlu0 %v3946_v18, %s3601_s8  ;;  %3327 = vmatprep.subr.mxu1 %v3599_v4 }
  0xee   :  { %338 = vmatprep.subr.mxu0 %v3643_v3  ;;  %3328 = vmatpush3.msra.mxu1 %v3635_v0  ;;  %v3988_v3 = vld [vmem:[#allocation6 + $0x78] sm:$0xff] }
  0xef   :  { %v3965_v10 = vpop.permute.xlu1 %532  ;;  %v3967_v11 = vpop.permute.xlu0 %530  ;;  %339 = vmatpush1.msra.mxu0 %v3637_v1  ;;  %3332 = vmatprep.subr.mxu1 %v3599_v4 }
  0xf0   :  { %1410 = vrot.lane.b32.xlu1 %v3946_v18, %s3600_s7  ;;  %3330 = vmatmul.mubr.msk.f32.vlgmr.msra.gmra.mxu1 %vm304_vm9, %v62_v33 }
  0xf1   :  { %1433 = vrot.lane.b32.xlu0 %v3961_v9, %s3601_s8  ;;  %3208 = vmatmul.mubr.msk.f32.vlgmr.msra.gmra.mxu0 %vm304_vm9, %v62_v33 }
  0xf2   :  { %762 = vmatprep.mubr.f32.mxu0 %v3599_v4  ;;  %3350 = vmatprep.mubr.msk.f32.mxu1 %vm3602_vm0, %v3599_v4 }
  0xf3   :  { %v3980_v0 = vpop.permute.xlu1 %553  ;;  %v3982_v1 = vpop.permute.xlu0 %551 }
  0xf4   :  { %1408 = vrot.lane.b32.xlu1 %v3961_v9, %s3600_s7 }
  0xf5   :  { %1412 = vrot.lane.b32.xlu0 %v3935_v24, %s3600_s7 }
  0xf7   :  { %v3990_v12 = vpop.permute.xlu1 %557  ;;  %v3992_v34 = vpop.permute.xlu0 %555 }
  0xf8   :  { %1385 = vrot.lane.b32.xlu1 %v3946_v18, %s3598_s6  ;;  %v560_v19 = vsel %vm163_vm5, %v3980_v0, %v3992_v34  ;;  %v561_v17 = vsel %vm163_vm5, %v3992_v34, %v3990_v12  ;;  %v535_v12 = vsel %vm137_vm6, %v3951_v14, %v3967_v11  ;;  %v534_v34 = vsel %vm137_vm6, %v3953_v32, %v3951_v14 }
  0xf9   :  { %1439 = vrot.lane.b32.xlu0 %v3988_v3, %s3601_s8  ;;  %v510_v14 = vsel %vm111_vm7, %v3900_v63, %v3920_v26  ;;  %v509_v32 = vsel %vm111_vm7, %v3902_v2, %v3900_v63  ;;  %v484_v63 = vsel %vm85_vm8, %v3867_v51, %v3863_v48  ;;  %v486_v2 = vsel %vm85_vm8, %v3880_v57, %v3878_v56 }
  0xfb   :  { %v579_v35 = vpop.permute.xlu1 %578  ;;  %v577_v36 = vpop.permute.xlu0 %576 }
  0xfc   :  { %1383 = vrot.lane.b32.xlu1 %v3961_v9, %s3598_s6  ;;  %v584_v22 = vsel %vm189_vm4, %v577_v36, %v579_v35  ;;  %v485_v36 = vsel %vm85_vm8, %v3863_v48, %v3880_v57  ;;  %v4130_v48 = vld [vmem:[#allocation6 + $0x80] sm:$0xff] }
  0xfd   :  { %1387 = vrot.lane.b32.xlu0 %v3935_v24, %s3598_s6 }
  0xff   :  { %v583_v37 = vpop.permute.xlu1 %582  ;;  %v581_v38 = vpop.permute.xlu0 %580 }
 0x100   :  { %1360 = vrot.lane.b32.xlu1 %v3946_v18, %s3597_s5  ;;  %v585_v21 = vsel %vm189_vm4, %v579_v35, %v581_v38  ;;  %v586_v31 = vsel %vm189_vm4, %v581_v38, %v583_v37  ;;  %v559_v35 = vsel %vm163_vm5, %v3982_v1, %v3980_v0  ;;  %v536_v0 = vsel %vm137_vm6, %v3967_v11, %v3965_v10  ;;  %v3210_v11 = vld [vmem:[#allocation3 + $0x1] ss:$0 sm:$0xff]  ;;  %v4110_v37 = vld [vmem:[#allocation6 + $0x90] sm:$0xff]  ;;  %v4112_v38 = vld [vmem:[#allocation6 + $0x88] sm:$0xff] }
 0x101   :  { %1414 = vrot.lane.b32.xlu0 %v3988_v3, %s3600_s7  ;;  %v511_v10 = vsel %vm111_vm7, %v3920_v26, %v3918_v25 }
 0x103   :  { %v604_v39 = vpop.permute.xlu1 %603  ;;  %v602_v40 = vpop.permute.xlu0 %601 }
 0x104   :  { %1358 = vrot.lane.b32.xlu1 %v3961_v9, %s3597_s5  ;;  %v609_v29 = vsel %vm215_vm3, %v602_v40, %v604_v39 }
 0x105   :  { %1362 = vrot.lane.b32.xlu0 %v3935_v24, %s3597_s5 }
 0x107   :  { %v608_v41 = vpop.permute.xlu1 %607  ;;  %v606_v42 = vpop.permute.xlu0 %605 }
 0x108   :  { %1335 = vrot.lane.b32.xlu1 %v3946_v18, %s3596_s4  ;;  %v610_v7 = vsel %vm215_vm3, %v604_v39, %v606_v42  ;;  %v611_v27 = vsel %vm215_vm3, %v606_v42, %v608_v41  ;;  %v4154_v39 = vld [vmem:[#allocation6 + $0x98] sm:$0xff] }
 0x109   :  { %1389 = vrot.lane.b32.xlu0 %v3988_v3, %s3598_s6 }
 0x10b   :  { %v629_v43 = vpop.permute.xlu1 %628  ;;  %v627_v44 = vpop.permute.xlu0 %626 }
 0x10c   :  { %1333 = vrot.lane.b32.xlu1 %v3961_v9, %s3596_s4  ;;  %v634_v62 = vsel %vm241_vm2, %v627_v44, %v629_v43 }
 0x10d   :  { %1337 = vrot.lane.b32.xlu0 %v3935_v24, %s3596_s4 }
 0x10f   :  { %v633_v45 = vpop.permute.xlu1 %632  ;;  %v631_v46 = vpop.permute.xlu0 %630 }
 0x110   :  { %1310 = vrot.lane.b32.xlu1 %v3946_v18, %s3595_s30  ;;  %v635_v58 = vsel %vm241_vm2, %v629_v43, %v631_v46  ;;  %v636_v61 = vsel %vm241_vm2, %v631_v46, %v633_v45 }
 0x111   :  { %1364 = vrot.lane.b32.xlu0 %v3988_v3, %s3597_s5 }
 0x113   :  { %v654_v47 = vpop.permute.xlu1 %653  ;;  %v652_v49 = vpop.permute.xlu0 %651 }
 0x114   :  { %1308 = vrot.lane.b32.xlu1 %v3961_v9, %s3595_s30  ;;  %v659_v55 = vsel %vm267_vm1, %v652_v49, %v654_v47 }
 0x115   :  { %1312 = vrot.lane.b32.xlu0 %v3935_v24, %s3595_s30 }
 0x117   :  { %v658_v50 = vpop.permute.xlu1 %657  ;;  %v656_v52 = vpop.permute.xlu0 %655 }
 0x118   :  { %1285 = vrot.lane.b32.xlu1 %v3946_v18, %s3594_s2  ;;  %v660_v53 = vsel %vm267_vm1, %v654_v47, %v656_v52  ;;  %v661_v54 = vsel %vm267_vm1, %v656_v52, %v658_v50 }
 0x119   :  { %1339 = vrot.lane.b32.xlu0 %v3988_v3, %s3596_s4  ;;  %712 = vmatprep.subr.mxu0 %v660_v53 }
 0x11a   :  { %3333 = vmatpush3.msra.mxu1 %v661_v54  ;;  %713 = vmatpush1.msra.mxu0 %v659_v55 }
 0x11b   :  { %3334 = vmatprep.subr.mxu1 %v3599_v4  ;;  %v4035_v59 = vpop.permute.xlu1 %869  ;;  %v4037_v60 = vpop.permute.xlu0 %867  ;;  %714 = vmatprep.subr.mxu0 %v635_v58 }
 0x11c   :  { %1283 = vrot.lane.b32.xlu1 %v3961_v9, %s3594_s2  ;;  %3335 = vmatpush3.msra.mxu1 %v636_v61 }
 0x11d   :  { %1287 = vrot.lane.b32.xlu0 %v3935_v24, %s3594_s2  ;;  %715 = vmatpush1.msra.mxu0 %v634_v62 }
 0x11e   :  { %3336 = vmatprep.subr.mxu1 %v3599_v4  ;;  %716 = vmatprep.subr.mxu0 %v610_v7 }
 0x11f   :  { %3337 = vmatpush3.msra.mxu1 %v611_v27  ;;  %717 = vmatpush1.msra.mxu0 %v609_v29  ;;  %v4049_v28 = vpop.permute.xlu1 %873  ;;  %v4051_v23 = vpop.permute.xlu0 %871 }
 0x120   :  { %1260 = vrot.lane.b32.xlu1 %v3946_v18, %s3593_s0  ;;  %3338 = vmatprep.subr.mxu1 %v3599_v4 }
 0x121   :  { %1314 = vrot.lane.b32.xlu0 %v3988_v3, %s3595_s30  ;;  %718 = vmatprep.subr.mxu0 %v585_v21 }
 0x122   :  { %3339 = vmatpush3.msra.mxu1 %v586_v31  ;;  %719 = vmatpush1.msra.mxu0 %v584_v22 }
 0x123   :  { %3340 = vmatprep.subr.mxu1 %v3599_v4  ;;  %720 = vmatprep.subr.mxu0 %v560_v19  ;;  %v4068_v13 = vpop.permute.xlu1 %894  ;;  %v4070_v33 = vpop.permute.xlu0 %892 }
 0x124   :  { %1258 = vrot.lane.b32.xlu1 %v3961_v9, %s3593_s0  ;;  %3341 = vmatpush3.msra.mxu1 %v561_v17 }
 0x125   :  { %1262 = vrot.lane.b32.xlu0 %v3935_v24, %s3593_s0  ;;  %721 = vmatpush1.msra.mxu0 %v559_v35 }
 0x126   :  { %3342 = vmatprep.subr.mxu1 %v3599_v4  ;;  %722 = vmatprep.subr.mxu0 %v535_v12 }
 0x127   :  { %3343 = vmatpush3.msra.mxu1 %v536_v0  ;;  %723 = vmatpush1.msra.mxu0 %v534_v34  ;;  %v4089_v1 = vpop.permute.xlu1 %898  ;;  %v4091_v24 = vpop.permute.xlu0 %896 }
 0x128   :  { %3344 = vmatprep.subr.mxu1 %v3599_v4  ;;  %1264 = vrot.lane.b32.xlu1 %v3988_v3, %s3593_s0 }
 0x129   :  { %1289 = vrot.lane.b32.xlu0 %v3988_v3, %s3594_s2  ;;  %724 = vmatprep.subr.mxu0 %v510_v14  ;;  %v460_v3 = vmul.f32 %v3210_v11, %v3937_v30  ;;  %v901_v11 = vsel %vm111_vm7, %v4068_v13, %v4091_v24 }
 0x12a   :  { %3345 = vmatpush3.msra.mxu1 %v511_v10  ;;  %725 = vmatpush1.msra.mxu0 %v509_v32 }
 0x12b   :  { %3346 = vmatprep.subr.mxu1 %v3599_v4  ;;  %726 = vmatprep.subr.mxu0 %v485_v36  ;;  %v4121_v25 = vpop.permute.xlu1 %919  ;;  %v4123_v26 = vpop.permute.xlu0 %917  ;;  %v900_v36 = vsel %vm111_vm7, %v4070_v33, %v4068_v13  ;;  %v875_v13 = vsel %vm85_vm8, %v4037_v60, %v4035_v59 }
 0x12c   :  { %3347 = vmatpush3.msra.mxu1 %v486_v2  ;;  %727 = vmatpush1.msra.mxu0 %v484_v63  ;;  %v925_v14 = vsel %vm137_vm6, %v4123_v26, %v4121_v25  ;;  %v876_v2 = vsel %vm85_vm8, %v4035_v59, %v4051_v23  ;;  %v902_v59 = vsel %vm111_vm7, %v4091_v24, %v4089_v1 }
 0x12d   :  { %1828 = vrot.lane.b32.xlu1 %v4110_v37, %s3601_s8  ;;  %1826 = vrot.lane.b32.xlu0 %v4112_v38, %s3601_s8 }
 0x12e   :  { %728 = vmatprep.subr.mxu0 %v3699_v5  ;;  %3348 = vmatprep.subr.mxu1 %v3599_v4 }
 0x12f   :  { %v1045_v51 = vpop.permute.xlu1 %1044  ;;  %v4134_v56 = vpop.permute.xlu0 %921  ;;  %729 = vmatpush1.msra.mxu0 %v3701_v6  ;;  %3349 = vmatpush3.msra.mxu1 %v3707_v8 }
 0x130   :  { %3211 = vmatmul.mubr.msk.f32.vlgmr.msra.gmra.mxu0 %vm304_vm9, %v460_v3  ;;  %3353 = vmatprep.subr.mxu1 %v3599_v4  ;;  %v926_v0 = vsel %vm137_vm6, %v4121_v25, %v4134_v56  ;;  %v3213_v25 = vld [vmem:[#allocation3 + $0x2] ss:$0 sm:$0xff] }
 0x131   :  { %1801 = vrot.lane.b32.xlu1 %v4112_v38, %s3600_s7  ;;  %1824 = vrot.lane.b32.xlu0 %v4130_v48, %s3601_s8 }
 0x132   :  { %3351 = vmatmul.mubr.msk.f32.vlgmr.msra.gmra.mxu1 %vm304_vm9, %v460_v3  ;;  %1153 = vmatprep.mubr.f32.mxu0 %v3599_v4 }
 0x133   :  { %v1043_v5 = vpop.permute.xlu1 %1042  ;;  %v1047_v57 = vpop.permute.xlu0 %1046  ;;  %3371 = vmatprep.mubr.msk.f32.mxu1 %vm3602_vm0, %v3599_v4 }
 0x134   :  { %v1050_v6 = vsel %vm267_vm1, %v1043_v5, %v1045_v51  ;;  %v1051_v8 = vsel %vm267_vm1, %v1045_v51, %v1047_v57  ;;  %v851_v5 = vmul.f32 %v3213_v25, %v3937_v30 }
 0x135   :  { %1799 = vrot.lane.b32.xlu1 %v4130_v48, %s3600_s7  ;;  %1803 = vrot.lane.b32.xlu0 %v4110_v37, %s3600_s7 }
 0x136   :  { %1103 = vmatprep.subr.mxu0 %v1051_v8 }
 0x137   :  { %1104 = vmatpush1.msra.mxu0 %v1050_v6  ;;  %v1022_v40 = vpop.permute.xlu1 %1021  ;;  %v1020_v41 = vpop.permute.xlu0 %1019  ;;  %v4267_v6 = vld [vmem:[#allocation6 + $0xb0] sm:$0xff] }
 0x138   :  { %v1026_v42 = vsel %vm241_vm2, %v1020_v41, %v1022_v40 }
 0x139   :  { %1776 = vrot.lane.b32.xlu1 %v4112_v38, %s3598_s6  ;;  %1830 = vrot.lane.b32.xlu0 %v4154_v39, %s3601_s8 }
 0x13a   :  { %1105 = vmatprep.subr.mxu0 %v1026_v42 }
 0x13b   :  { %v1049_v43 = vpop.permute.xlu1 %1048  ;;  %v1018_v44 = vpop.permute.xlu0 %1017 }
 0x13c   :  { %v1052_v45 = vsel %vm267_vm1, %v1047_v57, %v1049_v43  ;;  %v1025_v46 = vsel %vm241_vm2, %v1018_v44, %v1020_v41  ;;  %v4278_v41 = vld [vmem:[#allocation6 + $0xa0] sm:$0xff] }
 0x13d   :  { %1774 = vrot.lane.b32.xlu1 %v4130_v48, %s3598_s6  ;;  %1778 = vrot.lane.b32.xlu0 %v4110_v37, %s3598_s6 }
 0x13e   :  { %1106 = vmatpush1.msra.mxu0 %v1025_v46  ;;  %3354 = vmatpush3.msra.mxu1 %v1052_v45 }
 0x13f   :  { %v997_v47 = vpop.permute.xlu1 %996  ;;  %v995_v49 = vpop.permute.xlu0 %994  ;;  %3355 = vmatprep.subr.mxu1 %v3599_v4 }
 0x140   :  { %v1001_v50 = vsel %vm215_vm3, %v995_v49, %v997_v47 }
 0x141   :  { %1751 = vrot.lane.b32.xlu1 %v4112_v38, %s3597_s5  ;;  %1805 = vrot.lane.b32.xlu0 %v4154_v39, %s3600_s7 }
 0x142   :  { %1107 = vmatprep.subr.mxu0 %v1001_v50  ;;  %v4292_v50 = vld [vmem:[#allocation6 + $0xb8] sm:$0xff] }
 0x143   :  { %v1024_v52 = vpop.permute.xlu1 %1023  ;;  %v993_v53 = vpop.permute.xlu0 %992 }
 0x144   :  { %v1027_v54 = vsel %vm241_vm2, %v1022_v40, %v1024_v52  ;;  %v1000_v55 = vsel %vm215_vm3, %v993_v53, %v995_v49 }
 0x145   :  { %1749 = vrot.lane.b32.xlu1 %v4130_v48, %s3597_s5  ;;  %1753 = vrot.lane.b32.xlu0 %v4110_v37, %s3597_s5 }
 0x146   :  { %1108 = vmatpush1.msra.mxu0 %v1000_v55  ;;  %3356 = vmatpush3.msra.mxu1 %v1027_v54 }
 0x147   :  { %v972_v58 = vpop.permute.xlu1 %971  ;;  %v970_v61 = vpop.permute.xlu0 %969  ;;  %3357 = vmatprep.subr.mxu1 %v3599_v4 }
 0x148   :  { %v976_v62 = vsel %vm189_vm4, %v970_v61, %v972_v58 }
 0x149   :  { %1726 = vrot.lane.b32.xlu1 %v4112_v38, %s3596_s4  ;;  %1780 = vrot.lane.b32.xlu0 %v4154_v39, %s3598_s6 }
 0x14a   :  { %1109 = vmatprep.subr.mxu0 %v976_v62 }
 0x14b   :  { %v999_v7 = vpop.permute.xlu1 %998  ;;  %v968_v29 = vpop.permute.xlu0 %967 }
 0x14c   :  { %v1002_v27 = vsel %vm215_vm3, %v997_v47, %v999_v7  ;;  %v975_v21 = vsel %vm189_vm4, %v968_v29, %v970_v61 }
 0x14d   :  { %1724 = vrot.lane.b32.xlu1 %v4130_v48, %s3596_s4  ;;  %1728 = vrot.lane.b32.xlu0 %v4110_v37, %s3596_s4 }
 0x14e   :  { %1110 = vmatpush1.msra.mxu0 %v975_v21  ;;  %3358 = vmatpush3.msra.mxu1 %v1002_v27 }
 0x14f   :  { %3359 = vmatprep.subr.mxu1 %v3599_v4 }
 0x150   :  { %v947_v22 = vpop.permute.xlu1 %946  ;;  %v945_v31 = vpop.permute.xlu0 %944 }
 0x151   :  { %1701 = vrot.lane.b32.xlu1 %v4112_v38, %s3595_s30  ;;  %1755 = vrot.lane.b32.xlu0 %v4154_v39, %s3597_s5  ;;  %v951_v19 = vsel %vm163_vm5, %v945_v31, %v947_v22 }
 0x152   :  { %1111 = vmatprep.subr.mxu0 %v951_v19 }
 0x155   :  { %1699 = vrot.lane.b32.xlu1 %v4130_v48, %s3595_s30  ;;  %1703 = vrot.lane.b32.xlu0 %v4110_v37, %s3595_s30  ;;  %v974_v17 = vpop.permute.xlu1 %973  ;;  %v943_v35 = vpop.permute.xlu0 %942 }
 0x156   :  { %v977_v12 = vsel %vm189_vm4, %v972_v58, %v974_v17  ;;  %v950_v34 = vsel %vm163_vm5, %v943_v35, %v945_v31 }
 0x157   :  { %1112 = vmatpush1.msra.mxu0 %v950_v34  ;;  %3360 = vmatpush3.msra.mxu1 %v977_v12 }
 0x158   :  { %1113 = vmatprep.subr.mxu0 %v926_v0  ;;  %3361 = vmatprep.subr.mxu1 %v3599_v4 }
 0x159   :  { %1676 = vrot.lane.b32.xlu1 %v4112_v38, %s3594_s2  ;;  %1730 = vrot.lane.b32.xlu0 %v4154_v39, %s3596_s4 }
 0x15a   :  { %v924_v32 = vpop.permute.xlu1 %923  ;;  %v949_v10 = vpop.permute.xlu0 %948  ;;  %1114 = vmatpush1.msra.mxu0 %v925_v14 }
 0x15b   :  { %v952_v63 = vsel %vm163_vm5, %v947_v22, %v949_v10  ;;  %1115 = vmatprep.subr.mxu0 %v901_v11  ;;  %v927_v33 = vsel %vm137_vm6, %v4134_v56, %v924_v32  ;;  %v877_v56 = vsel %vm85_vm8, %v4051_v23, %v4049_v28 }
 0x15c   :  { %1116 = vmatpush1.msra.mxu0 %v900_v36  ;;  %3362 = vmatpush3.msra.mxu1 %v952_v63 }
 0x15d   :  { %1674 = vrot.lane.b32.xlu1 %v4130_v48, %s3594_s2  ;;  %1678 = vrot.lane.b32.xlu0 %v4110_v37, %s3594_s2 }
 0x15e   :  { %1117 = vmatprep.subr.mxu0 %v876_v2  ;;  %3363 = vmatprep.subr.mxu1 %v3599_v4  ;;  %v1438_v26 = vpop.permute.xlu1 %1437 }
 0x15f   :  { %v1436_v3 = vpop.permute.xlu0 %1435  ;;  %1118 = vmatpush1.msra.mxu0 %v875_v13  ;;  %3364 = vmatpush3.msra.mxu1 %v927_v33 }
 0x160   :  { %1119 = vmatprep.subr.mxu0 %v3775_v15  ;;  %3365 = vmatprep.subr.mxu1 %v3599_v4  ;;  %v1442_v51 = vsel %vm267_vm1, %v1436_v3, %v1438_v26 }
 0x161   :  { %1651 = vrot.lane.b32.xlu1 %v4112_v38, %s3593_s0  ;;  %1705 = vrot.lane.b32.xlu0 %v4154_v39, %s3595_s30 }
 0x162   :  { %1120 = vmatpush1.msra.mxu0 %v3777_v16  ;;  %3366 = vmatpush3.msra.mxu1 %v902_v59  ;;  %v1411_v15 = vpop.permute.xlu1 %1410 }
 0x163   :  { %3367 = vmatprep.subr.mxu1 %v3599_v4  ;;  %1494 = vmatprep.subr.mxu0 %v1442_v51  ;;  %v1434_v60 = vpop.permute.xlu0 %1433  ;;  %v3216_v51 = vld [vmem:[#allocation3 + $0x3] ss:$0 sm:$0xff] }
 0x164   :  { %v1441_v57 = vsel %vm267_vm1, %v1434_v60, %v1436_v3  ;;  %3368 = vmatpush3.msra.mxu1 %v877_v56  ;;  %3214 = vmatmul.mubr.msk.f32.vlgmr.msra.gmra.mxu0 %vm304_vm9, %v851_v5 }
 0x165   :  { %1649 = vrot.lane.b32.xlu1 %v4130_v48, %s3593_s0  ;;  %1653 = vrot.lane.b32.xlu0 %v4110_v37, %s3593_s0 }
 0x166   :  { %1495 = vmatpush1.msra.mxu0 %v1441_v57  ;;  %v1409_v16 = vpop.permute.xlu1 %1408  ;;  %3369 = vmatprep.subr.mxu1 %v3599_v4 }
 0x167   :  { %v1413_v1 = vpop.permute.xlu0 %1412  ;;  %3370 = vmatpush3.msra.mxu1 %v3789_v20  ;;  %1544 = vmatprep.mubr.f32.mxu0 %v3599_v4  ;;  %v1416_v28 = vsel %vm241_vm2, %v1409_v16, %v1411_v15  ;;  %v4269_v20 = vld [vmem:[#allocation6 + $0xa8] sm:$0xff] }
 0x168   :  { %v1417_v23 = vsel %vm241_vm2, %v1411_v15, %v1413_v1  ;;  %3374 = vmatprep.subr.mxu1 %v3599_v4  ;;  %3372 = vmatmul.mubr.msk.f32.vlgmr.msra.gmra.mxu1 %vm304_vm9, %v851_v5  ;;  %v1242_v15 = vmul.f32 %v3216_v51, %v3937_v30 }
 0x169   :  { %1655 = vrot.lane.b32.xlu1 %v4154_v39, %s3593_s0  ;;  %1680 = vrot.lane.b32.xlu0 %v4154_v39, %s3594_s2 }
 0x16a   :  { %1496 = vmatprep.subr.mxu0 %v1417_v23  ;;  %v1386_v24 = vpop.permute.xlu1 %1385  ;;  %3392 = vmatprep.mubr.msk.f32.mxu1 %vm3602_vm0, %v3599_v4 }
 0x16b   :  { %1497 = vmatpush1.msra.mxu0 %v1416_v28  ;;  %v1440_v8 = vpop.permute.xlu0 %1439 }
 0x16c   :  { %v1443_v40 = vsel %vm267_vm1, %v1438_v26, %v1440_v8 }
 0x16d   :  { %2219 = vrot.lane.b32.xlu1 %v4267_v6, %s3601_s8  ;;  %2217 = vrot.lane.b32.xlu0 %v4269_v20, %s3601_s8 }
 0x16e   :  { %3375 = vmatpush3.msra.mxu1 %v1443_v40  ;;  %v1384_v39 = vpop.permute.xlu1 %1383 }
 0x16f   :  { %v1388_v42 = vpop.permute.xlu0 %1387  ;;  %3376 = vmatprep.subr.mxu1 %v3599_v4  ;;  %v1391_v43 = vsel %vm215_vm3, %v1384_v39, %v1386_v24  ;;  %v4382_v39 = vld [vmem:[#allocation6 + $0xd0] sm:$0xff] }
 0x170   :  { %v1392_v44 = vsel %vm215_vm3, %v1386_v24, %v1388_v42 }
 0x171   :  { %2192 = vrot.lane.b32.xlu1 %v4269_v20, %s3600_s7  ;;  %2215 = vrot.lane.b32.xlu0 %v4278_v41, %s3601_s8 }
 0x172   :  { %1498 = vmatprep.subr.mxu0 %v1392_v44  ;;  %v1361_v45 = vpop.permute.xlu1 %1360 }
 0x173   :  { %1499 = vmatpush1.msra.mxu0 %v1391_v43  ;;  %v1415_v46 = vpop.permute.xlu0 %1414 }
 0x174   :  { %v1418_v47 = vsel %vm241_vm2, %v1413_v1, %v1415_v46  ;;  %v4391_v46 = vld [vmem:[#allocation6 + $0xc0] sm:$0xff] }
 0x175   :  { %2190 = vrot.lane.b32.xlu1 %v4278_v41, %s3600_s7  ;;  %2194 = vrot.lane.b32.xlu0 %v4267_v6, %s3600_s7 }
 0x176   :  { %3377 = vmatpush3.msra.mxu1 %v1418_v47  ;;  %v1359_v49 = vpop.permute.xlu1 %1358 }
 0x177   :  { %v1363_v52 = vpop.permute.xlu0 %1362  ;;  %3378 = vmatprep.subr.mxu1 %v3599_v4  ;;  %v1366_v53 = vsel %vm189_vm4, %v1359_v49, %v1361_v45 }
 0x178   :  { %v1367_v54 = vsel %vm189_vm4, %v1361_v45, %v1363_v52 }
 0x179   :  { %2167 = vrot.lane.b32.xlu1 %v4269_v20, %s3598_s6  ;;  %2221 = vrot.lane.b32.xlu0 %v4292_v50, %s3601_s8 }
 0x17a   :  { %1500 = vmatprep.subr.mxu0 %v1367_v54  ;;  %v1336_v55 = vpop.permute.xlu1 %1335 }
 0x17b   :  { %1501 = vmatpush1.msra.mxu0 %v1366_v53  ;;  %v1390_v58 = vpop.permute.xlu0 %1389 }
 0x17c   :  { %v1393_v61 = vsel %vm215_vm3, %v1388_v42, %v1390_v58  ;;  %v4384_v42 = vld [vmem:[#allocation6 + $0xc8] sm:$0xff]  ;;  %v4405_v58 = vld [vmem:[#allocation6 + $0xd8] sm:$0xff] }
 0x17d   :  { %2165 = vrot.lane.b32.xlu1 %v4278_v41, %s3598_s6  ;;  %2169 = vrot.lane.b32.xlu0 %v4267_v6, %s3598_s6 }
 0x17e   :  { %3379 = vmatpush3.msra.mxu1 %v1393_v61  ;;  %v1334_v62 = vpop.permute.xlu1 %1333 }
 0x17f   :  { %v1338_v7 = vpop.permute.xlu0 %1337  ;;  %3380 = vmatprep.subr.mxu1 %v3599_v4  ;;  %v1341_v29 = vsel %vm163_vm5, %v1334_v62, %v1336_v55 }
 0x180   :  { %v1342_v27 = vsel %vm163_vm5, %v1336_v55, %v1338_v7 }
 0x181   :  { %2142 = vrot.lane.b32.xlu1 %v4269_v20, %s3597_s5  ;;  %2196 = vrot.lane.b32.xlu0 %v4292_v50, %s3600_s7 }
 0x182   :  { %1502 = vmatprep.subr.mxu0 %v1342_v27  ;;  %v1311_v21 = vpop.permute.xlu1 %1310 }
 0x183   :  { %1503 = vmatpush1.msra.mxu0 %v1341_v29  ;;  %v1365_v22 = vpop.permute.xlu0 %1364 }
 0x184   :  { %v1368_v31 = vsel %vm189_vm4, %v1363_v52, %v1365_v22 }
 0x185   :  { %2140 = vrot.lane.b32.xlu1 %v4278_v41, %s3597_s5  ;;  %2144 = vrot.lane.b32.xlu0 %v4267_v6, %s3597_s5 }
 0x186   :  { %3381 = vmatpush3.msra.mxu1 %v1368_v31  ;;  %v1309_v19 = vpop.permute.xlu1 %1308 }
 0x187   :  { %v1313_v17 = vpop.permute.xlu0 %1312  ;;  %3382 = vmatprep.subr.mxu1 %v3599_v4  ;;  %v1316_v35 = vsel %vm137_vm6, %v1309_v19, %v1311_v21 }
 0x188   :  { %v1317_v12 = vsel %vm137_vm6, %v1311_v21, %v1313_v17 }
 0x189   :  { %2117 = vrot.lane.b32.xlu1 %v4269_v20, %s3596_s4  ;;  %2171 = vrot.lane.b32.xlu0 %v4292_v50, %s3598_s6 }
 0x18a   :  { %1504 = vmatprep.subr.mxu0 %v1317_v12  ;;  %v1286_v34 = vpop.permute.xlu1 %1285 }
 0x18b   :  { %1505 = vmatpush1.msra.mxu0 %v1316_v35  ;;  %v1340_v0 = vpop.permute.xlu0 %1339 }
 0x18c   :  { %v1343_v14 = vsel %vm163_vm5, %v1338_v7, %v1340_v0 }
 0x18d   :  { %2115 = vrot.lane.b32.xlu1 %v4278_v41, %s3596_s4  ;;  %2119 = vrot.lane.b32.xlu0 %v4267_v6, %s3596_s4 }
 0x18e   :  { %3383 = vmatpush3.msra.mxu1 %v1343_v14  ;;  %v1284_v32 = vpop.permute.xlu1 %1283 }
 0x18f   :  { %v1288_v10 = vpop.permute.xlu0 %1287  ;;  %3384 = vmatprep.subr.mxu1 %v3599_v4  ;;  %v1291_v11 = vsel %vm111_vm7, %v1284_v32, %v1286_v34 }
 0x190   :  { %v1292_v36 = vsel %vm111_vm7, %v1286_v34, %v1288_v10 }
 0x191   :  { %2092 = vrot.lane.b32.xlu1 %v4269_v20, %s3595_s30  ;;  %2146 = vrot.lane.b32.xlu0 %v4292_v50, %s3597_s5 }
 0x192   :  { %1506 = vmatprep.subr.mxu0 %v1292_v36  ;;  %v1261_v63 = vpop.permute.xlu1 %1260 }
 0x193   :  { %1507 = vmatpush1.msra.mxu0 %v1291_v11  ;;  %v1315_v2 = vpop.permute.xlu0 %1314 }
 0x194   :  { %v1318_v25 = vsel %vm137_vm6, %v1313_v17, %v1315_v2 }
 0x195   :  { %2090 = vrot.lane.b32.xlu1 %v4278_v41, %s3595_s30  ;;  %2094 = vrot.lane.b32.xlu0 %v4267_v6, %s3595_s30 }
 0x196   :  { %3385 = vmatpush3.msra.mxu1 %v1318_v25  ;;  %v1259_v13 = vpop.permute.xlu1 %1258 }
 0x197   :  { %v1263_v33 = vpop.permute.xlu0 %1262  ;;  %3386 = vmatprep.subr.mxu1 %v3599_v4  ;;  %v1266_v26 = vsel %vm85_vm8, %v1259_v13, %v1261_v63 }
 0x198   :  { %v1267_v3 = vsel %vm85_vm8, %v1261_v63, %v1263_v33 }
 0x199   :  { %2067 = vrot.lane.b32.xlu1 %v4269_v20, %s3594_s2  ;;  %2121 = vrot.lane.b32.xlu0 %v4292_v50, %s3596_s4 }
 0x19a   :  { %1508 = vmatprep.subr.mxu0 %v1267_v3  ;;  %v1265_v5 = vpop.permute.xlu1 %1264 }
 0x19b   :  { %1509 = vmatpush1.msra.mxu0 %v1266_v26  ;;  %v1290_v59 = vpop.permute.xlu0 %1289  ;;  %v1268_v56 = vsel %vm85_vm8, %v1263_v33, %v1265_v5 }
 0x19c   :  { %v1293_v60 = vsel %vm111_vm7, %v1288_v10, %v1290_v59  ;;  %1510 = vmatprep.subr.mxu0 %v3946_v18  ;;  %v1246_v18 = vld [vmem:[#allocation6 + $0x70] sm:$0xff] }
 0x19d   :  { %2065 = vrot.lane.b32.xlu1 %v4278_v41, %s3594_s2  ;;  %2069 = vrot.lane.b32.xlu0 %v4267_v6, %s3594_s2 }
 0x19e   :  { %3387 = vmatpush3.msra.mxu1 %v1293_v60  ;;  %1511 = vmatpush1.msra.mxu0 %v3961_v9 }
 0x19f   :  { %3388 = vmatprep.subr.mxu1 %v3599_v4  ;;  %v1829_v57 = vpop.permute.xlu1 %1828  ;;  %v1827_v16 = vpop.permute.xlu0 %1826  ;;  %3217 = vmatmul.mubr.msk.f32.vlgmr.msra.gmra.mxu0 %vm304_vm9, %v1242_v15 }
 0x1a0   :  { %3389 = vmatpush3.msra.mxu1 %v1268_v56  ;;  %v1833_v30 = vsel %vm267_vm1, %v1827_v16, %v1829_v57  ;;  %1935 = vmatprep.mubr.f32.mxu0 %v3599_v4 }
 0x1a1   :  { %2042 = vrot.lane.b32.xlu1 %v4269_v20, %s3593_s0  ;;  %2096 = vrot.lane.b32.xlu0 %v4292_v50, %s3595_s30 }
 0x1a2   :  { %1885 = vmatprep.subr.mxu0 %v1833_v30  ;;  %3390 = vmatprep.subr.mxu1 %v3599_v4 }
 0x1a3   :  { %v1802_v9 = vpop.permute.xlu1 %1801  ;;  %v1825_v1 = vpop.permute.xlu0 %1824  ;;  %3391 = vmatpush3.msra.mxu1 %v1246_v18  ;;  %v4462_v18 = vld [vmem:[#allocation8] sm:$0xff] }
 0x1a4   :  { %v1832_v28 = vsel %vm267_vm1, %v1825_v1, %v1827_v16  ;;  %3395 = vmatprep.subr.mxu1 %v3599_v4  ;;  %3393 = vmatmul.mubr.msk.f32.vlgmr.msra.gmra.mxu1 %vm304_vm9, %v1242_v15 }
 0x1a5   :  { %2040 = vrot.lane.b32.xlu1 %v4278_v41, %s3593_s0  ;;  %2044 = vrot.lane.b32.xlu0 %v4267_v6, %s3593_s0 }
 0x1a6   :  { %1886 = vmatpush1.msra.mxu0 %v1832_v28  ;;  %3413 = vmatprep.mubr.msk.f32.mxu1 %vm3602_vm0, %v3599_v4 }
 0x1a7   :  { %v1800_v23 = vpop.permute.xlu1 %1799  ;;  %v1804_v24 = vpop.permute.xlu0 %1803 }
 0x1a8   :  { %v1807_v8 = vsel %vm241_vm2, %v1800_v23, %v1802_v9  ;;  %v1808_v40 = vsel %vm241_vm2, %v1802_v9, %v1804_v24 }
 0x1a9   :  { %2046 = vrot.lane.b32.xlu1 %v4292_v50, %s3593_s0  ;;  %2071 = vrot.lane.b32.xlu0 %v4292_v50, %s3594_s2 }
 0x1aa   :  { %1887 = vmatprep.subr.mxu0 %v1808_v40 }
 0x1ab   :  { %1888 = vmatpush1.msra.mxu0 %v1807_v8  ;;  %v1777_v43 = vpop.permute.xlu1 %1776  ;;  %v1831_v44 = vpop.permute.xlu0 %1830 }
 0x1ac   :  { %v1834_v45 = vsel %vm267_vm1, %v1829_v57, %v1831_v44  ;;  %v3219_v57 = vld [vmem:[#allocation3 + $0x4] ss:$0 sm:$0xff] }
 0x1ad   :  { %2610 = vrot.lane.b32.xlu1 %v4382_v39, %s3601_s8  ;;  %2608 = vrot.lane.b32.xlu0 %v4384_v42, %s3601_s8  ;;  %v1633_v9 = vmul.f32 %v4462_v18, %v3219_v57 }
 0x1ae   :  { %3396 = vmatpush3.msra.mxu1 %v1834_v45 }
 0x1af   :  { %v1775_v47 = vpop.permute.xlu1 %1774  ;;  %v1779_v49 = vpop.permute.xlu0 %1778  ;;  %3397 = vmatprep.subr.mxu1 %v3599_v4 }
 0x1b0   :  { %v1782_v50 = vsel %vm215_vm3, %v1775_v47, %v1777_v43  ;;  %v1783_v52 = vsel %vm215_vm3, %v1777_v43, %v1779_v49  ;;  %v4498_v47 = vld [vmem:[#allocation6 + $0xf0] sm:$0xff] }
 0x1b1   :  { %2583 = vrot.lane.b32.xlu1 %v4384_v42, %s3600_s7  ;;  %2606 = vrot.lane.b32.xlu0 %v4391_v46, %s3601_s8 }
 0x1b2   :  { %1889 = vmatprep.subr.mxu0 %v1783_v52 }
 0x1b3   :  { %1890 = vmatpush1.msra.mxu0 %v1782_v50  ;;  %v1752_v53 = vpop.permute.xlu1 %1751  ;;  %v1806_v54 = vpop.permute.xlu0 %1805 }
 0x1b4   :  { %v1809_v55 = vsel %vm241_vm2, %v1804_v24, %v1806_v54  ;;  %v4507_v54 = vld [vmem:[#allocation6 + $0xe0] sm:$0xff] }
 0x1b5   :  { %2581 = vrot.lane.b32.xlu1 %v4391_v46, %s3600_s7  ;;  %2585 = vrot.lane.b32.xlu0 %v4382_v39, %s3600_s7 }
 0x1b6   :  { %3398 = vmatpush3.msra.mxu1 %v1809_v55 }
 0x1b7   :  { %v1750_v61 = vpop.permute.xlu1 %1749  ;;  %v1754_v62 = vpop.permute.xlu0 %1753  ;;  %3399 = vmatprep.subr.mxu1 %v3599_v4 }
 0x1b8   :  { %v1757_v7 = vsel %vm189_vm4, %v1750_v61, %v1752_v53  ;;  %v1758_v29 = vsel %vm189_vm4, %v1752_v53, %v1754_v62 }
 0x1b9   :  { %2558 = vrot.lane.b32.xlu1 %v4384_v42, %s3598_s6  ;;  %2612 = vrot.lane.b32.xlu0 %v4405_v58, %s3601_s8 }
 0x1ba   :  { %1891 = vmatprep.subr.mxu0 %v1758_v29 }
 0x1bb   :  { %1892 = vmatpush1.msra.mxu0 %v1757_v7  ;;  %v1727_v27 = vpop.permute.xlu1 %1726  ;;  %v1781_v21 = vpop.permute.xlu0 %1780 }
 0x1bc   :  { %v1784_v22 = vsel %vm215_vm3, %v1779_v49, %v1781_v21  ;;  %v4500_v49 = vld [vmem:[#allocation6 + $0xe8] sm:$0xff]  ;;  %v4521_v21 = vld [vmem:[#allocation6 + $0xf8] sm:$0xff] }
 0x1bd   :  { %2556 = vrot.lane.b32.xlu1 %v4391_v46, %s3598_s6  ;;  %2560 = vrot.lane.b32.xlu0 %v4382_v39, %s3598_s6 }
 0x1be   :  { %3400 = vmatpush3.msra.mxu1 %v1784_v22 }
 0x1bf   :  { %v1725_v31 = vpop.permute.xlu1 %1724  ;;  %v1729_v19 = vpop.permute.xlu0 %1728  ;;  %3401 = vmatprep.subr.mxu1 %v3599_v4 }
 0x1c0   :  { %v1732_v17 = vsel %vm163_vm5, %v1725_v31, %v1727_v27  ;;  %v1733_v35 = vsel %vm163_vm5, %v1727_v27, %v1729_v19 }
 0x1c1   :  { %2533 = vrot.lane.b32.xlu1 %v4384_v42, %s3597_s5  ;;  %2587 = vrot.lane.b32.xlu0 %v4405_v58, %s3600_s7 }
 0x1c2   :  { %1893 = vmatprep.subr.mxu0 %v1733_v35 }
 0x1c3   :  { %1894 = vmatpush1.msra.mxu0 %v1732_v17  ;;  %v1702_v12 = vpop.permute.xlu1 %1701  ;;  %v1756_v34 = vpop.permute.xlu0 %1755 }
 0x1c4   :  { %v1759_v0 = vsel %vm189_vm4, %v1754_v62, %v1756_v34 }
 0x1c5   :  { %2531 = vrot.lane.b32.xlu1 %v4391_v46, %s3597_s5  ;;  %2535 = vrot.lane.b32.xlu0 %v4382_v39, %s3597_s5 }
 0x1c6   :  { %3402 = vmatpush3.msra.mxu1 %v1759_v0 }
 0x1c7   :  { %v1700_v14 = vpop.permute.xlu1 %1699  ;;  %v1704_v32 = vpop.permute.xlu0 %1703  ;;  %3403 = vmatprep.subr.mxu1 %v3599_v4 }
 0x1c8   :  { %v1707_v10 = vsel %vm137_vm6, %v1700_v14, %v1702_v12  ;;  %v1708_v11 = vsel %vm137_vm6, %v1702_v12, %v1704_v32 }
 0x1c9   :  { %2508 = vrot.lane.b32.xlu1 %v4384_v42, %s3596_s4  ;;  %2562 = vrot.lane.b32.xlu0 %v4405_v58, %s3598_s6 }
 0x1ca   :  { %1895 = vmatprep.subr.mxu0 %v1708_v11 }
 0x1cb   :  { %1896 = vmatpush1.msra.mxu0 %v1707_v10  ;;  %v1677_v36 = vpop.permute.xlu1 %1676  ;;  %v1731_v63 = vpop.permute.xlu0 %1730 }
 0x1cc   :  { %v1734_v2 = vsel %vm163_vm5, %v1729_v19, %v1731_v63 }
 0x1cd   :  { %2506 = vrot.lane.b32.xlu1 %v4391_v46, %s3596_s4  ;;  %2510 = vrot.lane.b32.xlu0 %v4382_v39, %s3596_s4 }
 0x1ce   :  { %3404 = vmatpush3.msra.mxu1 %v1734_v2 }
 0x1cf   :  { %v1675_v25 = vpop.permute.xlu1 %1674  ;;  %v1679_v13 = vpop.permute.xlu0 %1678  ;;  %3405 = vmatprep.subr.mxu1 %v3599_v4 }
 0x1d0   :  { %v1682_v33 = vsel %vm111_vm7, %v1675_v25, %v1677_v36  ;;  %v1683_v26 = vsel %vm111_vm7, %v1677_v36, %v1679_v13 }
 0x1d1   :  { %2483 = vrot.lane.b32.xlu1 %v4384_v42, %s3595_s30  ;;  %2537 = vrot.lane.b32.xlu0 %v4405_v58, %s3597_s5 }
 0x1d2   :  { %1897 = vmatprep.subr.mxu0 %v1683_v26 }
 0x1d3   :  { %1898 = vmatpush1.msra.mxu0 %v1682_v33  ;;  %v1652_v3 = vpop.permute.xlu1 %1651  ;;  %v1706_v51 = vpop.permute.xlu0 %1705 }
 0x1d4   :  { %v1709_v5 = vsel %vm137_vm6, %v1704_v32, %v1706_v51 }
 0x1d5   :  { %2481 = vrot.lane.b32.xlu1 %v4391_v46, %s3595_s30  ;;  %2485 = vrot.lane.b32.xlu0 %v4382_v39, %s3595_s30 }
 0x1d6   :  { %3406 = vmatpush3.msra.mxu1 %v1709_v5 }
 0x1d7   :  { %v1650_v59 = vpop.permute.xlu1 %1649  ;;  %v1654_v15 = vpop.permute.xlu0 %1653  ;;  %3407 = vmatprep.subr.mxu1 %v3599_v4 }
 0x1d8   :  { %v1657_v60 = vsel %vm85_vm8, %v1650_v59, %v1652_v3  ;;  %v1658_v56 = vsel %vm85_vm8, %v1652_v3, %v1654_v15 }
 0x1d9   :  { %2458 = vrot.lane.b32.xlu1 %v4384_v42, %s3594_s2  ;;  %2512 = vrot.lane.b32.xlu0 %v4405_v58, %s3596_s4 }
 0x1da   :  { %1899 = vmatprep.subr.mxu0 %v1658_v56 }
 0x1db   :  { %1900 = vmatpush1.msra.mxu0 %v1657_v60  ;;  %v1656_v16 = vpop.permute.xlu1 %1655  ;;  %v1681_v30 = vpop.permute.xlu0 %1680 }
 0x1dc   :  { %v1684_v1 = vsel %vm111_vm7, %v1679_v13, %v1681_v30  ;;  %1901 = vmatprep.subr.mxu0 %v4112_v38  ;;  %v1659_v28 = vsel %vm85_vm8, %v1654_v15, %v1656_v16 }
 0x1dd   :  { %2456 = vrot.lane.b32.xlu1 %v4391_v46, %s3594_s2  ;;  %2460 = vrot.lane.b32.xlu0 %v4382_v39, %s3594_s2 }
 0x1de   :  { %3408 = vmatpush3.msra.mxu1 %v1684_v1  ;;  %1902 = vmatpush1.msra.mxu0 %v4130_v48 }
 0x1df   :  { %3409 = vmatprep.subr.mxu1 %v3599_v4  ;;  %v2220_v23 = vpop.permute.xlu1 %2219  ;;  %v2218_v24 = vpop.permute.xlu0 %2217  ;;  %3220 = vmatmul.mubr.msk.f32.vlgmr.msra.gmra.mxu0 %vm304_vm9, %v1633_v9 }
 0x1e0   :  { %3410 = vmatpush3.msra.mxu1 %v1659_v28  ;;  %v2224_v38 = vsel %vm267_vm1, %v2218_v24, %v2220_v23  ;;  %2326 = vmatprep.mubr.f32.mxu0 %v3599_v4 }
 0x1e1   :  { %2433 = vrot.lane.b32.xlu1 %v4384_v42, %s3593_s0  ;;  %2487 = vrot.lane.b32.xlu0 %v4405_v58, %s3595_s30 }
 0x1e2   :  { %2276 = vmatprep.subr.mxu0 %v2224_v38  ;;  %3411 = vmatprep.subr.mxu1 %v3599_v4 }
 0x1e3   :  { %v2193_v48 = vpop.permute.xlu1 %2192  ;;  %v2216_v8 = vpop.permute.xlu0 %2215  ;;  %3412 = vmatpush3.msra.mxu1 %v4110_v37 }
 0x1e4   :  { %v2223_v40 = vsel %vm267_vm1, %v2216_v8, %v2218_v24  ;;  %3416 = vmatprep.subr.mxu1 %v3599_v4  ;;  %3414 = vmatmul.mubr.msk.f32.vlgmr.msra.gmra.mxu1 %vm304_vm9, %v1633_v9 }
 0x1e5   :  { %2431 = vrot.lane.b32.xlu1 %v4391_v46, %s3593_s0  ;;  %2435 = vrot.lane.b32.xlu0 %v4382_v39, %s3593_s0 }
 0x1e6   :  { %2277 = vmatpush1.msra.mxu0 %v2223_v40  ;;  %3434 = vmatprep.mubr.msk.f32.mxu1 %vm3602_vm0, %v3599_v4 }
 0x1e7   :  { %v2191_v43 = vpop.permute.xlu1 %2190  ;;  %v2195_v44 = vpop.permute.xlu0 %2194 }
 0x1e8   :  { %v2198_v37 = vsel %vm241_vm2, %v2191_v43, %v2193_v48  ;;  %v2199_v45 = vsel %vm241_vm2, %v2193_v48, %v2195_v44 }
 0x1e9   :  { %2437 = vrot.lane.b32.xlu1 %v4405_v58, %s3593_s0  ;;  %2462 = vrot.lane.b32.xlu0 %v4405_v58, %s3594_s2 }
 0x1ea   :  { %2278 = vmatprep.subr.mxu0 %v2199_v45 }
 0x1eb   :  { %2279 = vmatpush1.msra.mxu0 %v2198_v37  ;;  %v2168_v50 = vpop.permute.xlu1 %2167  ;;  %v2222_v52 = vpop.permute.xlu0 %2221 }
 0x1ec   :  { %v2225_v53 = vsel %vm267_vm1, %v2220_v23, %v2222_v52  ;;  %v3222_v23 = vld [vmem:[#allocation3 + $0x5] ss:$0 sm:$0xff]  ;;  %v445_v37 = vpop.f32.mrf.mxu1 }
 0x1ed   :  { %3001 = vrot.lane.b32.xlu1 %v4498_v47, %s3601_s8  ;;  %2999 = vrot.lane.b32.xlu0 %v4500_v49, %s3601_s8  ;;  %v2024_v48 = vmul.f32 %v4462_v18, %v3222_v23  ;;  %451 = vst [vmem:[#allocation9 + $0x10] sm:$0xff] %v445_v37  ;;  %v3225_v37 = vld [vmem:[#allocation3 + $0x6] ss:$0 sm:$0xff] }
 0x1ee   :  { %3417 = vmatpush3.msra.mxu1 %v2225_v53 }
 0x1ef   :  { %v2166_v55 = vpop.permute.xlu1 %2165  ;;  %v2170_v58 = vpop.permute.xlu0 %2169  ;;  %3418 = vmatprep.subr.mxu1 %v3599_v4 }
 0x1f0   :  { %v2173_v61 = vsel %vm215_vm3, %v2166_v55, %v2168_v50  ;;  %v2174_v62 = vsel %vm215_vm3, %v2168_v50, %v2170_v58  ;;  %v3331_v55 = vpop.f32.mrf.mxu1 }
 0x1f1   :  { %2974 = vrot.lane.b32.xlu1 %v4500_v49, %s3600_s7  ;;  %2997 = vrot.lane.b32.xlu0 %v4507_v54, %s3601_s8  ;;  %v2415_v55 = vmul.f32 %v4462_v18, %v3225_v37 }
 0x1f2   :  { %2280 = vmatprep.subr.mxu0 %v2174_v62 }
 0x1f3   :  { %2281 = vmatpush1.msra.mxu0 %v2173_v61  ;;  %v2143_v7 = vpop.permute.xlu1 %2142  ;;  %v2197_v29 = vpop.permute.xlu0 %2196 }
 0x1f4   :  { %v2200_v27 = vsel %vm241_vm2, %v2195_v44, %v2197_v29 }
 0x1f5   :  { %2972 = vrot.lane.b32.xlu1 %v4507_v54, %s3600_s7  ;;  %2976 = vrot.lane.b32.xlu0 %v4498_v47, %s3600_s7 }
 0x1f6   :  { %3419 = vmatpush3.msra.mxu1 %v2200_v27 }
 0x1f7   :  { %v2141_v22 = vpop.permute.xlu1 %2140  ;;  %v2145_v31 = vpop.permute.xlu0 %2144  ;;  %3420 = vmatprep.subr.mxu1 %v3599_v4 }
 0x1f8   :  { %v2148_v19 = vsel %vm189_vm4, %v2141_v22, %v2143_v7  ;;  %v2149_v17 = vsel %vm189_vm4, %v2143_v7, %v2145_v31 }
 0x1f9   :  { %2949 = vrot.lane.b32.xlu1 %v4500_v49, %s3598_s6  ;;  %3003 = vrot.lane.b32.xlu0 %v4521_v21, %s3601_s8 }
 0x1fa   :  { %2282 = vmatprep.subr.mxu0 %v2149_v17 }
 0x1fb   :  { %2283 = vmatpush1.msra.mxu0 %v2148_v19  ;;  %v2118_v35 = vpop.permute.xlu1 %2117  ;;  %v2172_v12 = vpop.permute.xlu0 %2171 }
 0x1fc   :  { %v2175_v34 = vsel %vm215_vm3, %v2170_v58, %v2172_v12  ;;  %v835_v58 = vpop.f32.mrf.mxu1 }
 0x1fd   :  { %2947 = vrot.lane.b32.xlu1 %v4507_v54, %s3598_s6  ;;  %2951 = vrot.lane.b32.xlu0 %v4498_v47, %s3598_s6  ;;  %842 = vst [vmem:[#allocation9 + $0x28] sm:$0xff] %v835_v58 }
 0x1fe   :  { %3421 = vmatpush3.msra.mxu1 %v2175_v34  ;;  %v3352_v22 = vpop.f32.mrf.mxu1 }
 0x1ff   :  { %v2116_v0 = vpop.permute.xlu1 %2115  ;;  %v2120_v14 = vpop.permute.xlu0 %2119  ;;  %3422 = vmatprep.subr.mxu1 %v3599_v4 }
 0x200   :  { %v2123_v32 = vsel %vm163_vm5, %v2116_v0, %v2118_v35  ;;  %v2124_v10 = vsel %vm163_vm5, %v2118_v35, %v2120_v14 }
 0x201   :  { %2924 = vrot.lane.b32.xlu1 %v4500_v49, %s3597_s5  ;;  %2978 = vrot.lane.b32.xlu0 %v4521_v21, %s3600_s7 }
 0x202   :  { %2284 = vmatprep.subr.mxu0 %v2124_v10 }
 0x203   :  { %2285 = vmatpush1.msra.mxu0 %v2123_v32  ;;  %v2093_v11 = vpop.permute.xlu1 %2092  ;;  %v2147_v36 = vpop.permute.xlu0 %2146 }
 0x204   :  { %v2150_v63 = vsel %vm189_vm4, %v2145_v31, %v2147_v36 }
 0x205   :  { %2922 = vrot.lane.b32.xlu1 %v4507_v54, %s3597_s5  ;;  %2926 = vrot.lane.b32.xlu0 %v4498_v47, %s3597_s5 }
 0x206   :  { %3423 = vmatpush3.msra.mxu1 %v2150_v63 }
 0x207   :  { %v2091_v2 = vpop.permute.xlu1 %2090  ;;  %v2095_v25 = vpop.permute.xlu0 %2094  ;;  %3424 = vmatprep.subr.mxu1 %v3599_v4 }
 0x208   :  { %v2098_v13 = vsel %vm137_vm6, %v2091_v2, %v2093_v11  ;;  %v2099_v33 = vsel %vm137_vm6, %v2093_v11, %v2095_v25 }
 0x209   :  { %2899 = vrot.lane.b32.xlu1 %v4500_v49, %s3596_s4  ;;  %2953 = vrot.lane.b32.xlu0 %v4521_v21, %s3598_s6 }
 0x20a   :  { %2286 = vmatprep.subr.mxu0 %v2099_v33 }
 0x20b   :  { %2287 = vmatpush1.msra.mxu0 %v2098_v13  ;;  %v2068_v26 = vpop.permute.xlu1 %2067  ;;  %v2122_v3 = vpop.permute.xlu0 %2121 }
 0x20c   :  { %v2125_v51 = vsel %vm163_vm5, %v2120_v14, %v2122_v3 }
 0x20d   :  { %2897 = vrot.lane.b32.xlu1 %v4507_v54, %s3596_s4  ;;  %2901 = vrot.lane.b32.xlu0 %v4498_v47, %s3596_s4 }
 0x20e   :  { %3425 = vmatpush3.msra.mxu1 %v2125_v51 }
 0x20f   :  { %v2066_v5 = vpop.permute.xlu1 %2065  ;;  %v2070_v59 = vpop.permute.xlu0 %2069  ;;  %3426 = vmatprep.subr.mxu1 %v3599_v4 }
 0x210   :  { %v2073_v15 = vsel %vm111_vm7, %v2066_v5, %v2068_v26  ;;  %v2074_v60 = vsel %vm111_vm7, %v2068_v26, %v2070_v59 }
 0x211   :  { %2874 = vrot.lane.b32.xlu1 %v4500_v49, %s3595_s30  ;;  %2928 = vrot.lane.b32.xlu0 %v4521_v21, %s3597_s5 }
 0x212   :  { %2288 = vmatprep.subr.mxu0 %v2074_v60 }
 0x213   :  { %2289 = vmatpush1.msra.mxu0 %v2073_v15  ;;  %v2043_v56 = vpop.permute.xlu1 %2042  ;;  %v2097_v57 = vpop.permute.xlu0 %2096 }
 0x214   :  { %v2100_v16 = vsel %vm137_vm6, %v2095_v25, %v2097_v57 }
 0x215   :  { %2872 = vrot.lane.b32.xlu1 %v4507_v54, %s3595_s30  ;;  %2876 = vrot.lane.b32.xlu0 %v4498_v47, %s3595_s30 }
 0x216   :  { %3427 = vmatpush3.msra.mxu1 %v2100_v16 }
 0x217   :  { %v2041_v30 = vpop.permute.xlu1 %2040  ;;  %v2045_v9 = vpop.permute.xlu0 %2044  ;;  %3428 = vmatprep.subr.mxu1 %v3599_v4 }
 0x218   :  { %v2048_v1 = vsel %vm85_vm8, %v2041_v30, %v2043_v56  ;;  %v2049_v28 = vsel %vm85_vm8, %v2043_v56, %v2045_v9 }
 0x219   :  { %2849 = vrot.lane.b32.xlu1 %v4500_v49, %s3594_s2  ;;  %2903 = vrot.lane.b32.xlu0 %v4521_v21, %s3596_s4 }
 0x21a   :  { %2290 = vmatprep.subr.mxu0 %v2049_v28 }
 0x21b   :  { %2291 = vmatpush1.msra.mxu0 %v2048_v1  ;;  %v2047_v24 = vpop.permute.xlu1 %2046  ;;  %v2072_v38 = vpop.permute.xlu0 %2071 }
 0x21c   :  { %v2075_v8 = vsel %vm111_vm7, %v2070_v59, %v2072_v38  ;;  %2292 = vmatprep.subr.mxu0 %v4269_v20  ;;  %v2050_v40 = vsel %vm85_vm8, %v2045_v9, %v2047_v24 }
 0x21d   :  { %2847 = vrot.lane.b32.xlu1 %v4507_v54, %s3594_s2  ;;  %2851 = vrot.lane.b32.xlu0 %v4498_v47, %s3594_s2 }
 0x21e   :  { %3429 = vmatpush3.msra.mxu1 %v2075_v8  ;;  %2293 = vmatpush1.msra.mxu0 %v4278_v41  ;;  %v374_v41 = vpop.f32.mrf.mxu0 }
 0x21f   :  { %3430 = vmatprep.subr.mxu1 %v3599_v4  ;;  %v2611_v43 = vpop.permute.xlu1 %2610  ;;  %v2609_v44 = vpop.permute.xlu0 %2608  ;;  %3223 = vmatmul.mubr.msk.f32.vlgmr.msra.gmra.mxu0 %vm304_vm9, %v2024_v48  ;;  %449 = vst [vmem:[#allocation9] sm:$0xff] %v374_v41 }
 0x220   :  { %3431 = vmatpush3.msra.mxu1 %v2050_v40  ;;  %v2615_v20 = vsel %vm267_vm1, %v2609_v44, %v2611_v43  ;;  %2717 = vmatprep.mubr.f32.mxu0 %v3599_v4  ;;  %v376_v53 = vpop.f32.mrf.mxu0 }
 0x221   :  { %2824 = vrot.lane.b32.xlu1 %v4500_v49, %s3593_s0  ;;  %2878 = vrot.lane.b32.xlu0 %v4521_v21, %s3595_s30  ;;  %450 = vst [vmem:[#allocation9 + $0x8] sm:$0xff] %v376_v53 }
 0x222   :  { %2667 = vmatprep.subr.mxu0 %v2615_v20  ;;  %3432 = vmatprep.subr.mxu1 %v3599_v4 }
 0x223   :  { %v2584_v45 = vpop.permute.xlu1 %2583  ;;  %v2607_v50 = vpop.permute.xlu0 %2606  ;;  %3433 = vmatpush3.msra.mxu1 %v4267_v6 }
 0x224   :  { %v2614_v52 = vsel %vm267_vm1, %v2607_v50, %v2609_v44  ;;  %3437 = vmatprep.subr.mxu1 %v3599_v4  ;;  %3435 = vmatmul.mubr.msk.f32.vlgmr.msra.gmra.mxu1 %vm304_vm9, %v2024_v48  ;;  %v764_v6 = vpop.f32.mrf.mxu0 }
 0x225   :  { %2822 = vrot.lane.b32.xlu1 %v4507_v54, %s3593_s0  ;;  %2826 = vrot.lane.b32.xlu0 %v4498_v47, %s3593_s0  ;;  %840 = vst [vmem:[#allocation9 + $0x18] sm:$0xff] %v764_v6 }
 0x226   :  { %2668 = vmatpush1.msra.mxu0 %v2614_v52  ;;  %3455 = vmatprep.mubr.msk.f32.mxu1 %vm3602_vm0, %v3599_v4  ;;  %v766_v27 = vpop.f32.mrf.mxu0 }
 0x227   :  { %v2582_v61 = vpop.permute.xlu1 %2581  ;;  %v2586_v62 = vpop.permute.xlu0 %2585  ;;  %841 = vst [vmem:[#allocation9 + $0x20] sm:$0xff] %v766_v27 }
 0x228   :  { %v2589_v7 = vsel %vm241_vm2, %v2582_v61, %v2584_v45  ;;  %v2590_v29 = vsel %vm241_vm2, %v2584_v45, %v2586_v62  ;;  %v1155_v31 = vpop.f32.mrf.mxu0  ;;  %v1226_v19 = vpop.f32.mrf.mxu1 }
 0x229   :  { %2828 = vrot.lane.b32.xlu1 %v4521_v21, %s3593_s0  ;;  %2853 = vrot.lane.b32.xlu0 %v4521_v21, %s3594_s2  ;;  %1231 = vst [vmem:[#allocation9 + $0x30] sm:$0xff] %v1155_v31  ;;  %1233 = vst [vmem:[#allocation9 + $0x40] sm:$0xff] %v1226_v19 }
 0x22a   :  { %2669 = vmatprep.subr.mxu0 %v2590_v29  ;;  %v1157_v34 = vpop.f32.mrf.mxu0  ;;  %v3373_v0 = vpop.f32.mrf.mxu1 }
 0x22b   :  { %2670 = vmatpush1.msra.mxu0 %v2589_v7  ;;  %v2559_v17 = vpop.permute.xlu1 %2558  ;;  %v2613_v35 = vpop.permute.xlu0 %2612  ;;  %1232 = vst [vmem:[#allocation9 + $0x38] sm:$0xff] %v1157_v34 }
 0x22c   :  { %v2616_v12 = vsel %vm267_vm1, %v2611_v43, %v2613_v35 }
 0x22d   :  { %3438 = vmatpush3.msra.mxu1 %v2616_v12 }
 0x22e   :  { %3439 = vmatprep.subr.mxu1 %v3599_v4 }
 0x22f   :  { %v2557_v14 = vpop.permute.xlu1 %2556  ;;  %v2561_v32 = vpop.permute.xlu0 %2560 }
 0x230   :  { %v2564_v21 = vsel %vm215_vm3, %v2557_v14, %v2559_v17  ;;  %v2565_v10 = vsel %vm215_vm3, %v2559_v17, %v2561_v32 }
 0x231   :  { %2671 = vmatprep.subr.mxu0 %v2565_v10 }
 0x232   :  { %2672 = vmatpush1.msra.mxu0 %v2564_v21 }
 0x233   :  { %v2534_v11 = vpop.permute.xlu1 %2533  ;;  %v2588_v36 = vpop.permute.xlu0 %2587 }
 0x234   :  { %v2591_v63 = vsel %vm241_vm2, %v2586_v62, %v2588_v36 }
 0x235   :  { %3440 = vmatpush3.msra.mxu1 %v2591_v63 }
 0x236   :  { %3441 = vmatprep.subr.mxu1 %v3599_v4 }
 0x237   :  { %v2532_v2 = vpop.permute.xlu1 %2531  ;;  %v2536_v25 = vpop.permute.xlu0 %2535 }
 0x238   :  { %v2539_v13 = vsel %vm189_vm4, %v2532_v2, %v2534_v11  ;;  %v2540_v33 = vsel %vm189_vm4, %v2534_v11, %v2536_v25 }
 0x239   :  { %2673 = vmatprep.subr.mxu0 %v2540_v33 }
 0x23a   :  { %2674 = vmatpush1.msra.mxu0 %v2539_v13 }
 0x23b   :  { %v2509_v26 = vpop.permute.xlu1 %2508  ;;  %v2563_v3 = vpop.permute.xlu0 %2562 }
 0x23c   :  { %v2566_v51 = vsel %vm215_vm3, %v2561_v32, %v2563_v3 }
 0x23d   :  { %3442 = vmatpush3.msra.mxu1 %v2566_v51 }
 0x23e   :  { %3443 = vmatprep.subr.mxu1 %v3599_v4 }
 0x23f   :  { %v2507_v5 = vpop.permute.xlu1 %2506  ;;  %v2511_v59 = vpop.permute.xlu0 %2510 }
 0x240   :  { %v2514_v15 = vsel %vm163_vm5, %v2507_v5, %v2509_v26  ;;  %v2515_v60 = vsel %vm163_vm5, %v2509_v26, %v2511_v59 }
 0x241   :  { %2675 = vmatprep.subr.mxu0 %v2515_v60 }
 0x242   :  { %2676 = vmatpush1.msra.mxu0 %v2514_v15 }
 0x243   :  { %v2484_v56 = vpop.permute.xlu1 %2483  ;;  %v2538_v57 = vpop.permute.xlu0 %2537 }
 0x244   :  { %v2541_v16 = vsel %vm189_vm4, %v2536_v25, %v2538_v57 }
 0x245   :  { %3444 = vmatpush3.msra.mxu1 %v2541_v16 }
 0x246   :  { %3445 = vmatprep.subr.mxu1 %v3599_v4 }
 0x247   :  { %v2482_v30 = vpop.permute.xlu1 %2481  ;;  %v2486_v9 = vpop.permute.xlu0 %2485 }
 0x248   :  { %v2489_v1 = vsel %vm137_vm6, %v2482_v30, %v2484_v56  ;;  %v2490_v28 = vsel %vm137_vm6, %v2484_v56, %v2486_v9 }
 0x249   :  { %2677 = vmatprep.subr.mxu0 %v2490_v28 }
 0x24a   :  { %2678 = vmatpush1.msra.mxu0 %v2489_v1 }
 0x24b   :  { %v2459_v23 = vpop.permute.xlu1 %2458  ;;  %v2513_v24 = vpop.permute.xlu0 %2512 }
 0x24c   :  { %v2516_v38 = vsel %vm163_vm5, %v2511_v59, %v2513_v24 }
 0x24d   :  { %3446 = vmatpush3.msra.mxu1 %v2516_v38 }
 0x24e   :  { %3447 = vmatprep.subr.mxu1 %v3599_v4 }
 0x24f   :  { %v2457_v48 = vpop.permute.xlu1 %2456  ;;  %v2461_v8 = vpop.permute.xlu0 %2460 }
 0x250   :  { %v2464_v40 = vsel %vm111_vm7, %v2457_v48, %v2459_v23  ;;  %v2465_v43 = vsel %vm111_vm7, %v2459_v23, %v2461_v8 }
 0x251   :  { %2679 = vmatprep.subr.mxu0 %v2465_v43 }
 0x252   :  { %2680 = vmatpush1.msra.mxu0 %v2464_v40 }
 0x253   :  { %v2434_v44 = vpop.permute.xlu1 %2433  ;;  %v2488_v20 = vpop.permute.xlu0 %2487 }
 0x254   :  { %v2491_v41 = vsel %vm137_vm6, %v2486_v9, %v2488_v20 }
 0x255   :  { %3448 = vmatpush3.msra.mxu1 %v2491_v41 }
 0x256   :  { %3449 = vmatprep.subr.mxu1 %v3599_v4 }
 0x257   :  { %v2432_v45 = vpop.permute.xlu1 %2431  ;;  %v2436_v50 = vpop.permute.xlu0 %2435 }
 0x258   :  { %v2439_v52 = vsel %vm85_vm8, %v2432_v45, %v2434_v44  ;;  %v2440_v53 = vsel %vm85_vm8, %v2434_v44, %v2436_v50 }
 0x259   :  { %2681 = vmatprep.subr.mxu0 %v2440_v53 }
 0x25a   :  { %2682 = vmatpush1.msra.mxu0 %v2439_v52  ;;  %v3228_v52 = vld [vmem:[#allocation3 + $0x7] ss:$0 sm:$0xff] }
 0x25b   :  { %v2438_v6 = vpop.permute.xlu1 %2437  ;;  %v2463_v58 = vpop.permute.xlu0 %2462  ;;  %2683 = vmatprep.subr.mxu0 %v4384_v42 }
 0x25c   :  { %v2466_v61 = vsel %vm111_vm7, %v2461_v8, %v2463_v58  ;;  %2684 = vmatpush1.msra.mxu0 %v4391_v46  ;;  %v2441_v62 = vsel %vm85_vm8, %v2436_v50, %v2438_v6 }
 0x25d   :  { %3450 = vmatpush3.msra.mxu1 %v2466_v61  ;;  %3226 = vmatmul.mubr.msk.f32.vlgmr.msra.gmra.mxu0 %vm304_vm9, %v2415_v55  ;;  %v2806_v61 = vmul.f32 %v4462_v18, %v3228_v52 }
 0x25e   :  { %3451 = vmatprep.subr.mxu1 %v3599_v4  ;;  %3108 = vmatprep.mubr.f32.mxu0 %v3599_v4 }
 0x25f   :  { %v3002_v7 = vpop.permute.xlu1 %3001  ;;  %v3000_v29 = vpop.permute.xlu0 %2999  ;;  %3452 = vmatpush3.msra.mxu1 %v2441_v62 }
 0x260   :  { %v3006_v27 = vsel %vm267_vm1, %v3000_v29, %v3002_v7  ;;  %3453 = vmatprep.subr.mxu1 %v3599_v4  ;;  %v1546_v42 = vpop.f32.mrf.mxu0 }
 0x261   :  { %3058 = vmatprep.subr.mxu0 %v3006_v27  ;;  %3454 = vmatpush3.msra.mxu1 %v4382_v39  ;;  %1622 = vst [vmem:[#allocation9 + $0x48] sm:$0xff] %v1546_v42 }
 0x262   :  { %3458 = vmatprep.subr.mxu1 %v3599_v4  ;;  %3456 = vmatmul.mubr.msk.f32.vlgmr.msra.gmra.mxu1 %vm304_vm9, %v2415_v55  ;;  %v1548_v46 = vpop.f32.mrf.mxu0 }
 0x263   :  { %v2975_v22 = vpop.permute.xlu1 %2974  ;;  %v2998_v31 = vpop.permute.xlu0 %2997  ;;  %3476 = vmatprep.mubr.msk.f32.mxu1 %vm3602_vm0, %v3599_v4  ;;  %1623 = vst [vmem:[#allocation9 + $0x50] sm:$0xff] %v1548_v46 }
 0x264   :  { %v3005_v19 = vsel %vm267_vm1, %v2998_v31, %v3000_v29  ;;  %v1617_v17 = vpop.f32.mrf.mxu1 }
 0x265   :  { %3059 = vmatpush1.msra.mxu0 %v3005_v19  ;;  %1624 = vst [vmem:[#allocation9 + $0x58] sm:$0xff] %v1617_v17 }
 0x266   :  { %v3394_v35 = vpop.f32.mrf.mxu1 }
 0x267   :  { %v2973_v12 = vpop.permute.xlu1 %2972  ;;  %v2977_v39 = vpop.permute.xlu0 %2976 }
 0x268   :  { %v2980_v34 = vsel %vm241_vm2, %v2973_v12, %v2975_v22  ;;  %v2981_v0 = vsel %vm241_vm2, %v2975_v22, %v2977_v39 }
 0x269   :  { %3060 = vmatprep.subr.mxu0 %v2981_v0 }
 0x26a   :  { %3061 = vmatpush1.msra.mxu0 %v2980_v34 }
 0x26b   :  { %v2950_v14 = vpop.permute.xlu1 %2949  ;;  %v3004_v32 = vpop.permute.xlu0 %3003 }
 0x26c   :  { %v3007_v21 = vsel %vm267_vm1, %v3002_v7, %v3004_v32 }
 0x26d   :  { %3459 = vmatpush3.msra.mxu1 %v3007_v21 }
 0x26e   :  { %3460 = vmatprep.subr.mxu1 %v3599_v4 }
 0x26f   :  { %v2948_v10 = vpop.permute.xlu1 %2947  ;;  %v2952_v11 = vpop.permute.xlu0 %2951 }
 0x270   :  { %v2955_v36 = vsel %vm215_vm3, %v2948_v10, %v2950_v14  ;;  %v2956_v63 = vsel %vm215_vm3, %v2950_v14, %v2952_v11 }
 0x271   :  { %3062 = vmatprep.subr.mxu0 %v2956_v63 }
 0x272   :  { %3063 = vmatpush1.msra.mxu0 %v2955_v36 }
 0x273   :  { %v2925_v2 = vpop.permute.xlu1 %2924  ;;  %v2979_v25 = vpop.permute.xlu0 %2978 }
 0x274   :  { %v2982_v13 = vsel %vm241_vm2, %v2977_v39, %v2979_v25 }
 0x275   :  { %3461 = vmatpush3.msra.mxu1 %v2982_v13 }
 0x276   :  { %3462 = vmatprep.subr.mxu1 %v3599_v4 }
 0x277   :  { %v2923_v33 = vpop.permute.xlu1 %2922  ;;  %v2927_v26 = vpop.permute.xlu0 %2926 }
 0x278   :  { %v2930_v3 = vsel %vm189_vm4, %v2923_v33, %v2925_v2  ;;  %v2931_v51 = vsel %vm189_vm4, %v2925_v2, %v2927_v26 }
 0x279   :  { %3064 = vmatprep.subr.mxu0 %v2931_v51 }
 0x27a   :  { %3065 = vmatpush1.msra.mxu0 %v2930_v3 }
 0x27b   :  { %v2900_v5 = vpop.permute.xlu1 %2899  ;;  %v2954_v59 = vpop.permute.xlu0 %2953 }
 0x27c   :  { %v2957_v15 = vsel %vm215_vm3, %v2952_v11, %v2954_v59 }
 0x27d   :  { %3463 = vmatpush3.msra.mxu1 %v2957_v15 }
 0x27e   :  { %3464 = vmatprep.subr.mxu1 %v3599_v4 }
 0x27f   :  { %v2898_v60 = vpop.permute.xlu1 %2897  ;;  %v2902_v56 = vpop.permute.xlu0 %2901 }
 0x280   :  { %v2905_v57 = vsel %vm163_vm5, %v2898_v60, %v2900_v5  ;;  %v2906_v16 = vsel %vm163_vm5, %v2900_v5, %v2902_v56 }
 0x281   :  { %3066 = vmatprep.subr.mxu0 %v2906_v16 }
 0x282   :  { %3067 = vmatpush1.msra.mxu0 %v2905_v57 }
 0x283   :  { %v2875_v30 = vpop.permute.xlu1 %2874  ;;  %v2929_v9 = vpop.permute.xlu0 %2928 }
 0x284   :  { %v2932_v1 = vsel %vm189_vm4, %v2927_v26, %v2929_v9 }
 0x285   :  { %3465 = vmatpush3.msra.mxu1 %v2932_v1 }
 0x286   :  { %3466 = vmatprep.subr.mxu1 %v3599_v4 }
 0x287   :  { %v2873_v28 = vpop.permute.xlu1 %2872  ;;  %v2877_v23 = vpop.permute.xlu0 %2876 }
 0x288   :  { %v2880_v24 = vsel %vm137_vm6, %v2873_v28, %v2875_v30  ;;  %v2881_v38 = vsel %vm137_vm6, %v2875_v30, %v2877_v23 }
 0x289   :  { %3068 = vmatprep.subr.mxu0 %v2881_v38 }
 0x28a   :  { %3069 = vmatpush1.msra.mxu0 %v2880_v24 }
 0x28b   :  { %v2850_v48 = vpop.permute.xlu1 %2849  ;;  %v2904_v8 = vpop.permute.xlu0 %2903 }
 0x28c   :  { %v2907_v40 = vsel %vm163_vm5, %v2902_v56, %v2904_v8 }
 0x28d   :  { %3467 = vmatpush3.msra.mxu1 %v2907_v40 }
 0x28e   :  { %3468 = vmatprep.subr.mxu1 %v3599_v4 }
 0x28f   :  { %v2848_v43 = vpop.permute.xlu1 %2847  ;;  %v2852_v44 = vpop.permute.xlu0 %2851 }
 0x290   :  { %v2855_v20 = vsel %vm111_vm7, %v2848_v43, %v2850_v48  ;;  %v2856_v41 = vsel %vm111_vm7, %v2850_v48, %v2852_v44 }
 0x291   :  { %3070 = vmatprep.subr.mxu0 %v2856_v41 }
 0x292   :  { %3071 = vmatpush1.msra.mxu0 %v2855_v20 }
 0x293   :  { %v2825_v37 = vpop.permute.xlu1 %2824  ;;  %v2879_v45 = vpop.permute.xlu0 %2878 }
 0x294   :  { %v2882_v50 = vsel %vm137_vm6, %v2877_v23, %v2879_v45 }
 0x295   :  { %3469 = vmatpush3.msra.mxu1 %v2882_v50 }
 0x296   :  { %3470 = vmatprep.subr.mxu1 %v3599_v4 }
 0x297   :  { %v2823_v53 = vpop.permute.xlu1 %2822  ;;  %v2827_v55 = vpop.permute.xlu0 %2826 }
 0x298   :  { %v2830_v6 = vsel %vm85_vm8, %v2823_v53, %v2825_v37  ;;  %v2831_v58 = vsel %vm85_vm8, %v2825_v37, %v2827_v55 }
 0x299   :  { %3072 = vmatprep.subr.mxu0 %v2831_v58 }
 0x29a   :  { %3073 = vmatpush1.msra.mxu0 %v2830_v6 }
 0x29b   :  { %v2829_v62 = vpop.permute.xlu1 %2828  ;;  %v2854_v7 = vpop.permute.xlu0 %2853  ;;  %3074 = vmatprep.subr.mxu0 %v4500_v49 }
 0x29c   :  { %v2857_v29 = vsel %vm111_vm7, %v2852_v44, %v2854_v7  ;;  %3075 = vmatpush1.msra.mxu0 %v4507_v54  ;;  %v2832_v27 = vsel %vm85_vm8, %v2827_v55, %v2829_v62 }
 0x29d   :  { %3471 = vmatpush3.msra.mxu1 %v2857_v29  ;;  %3229 = vmatmul.mubr.msk.f32.vlgmr.msra.gmra.mxu0 %vm304_vm9, %v2806_v61 }
 0x29e   :  { %3472 = vmatprep.subr.mxu1 %v3599_v4 }
 0x29f   :  { %3473 = vmatpush3.msra.mxu1 %v2832_v27  ;;  %v1937_v42 = vpop.f32.mrf.mxu0 }
 0x2a0   :  { %3474 = vmatprep.subr.mxu1 %v3599_v4  ;;  %2013 = vst [vmem:[#allocation9 + $0x60] sm:$0xff] %v1937_v42 }
 0x2a1   :  { %3475 = vmatpush3.msra.mxu1 %v4498_v47  ;;  %v1939_v18 = vpop.f32.mrf.mxu0 }
 0x2a2   :  { %3477 = vmatmul.mubr.msk.f32.vlgmr.msra.gmra.mxu1 %vm304_vm9, %v2806_v61  ;;  %2014 = vst [vmem:[#allocation9 + $0x68] sm:$0xff] %v1939_v18 }
 0x2a4   :  { %v2008_v49 = vpop.f32.mrf.mxu1 }
 0x2a5   :  { %2015 = vst [vmem:[#allocation9 + $0x70] sm:$0xff] %v2008_v49 }
 0x2a6   :  { %v3415_v54 = vpop.f32.mrf.mxu1 }
 0x2df   :  { %v2328_v46 = vpop.f32.mrf.mxu0 }
 0x2e0   :  { %2404 = vst [vmem:[#allocation9 + $0x78] sm:$0xff] %v2328_v46 }
 0x2e1   :  { %v2330_v22 = vpop.f32.mrf.mxu0 }
 0x2e2   :  { %2405 = vst [vmem:[#allocation9 + $0x80] sm:$0xff] %v2330_v22 }
 0x2e4   :  { %v2399_v31 = vpop.f32.mrf.mxu1 }
 0x2e5   :  { %2406 = vst [vmem:[#allocation9 + $0x88] sm:$0xff] %v2399_v31 }
 0x2e6   :  { %v3436_v19 = vpop.f32.mrf.mxu1 }
 0x31d   :  { %v2719_v17 = vpop.f32.mrf.mxu0 }
 0x31e   :  { %2795 = vst [vmem:[#allocation9 + $0x90] sm:$0xff] %v2719_v17 }
 0x31f   :  { %v2721_v4 = vpop.f32.mrf.mxu0 }
 0x320   :  { %2796 = vst [vmem:[#allocation9 + $0x98] sm:$0xff] %v2721_v4 }
 0x322   :  { %v2790_v35 = vpop.f32.mrf.mxu1 }
 0x323   :  { %2797 = vst [vmem:[#allocation9 + $0xa0] sm:$0xff] %v2790_v35 }
 0x324   :  { %v3457_v47 = vpop.f32.mrf.mxu1 }
 0x35d   :  { %v3110_v12 = vpop.f32.mrf.mxu0 }
 0x35e   :  { %3186 = vst [vmem:[#allocation9 + $0xa8] sm:$0xff] %v3110_v12 }
 0x35f   :  { %v3112_v39 = vpop.f32.mrf.mxu0 }
 0x360   :  { %3187 = vst [vmem:[#allocation9 + $0xb0] sm:$0xff] %v3112_v39 }
 0x362   :  { %v3181_v34 = vpop.f32.mrf.mxu1 }
 0x363   :  { %3188 = vst [vmem:[#allocation9 + $0xb8] sm:$0xff] %v3181_v34 }
 0x364   :  { %v3478_v0 = vpop.f32.mrf.mxu1 }
 0x365   :  { %3571 = shalt.err (!%p3568_p5)
}
 0x366   :  { %s3604_s12 = smov 384   ;;  %s3605_s13 = smov 24  }
 0x367   :  { %3200 = dma.vmem_to_hbm [thread:$0]  %s3195_s10, 3072, %s4694_s3, [#allocation5], %s3604_s12, %s3604_s12, %s3605_s13  }
 0x368   :  { %3584 = dma.done.wait [#allocation5], 3072  }
 0x369   :  { %3585 = vsyncadd [#allocation5], 4294964224 }
 0x36a   :  { %3204 = vsyncpa [#allocation4], 1 }
 0x36b   :  { %3205 = vsyncpa [#allocation7], 1 }
 0x36c   :  { %3206 = vsyncpa [#allocation5], 1 }

</bundles_post_ra>
